<compile_context>
chip_gen: v7x
topology: tpu7x:2x2x1
jax: 0.10.0
libtpu: 0.0.40
codegen_flags: <defaults>
</compile_context>

<pallas_src>
import jax
import jax.numpy as jnp
from jax.experimental import pallas as pl
from jax.experimental.pallas import tpu as pltpu

EPS = 1e-5
NEG_SLOPE = 0.1
_VMEM_LIMIT = 32 * 1024 * 1024          # safe scoped default on v5e / v6e / v7x
_ROW_BLOCK_BYTES = 4 * 1024 * 1024      # target per-step HBM bytes for tiled passes


def _row_tile(H, W, chans_per_step, budget_bytes=_ROW_BLOCK_BYTES):
    """Largest legal row tile: a multiple of 8 dividing H (or H itself) whose
    per-step block traffic (chans_per_step * TH * W * 4 B) fits the budget."""
    max_rows = max(budget_bytes // (chans_per_step * W * 4), 8)
    if H <= max_rows:
        return H                         # full rows (always a legal block dim)
    best = None
    for th in range(8, min(H, max_rows) + 1, 8):
        if H % th == 0:
            best = th
    return best if best is not None else H


# ---------------------------------------------------------------------------
# pass 1: z1 = conv1x1(x)   (+ per-lane BN1 partial sums)
# ---------------------------------------------------------------------------
def _conv1_stats_kernel(x_ref, w1_ref, z1_ref, st1_ref):
    # x_ref  : (C, TH, W)     VMEM input row-block
    # w1_ref : (Cmid, C)      SMEM 1x1 weights (out, in) -- scalar-times-plane FMAs
    # z1_ref : (Cmid, TH, W)  VMEM pre-BN conv_1 output block
    # st1_ref: (2*Cmid, W)    per-lane partials: rows [0:Cmid]=sum, [Cmid:]=sum_sq
    C = x_ref.shape[0]
    Cmid = z1_ref.shape[0]
    for m in range(Cmid):
        acc = w1_ref[m, 0] * x_ref[0]
        for c in range(1, C):
            acc = acc + w1_ref[m, c] * x_ref[c]
        z1_ref[m] = acc
        st1_ref[m:m + 1, :] = jnp.sum(acc, axis=0, keepdims=True)
        st1_ref[Cmid + m:Cmid + m + 1, :] = jnp.sum(acc * acc, axis=0,
                                                    keepdims=True)


# ---------------------------------------------------------------------------
# pass 2: y1 = lrelu(bn1(z1)); z2 = conv3x3(y1)   (+ per-lane BN2 partial sums)
# ---------------------------------------------------------------------------
def _conv2_stats_kernel(z1_ref, sc1_ref, sh1_ref, w2_ref, z2_ref, st2_ref):
    # z1_ref : (Cmid, H, W)   VMEM, one full image
    # sc1_ref: (Cmid,)        SMEM BN1 scale  (gamma * rsqrt(var+eps))
    # sh1_ref: (Cmid,)        SMEM BN1 shift  (beta - mean*scale)
    # w2_ref : (9*Cmid, C)    SMEM 3x3 weights, row = (kh*3 + kw)*Cmid + m
    # z2_ref : (C, H, W)      VMEM pre-BN conv_2 output
    # st2_ref: (2*C, W)       per-lane partials: rows [0:C]=sum, [C:]=sum_sq
    Cmid, H, W = z1_ref.shape
    C = z2_ref.shape[0]

    # Boundary masks from 2-D iota -- no HBM mask traffic.
    row = jax.lax.broadcasted_iota(jnp.int32, (H, W), 0)
    col = jax.lax.broadcasted_iota(jnp.int32, (H, W), 1)
    not_last_row = row < (H - 1)    # zeroes the wrapped source for dh == -1
    not_first_row = row > 0         # dh == +1
    not_last_col = col < (W - 1)    # dw == -1
    not_first_col = col > 0         # dw == +1

    z2 = [None] * C
    for m in range(Cmid):
        # BN1 (precomputed scale/shift) + LeakyReLU(0.1)
        y = z1_ref[m] * sc1_ref[m] + sh1_ref[m]
        y = jnp.where(y > 0, y, NEG_SLOPE * y)
        for dw in (-1, 0, 1):
            if dw == 0:
                xw = y
            elif dw == -1:
                # out[., w] needs y[., w-1]; zero the column that would wrap.
                xw = pltpu.roll(jnp.where(not_last_col, y, 0.0), 1, axis=1)
            else:
                # out[., w] needs y[., w+1]
                xw = pltpu.roll(jnp.where(not_first_col, y, 0.0), W - 1, axis=1)
            for dh in (-1, 0, 1):
                if dh == 0:
                    xs = xw
                elif dh == -1:
                    xs = pltpu.roll(jnp.where(not_last_row, xw, 0.0), 1, axis=0)
                else:
                    xs = pltpu.roll(jnp.where(not_first_row, xw, 0.0), H - 1,
                                    axis=0)
                tap = (dh + 1) * 3 + (dw + 1)
                # Reuse the rolled/masked plane across all C output channels.
                for co in range(C):
                    term = w2_ref[tap * Cmid + m, co] * xs
                    z2[co] = term if z2[co] is None else z2[co] + term

    for co in range(C):
        plane = z2[co]
        z2_ref[co] = plane
        st2_ref[co:co + 1, :] = jnp.sum(plane, axis=0, keepdims=True)
        st2_ref[C + co:C + co + 1, :] = jnp.sum(plane * plane, axis=0,
                                                keepdims=True)


# ---------------------------------------------------------------------------
# pass 3: out = x + lrelu(bn2(z2))
# ---------------------------------------------------------------------------
def _bn2_residual_kernel(x_ref, z2_ref, sc2_ref, sh2_ref, out_ref):
    # x_ref/z2_ref/out_ref: (C, TH, W) VMEM; sc2_ref/sh2_ref: (C,) SMEM
    C = x_ref.shape[0]
    for co in range(C):
        y = z2_ref[co] * sc2_ref[co] + sh2_ref[co]
        y = jnp.where(y > 0, y, NEG_SLOPE * y)
        out_ref[co] = x_ref[co] + y


# ---------------------------------------------------------------------------
# host-side glue
# ---------------------------------------------------------------------------
def _finalize_bn(partials, gamma, beta, count, nchan):
    """partials: (..., 2*nchan, W) per-lane [sum; sum_sq] rows -> scale/shift
    so that bn(z) == z * scale + shift (training-mode batch statistics)."""
    chan_axis = partials.ndim - 2
    axes = tuple(i for i in range(partials.ndim) if i != chan_axis)
    red = jnp.sum(partials, axis=axes)                       # (2*nchan,)
    mean = red[:nchan] / count
    var = jnp.maximum(red[nchan:] / count - mean * mean, 0.0)  # biased batch var
    inv = jax.lax.rsqrt(var + EPS)
    scale = gamma * inv
    shift = beta - mean * scale
    return scale, shift


@jax.jit
def residual_unit_pallas(x_nchw, w1, g1, b1, w2, g2, b2):
    """x_nchw: (N, C, H, W) f32. w1: (C, Cmid). w2: (3, 3, Cmid, C) (HWIO).
    g*/b*: BN affine params. Returns (N, C, H, W), training-mode BatchNorm."""
    N, C, H, W = x_nchw.shape
    Cmid = w1.shape[1]
    HW = H * W
    f32 = jnp.float32

    x_f = x_nchw.astype(f32)
    w1v = jnp.transpose(w1, (1, 0)).astype(f32)        # (Cmid, C)
    w2v = w2.reshape(9 * Cmid, C).astype(f32)          # row = (kh*3+kw)*Cmid + m
    g1f, b1f = g1.reshape(-1).astype(f32), b1.reshape(-1).astype(f32)
    g2f, b2f = g2.reshape(-1).astype(f32), b2.reshape(-1).astype(f32)

    smem_spec = pl.BlockSpec(memory_space=pltpu.MemorySpace.SMEM)

    # ---- pass 1: conv_1 (1x1) + BN1 partial stats --------------------------
    TH1 = _row_tile(H, W, C + Cmid)
    HB1 = H // TH1
    z1, st1 = pl.pallas_call(
        _conv1_stats_kernel,
        grid=(N, HB1),
        in_specs=[
            pl.BlockSpec((None, C, TH1, W), lambda n, h: (n, 0, h, 0)),
            smem_spec,
        ],
        out_specs=[
            pl.BlockSpec((None, Cmid, TH1, W), lambda n, h: (n, 0, h, 0)),
            pl.BlockSpec((None, None, 2 * Cmid, W), lambda n, h: (n, h, 0, 0)),
        ],
        out_shape=[
            jax.ShapeDtypeStruct((N, Cmid, H, W), f32),
            jax.ShapeDtypeStruct((N, HB1, 2 * Cmid, W), f32),
        ],
        compiler_params=pltpu.CompilerParams(
            dimension_semantics=("parallel", "parallel"),
            vmem_limit_bytes=_VMEM_LIMIT),
        cost_estimate=pl.CostEstimate(
            flops=N * HW * Cmid * (2 * C + 3),
            transcendentals=0,
            bytes_accessed=4 * (N * C * HW + N * Cmid * HW
                                + N * HB1 * 2 * Cmid * W + Cmid * C)),
    )(x_f, w1v)

    sc1, sh1 = _finalize_bn(st1, g1f, b1f, N * HW, Cmid)

    # ---- pass 2: BN1-apply + LeakyReLU + conv_2 (3x3) + BN2 partial stats --
    # TODO(synk): for very large images, row-tile this pass with a +/-1-row
    # halo (manual DMA via memory_space=pl.ANY); overlapping windows are not
    # expressible with a plain BlockSpec, so each grid step takes a full image.
    z2, st2 = pl.pallas_call(
        _conv2_stats_kernel,
        grid=(N,),
        in_specs=[
            pl.BlockSpec((None, Cmid, H, W), lambda n: (n, 0, 0, 0)),
            smem_spec,      # sc1 (Cmid,)
            smem_spec,      # sh1 (Cmid,)
            smem_spec,      # w2  (9*Cmid, C)
        ],
        out_specs=[
            pl.BlockSpec((None, C, H, W), lambda n: (n, 0, 0, 0)),
            pl.BlockSpec((None, 2 * C, W), lambda n: (n, 0, 0)),
        ],
        out_shape=[
            jax.ShapeDtypeStruct((N, C, H, W), f32),
            jax.ShapeDtypeStruct((N, 2 * C, W), f32),
        ],
        compiler_params=pltpu.CompilerParams(
            dimension_semantics=("parallel",),
            vmem_limit_bytes=_VMEM_LIMIT),
        cost_estimate=pl.CostEstimate(
            flops=N * HW * (18 * Cmid * C + 6 * Cmid + 3 * C),
            transcendentals=0,
            bytes_accessed=4 * (N * Cmid * HW + N * C * HW + N * 2 * C * W
                                + 9 * Cmid * C + 2 * Cmid)),
    )(z1, sc1, sh1, w2v)

    sc2, sh2 = _finalize_bn(st2, g2f, b2f, N * HW, C)

    # ---- pass 3: BN2-apply + LeakyReLU + residual add ----------------------
    # (no input_output_aliases: x is not donated by the caller, and a forced
    #  alias would make XLA insert a hidden full copy of x.)
    TH3 = _row_tile(H, W, 3 * C)
    HB3 = H // TH3
    out = pl.pallas_call(
        _bn2_residual_kernel,
        grid=(N, HB3),
        in_specs=[
            pl.BlockSpec((None, C, TH3, W), lambda n, h: (n, 0, h, 0)),
            pl.BlockSpec((None, C, TH3, W), lambda n, h: (n, 0, h, 0)),
            smem_spec,      # sc2 (C,)
            smem_spec,      # sh2 (C,)
        ],
        out_specs=pl.BlockSpec((None, C, TH3, W), lambda n, h: (n, 0, h, 0)),
        out_shape=jax.ShapeDtypeStruct((N, C, H, W), f32),
        compiler_params=pltpu.CompilerParams(
            dimension_semantics=("parallel", "parallel"),
            vmem_limit_bytes=_VMEM_LIMIT),
        cost_estimate=pl.CostEstimate(
            flops=5 * N * HW * C,
            transcendentals=0,
            bytes_accessed=4 * (3 * N * C * HW + 2 * C)),
    )(x_f, z2, sc2, sh2)

    return out


# ---------------------------------------------------------------------------
# plain-JAX reference (training-mode BatchNorm, same semantics as the module)
# ---------------------------------------------------------------------------
def _reference(x_nchw, w1, g1, b1, w2, g2, b2):
    x = jnp.transpose(x_nchw, (0, 2, 3, 1)).astype(jnp.float32)  # NHWC

    def bn_lrelu(y, g, b):
        mean = jnp.mean(y, axis=(0, 1, 2), keepdims=True)
        var = jnp.mean((y - mean) ** 2, axis=(0, 1, 2), keepdims=True)
        y = (y - mean) * jax.lax.rsqrt(var + EPS) * g.reshape(1, 1, 1, -1) \
            + b.reshape(1, 1, 1, -1)
        return jnp.where(y > 0, y, NEG_SLOPE * y)

    y1 = jnp.einsum('nhwc,cm->nhwm', x, w1)
    y1 = bn_lrelu(y1, g1, b1)
    y2 = jax.lax.conv_general_dilated(
        y1, w2, window_strides=(1, 1), padding=((1, 1), (1, 1)),
        dimension_numbers=('NHWC', 'HWIO', 'NHWC'))
    y2 = bn_lrelu(y2, g2, b2)
    out = x + y2
    return jnp.transpose(out, (0, 3, 1, 2))


if __name__ == "__main__":
    # Small shapes consistent with the module: in_channels=4 -> mid=2.
    N, C, H, W = 2, 4, 16, 16
    Cmid = C // 2

    key = jax.random.PRNGKey(0)
    kx, kw1, kw2 = jax.random.split(key, 3)

    x = jax.random.normal(kx, (N, C, H, W), dtype=jnp.float32)
    # conv_1 weight: torch (Cmid, C, 1, 1), std=0.01 -> stored as (C, Cmid)
    w1 = 0.01 * jax.random.normal(kw1, (C, Cmid), dtype=jnp.float32)
    # conv_2 weight: torch (C, Cmid, 3, 3), std=0.01 -> stored HWIO (3, 3, Cmid, C)
    w2 = 0.01 * jax.random.normal(kw2, (3, 3, Cmid, C), dtype=jnp.float32)
    # BatchNorm affine params (PyTorch default init: gamma=1, beta=0)
    g1 = jnp.ones((Cmid,), jnp.float32)
    b1 = jnp.zeros((Cmid,), jnp.float32)
    g2 = jnp.ones((C,), jnp.float32)
    b2 = jnp.zeros((C,), jnp.float32)

    out = residual_unit_pallas(x, w1, g1, b1, w2, g2, b2)
    out = jax.block_until_ready(out)

    ref = _reference(x, w1, g1, b1, w2, g2, b2)
    assert out.shape == (N, C, H, W), out.shape
    err = float(jnp.max(jnp.abs(out - ref)))
    assert jnp.allclose(out, ref, rtol=1e-4, atol=1e-4), err
    print("KERNEL_OK")
</pallas_src>

<mosaic_0001>
module attributes {stable_mosaic.version = 11 : i64} {
  func.func @_conv1_stats_kernel(%arg0: i32, %arg1: i32, %arg2: memref<1x4x16x16xf32, #tpu.memory_space<vmem>>, %arg3: memref<2x4xf32, #tpu.memory_space<smem>>, %arg4: memref<1x2x16x16xf32, #tpu.memory_space<vmem>>, %arg5: memref<1x1x4x16xf32, #tpu.memory_space<vmem>>) attributes {dimension_semantics = [#tpu.dimension_semantics<parallel>, #tpu.dimension_semantics<parallel>], iteration_bounds = array<i64: 2, 1>, scalar_prefetch = 0 : i64, scratch_operands = 0 : i64, tpu.core_type = #tpu.core_type<tc>, window_params = [{transform_indices = @transform_0, window_bounds = array<i64: 1, 4, 16, 16>}, {transform_indices = @transform_1, window_bounds = array<i64: 2, 4>}, {transform_indices = @transform_2, window_bounds = array<i64: 1, 2, 16, 16>}, {transform_indices = @transform_3, window_bounds = array<i64: 1, 1, 4, 16>}]} {
    %c0 = arith.constant 0 : index
    %c0_0 = arith.constant 0 : index
    %0 = memref.load %arg3[%c0, %c0_0] : memref<2x4xf32, #tpu.memory_space<smem>>
    %c0_1 = arith.constant 0 : index
    %c0_2 = arith.constant 0 : index
    %c0_3 = arith.constant 0 : index
    %c0_4 = arith.constant 0 : index
    %1 = vector.load %arg2[%c0_1, %c0_2, %c0_3, %c0_4] : memref<1x4x16x16xf32, #tpu.memory_space<vmem>>, vector<1x1x16x16xf32>
    %2 = vector.shape_cast %1 : vector<1x1x16x16xf32> to vector<16x16xf32>
    %3 = vector.broadcast %0 : f32 to vector<16x16xf32>
    %4 = arith.mulf %3, %2 : vector<16x16xf32>
    %c0_5 = arith.constant 0 : index
    %c1 = arith.constant 1 : index
    %5 = memref.load %arg3[%c0_5, %c1] : memref<2x4xf32, #tpu.memory_space<smem>>
    %c0_6 = arith.constant 0 : index
    %c1_7 = arith.constant 1 : index
    %c0_8 = arith.constant 0 : index
    %c0_9 = arith.constant 0 : index
    %6 = vector.load %arg2[%c0_6, %c1_7, %c0_8, %c0_9] : memref<1x4x16x16xf32, #tpu.memory_space<vmem>>, vector<1x1x16x16xf32>
    %7 = vector.shape_cast %6 : vector<1x1x16x16xf32> to vector<16x16xf32>
    %8 = vector.broadcast %5 : f32 to vector<16x16xf32>
    %9 = arith.mulf %8, %7 : vector<16x16xf32>
    %10 = arith.addf %4, %9 : vector<16x16xf32>
    %c0_10 = arith.constant 0 : index
    %c2 = arith.constant 2 : index
    %11 = memref.load %arg3[%c0_10, %c2] : memref<2x4xf32, #tpu.memory_space<smem>>
    %c0_11 = arith.constant 0 : index
    %c2_12 = arith.constant 2 : index
    %c0_13 = arith.constant 0 : index
    %c0_14 = arith.constant 0 : index
    %12 = vector.load %arg2[%c0_11, %c2_12, %c0_13, %c0_14] : memref<1x4x16x16xf32, #tpu.memory_space<vmem>>, vector<1x1x16x16xf32>
    %13 = vector.shape_cast %12 : vector<1x1x16x16xf32> to vector<16x16xf32>
    %14 = vector.broadcast %11 : f32 to vector<16x16xf32>
    %15 = arith.mulf %14, %13 : vector<16x16xf32>
    %16 = arith.addf %10, %15 : vector<16x16xf32>
    %c0_15 = arith.constant 0 : index
    %c3 = arith.constant 3 : index
    %17 = memref.load %arg3[%c0_15, %c3] : memref<2x4xf32, #tpu.memory_space<smem>>
    %c0_16 = arith.constant 0 : index
    %c3_17 = arith.constant 3 : index
    %c0_18 = arith.constant 0 : index
    %c0_19 = arith.constant 0 : index
    %18 = vector.load %arg2[%c0_16, %c3_17, %c0_18, %c0_19] : memref<1x4x16x16xf32, #tpu.memory_space<vmem>>, vector<1x1x16x16xf32>
    %19 = vector.shape_cast %18 : vector<1x1x16x16xf32> to vector<16x16xf32>
    %20 = vector.broadcast %17 : f32 to vector<16x16xf32>
    %21 = arith.mulf %20, %19 : vector<16x16xf32>
    %22 = arith.addf %16, %21 : vector<16x16xf32>
    %c0_20 = arith.constant 0 : index
    %c0_21 = arith.constant 0 : index
    %c0_22 = arith.constant 0 : index
    %c0_23 = arith.constant 0 : index
    %23 = vector.load %arg4[%c0_20, %c0_21, %c0_22, %c0_23] : memref<1x2x16x16xf32, #tpu.memory_space<vmem>>, vector<1x1x16x16xf32>
    %24 = vector.shape_cast %23 : vector<1x1x16x16xf32> to vector<16x16xf32>
    %25 = vector.shape_cast %22 : vector<16x16xf32> to vector<1x1x16x16xf32>
    tpu.vector_store %arg4[%c0_20, %c0_21, %c0_22, %c0_23], %25 {strides = array<i32>} : memref<1x2x16x16xf32, #tpu.memory_space<vmem>>, vector<1x1x16x16xf32>,
    %cst = arith.constant dense<0.000000e+00> : vector<16xf32>
    %26 = vector.multi_reduction <add>, %22, %cst [0] : vector<16x16xf32> to vector<16xf32>
    %27 = vector.shape_cast %26 : vector<16xf32> to vector<1x16xf32>
    %c0_24 = arith.constant 0 : index
    %c0_25 = arith.constant 0 : index
    %c0_26 = arith.constant 0 : index
    %c0_27 = arith.constant 0 : index
    %28 = vector.load %arg5[%c0_24, %c0_25, %c0_26, %c0_27] : memref<1x1x4x16xf32, #tpu.memory_space<vmem>>, vector<1x1x1x16xf32>
    %29 = vector.shape_cast %28 : vector<1x1x1x16xf32> to vector<1x16xf32>
    %30 = vector.shape_cast %27 : vector<1x16xf32> to vector<1x1x1x16xf32>
    tpu.vector_store %arg5[%c0_24, %c0_25, %c0_26, %c0_27], %30 {strides = array<i32>} : memref<1x1x4x16xf32, #tpu.memory_space<vmem>>, vector<1x1x1x16xf32>,
    %31 = arith.mulf %22, %22 : vector<16x16xf32>
    %cst_28 = arith.constant dense<0.000000e+00> : vector<16xf32>
    %32 = vector.multi_reduction <add>, %31, %cst_28 [0] : vector<16x16xf32> to vector<16xf32>
    %33 = vector.shape_cast %32 : vector<16xf32> to vector<1x16xf32>
    %c0_29 = arith.constant 0 : index
    %c0_30 = arith.constant 0 : index
    %c2_31 = arith.constant 2 : index
    %c0_32 = arith.constant 0 : index
    %34 = vector.load %arg5[%c0_29, %c0_30, %c2_31, %c0_32] : memref<1x1x4x16xf32, #tpu.memory_space<vmem>>, vector<1x1x1x16xf32>
    %35 = vector.shape_cast %34 : vector<1x1x1x16xf32> to vector<1x16xf32>
    %36 = vector.shape_cast %33 : vector<1x16xf32> to vector<1x1x1x16xf32>
    tpu.vector_store %arg5[%c0_29, %c0_30, %c2_31, %c0_32], %36 {strides = array<i32>} : memref<1x1x4x16xf32, #tpu.memory_space<vmem>>, vector<1x1x1x16xf32>,
    %c1_33 = arith.constant 1 : index
    %c0_34 = arith.constant 0 : index
    %37 = memref.load %arg3[%c1_33, %c0_34] : memref<2x4xf32, #tpu.memory_space<smem>>
    %c0_35 = arith.constant 0 : index
    %c0_36 = arith.constant 0 : index
    %c0_37 = arith.constant 0 : index
    %c0_38 = arith.constant 0 : index
    %38 = vector.load %arg2[%c0_35, %c0_36, %c0_37, %c0_38] : memref<1x4x16x16xf32, #tpu.memory_space<vmem>>, vector<1x1x16x16xf32>
    %39 = vector.shape_cast %38 : vector<1x1x16x16xf32> to vector<16x16xf32>
    %40 = vector.broadcast %37 : f32 to vector<16x16xf32>
    %41 = arith.mulf %40, %39 : vector<16x16xf32>
    %c1_39 = arith.constant 1 : index
    %c1_40 = arith.constant 1 : index
    %42 = memref.load %arg3[%c1_39, %c1_40] : memref<2x4xf32, #tpu.memory_space<smem>>
    %c0_41 = arith.constant 0 : index
    %c1_42 = arith.constant 1 : index
    %c0_43 = arith.constant 0 : index
    %c0_44 = arith.constant 0 : index
    %43 = vector.load %arg2[%c0_41, %c1_42, %c0_43, %c0_44] : memref<1x4x16x16xf32, #tpu.memory_space<vmem>>, vector<1x1x16x16xf32>
    %44 = vector.shape_cast %43 : vector<1x1x16x16xf32> to vector<16x16xf32>
    %45 = vector.broadcast %42 : f32 to vector<16x16xf32>
    %46 = arith.mulf %45, %44 : vector<16x16xf32>
    %47 = arith.addf %41, %46 : vector<16x16xf32>
    %c1_45 = arith.constant 1 : index
    %c2_46 = arith.constant 2 : index
    %48 = memref.load %arg3[%c1_45, %c2_46] : memref<2x4xf32, #tpu.memory_space<smem>>
    %c0_47 = arith.constant 0 : index
    %c2_48 = arith.constant 2 : index
    %c0_49 = arith.constant 0 : index
    %c0_50 = arith.constant 0 : index
    %49 = vector.load %arg2[%c0_47, %c2_48, %c0_49, %c0_50] : memref<1x4x16x16xf32, #tpu.memory_space<vmem>>, vector<1x1x16x16xf32>
    %50 = vector.shape_cast %49 : vector<1x1x16x16xf32> to vector<16x16xf32>
    %51 = vector.broadcast %48 : f32 to vector<16x16xf32>
    %52 = arith.mulf %51, %50 : vector<16x16xf32>
    %53 = arith.addf %47, %52 : vector<16x16xf32>
    %c1_51 = arith.constant 1 : index
    %c3_52 = arith.constant 3 : index
    %54 = memref.load %arg3[%c1_51, %c3_52] : memref<2x4xf32, #tpu.memory_space<smem>>
    %c0_53 = arith.constant 0 : index
    %c3_54 = arith.constant 3 : index
    %c0_55 = arith.constant 0 : index
    %c0_56 = arith.constant 0 : index
    %55 = vector.load %arg2[%c0_53, %c3_54, %c0_55, %c0_56] : memref<1x4x16x16xf32, #tpu.memory_space<vmem>>, vector<1x1x16x16xf32>
    %56 = vector.shape_cast %55 : vector<1x1x16x16xf32> to vector<16x16xf32>
    %57 = vector.broadcast %54 : f32 to vector<16x16xf32>
    %58 = arith.mulf %57, %56 : vector<16x16xf32>
    %59 = arith.addf %53, %58 : vector<16x16xf32>
    %c0_57 = arith.constant 0 : index
    %c1_58 = arith.constant 1 : index
    %c0_59 = arith.constant 0 : index
    %c0_60 = arith.constant 0 : index
    %60 = vector.load %arg4[%c0_57, %c1_58, %c0_59, %c0_60] : memref<1x2x16x16xf32, #tpu.memory_space<vmem>>, vector<1x1x16x16xf32>
    %61 = vector.shape_cast %60 : vector<1x1x16x16xf32> to vector<16x16xf32>
    %62 = vector.shape_cast %59 : vector<16x16xf32> to vector<1x1x16x16xf32>
    tpu.vector_store %arg4[%c0_57, %c1_58, %c0_59, %c0_60], %62 {strides = array<i32>} : memref<1x2x16x16xf32, #tpu.memory_space<vmem>>, vector<1x1x16x16xf32>,
    %cst_61 = arith.constant dense<0.000000e+00> : vector<16xf32>
    %63 = vector.multi_reduction <add>, %59, %cst_61 [0] : vector<16x16xf32> to vector<16xf32>
    %64 = vector.shape_cast %63 : vector<16xf32> to vector<1x16xf32>
    %c0_62 = arith.constant 0 : index
    %c0_63 = arith.constant 0 : index
    %c1_64 = arith.constant 1 : index
    %c0_65 = arith.constant 0 : index
    %65 = vector.load %arg5[%c0_62, %c0_63, %c1_64, %c0_65] : memref<1x1x4x16xf32, #tpu.memory_space<vmem>>, vector<1x1x1x16xf32>
    %66 = vector.shape_cast %65 : vector<1x1x1x16xf32> to vector<1x16xf32>
    %67 = vector.shape_cast %64 : vector<1x16xf32> to vector<1x1x1x16xf32>
    tpu.vector_store %arg5[%c0_62, %c0_63, %c1_64, %c0_65], %67 {strides = array<i32>} : memref<1x1x4x16xf32, #tpu.memory_space<vmem>>, vector<1x1x1x16xf32>,
    %68 = arith.mulf %59, %59 : vector<16x16xf32>
    %cst_66 = arith.constant dense<0.000000e+00> : vector<16xf32>
    %69 = vector.multi_reduction <add>, %68, %cst_66 [0] : vector<16x16xf32> to vector<16xf32>
    %70 = vector.shape_cast %69 : vector<16xf32> to vector<1x16xf32>
    %c0_67 = arith.constant 0 : index
    %c0_68 = arith.constant 0 : index
    %c3_69 = arith.constant 3 : index
    %c0_70 = arith.constant 0 : index
    %71 = vector.load %arg5[%c0_67, %c0_68, %c3_69, %c0_70] : memref<1x1x4x16xf32, #tpu.memory_space<vmem>>, vector<1x1x1x16xf32>
    %72 = vector.shape_cast %71 : vector<1x1x1x16xf32> to vector<1x16xf32>
    %73 = vector.shape_cast %70 : vector<1x16xf32> to vector<1x1x1x16xf32>
    tpu.vector_store %arg5[%c0_67, %c0_68, %c3_69, %c0_70], %73 {strides = array<i32>} : memref<1x1x4x16xf32, #tpu.memory_space<vmem>>, vector<1x1x1x16xf32>,
    return
  }
  func.func @transform_0(%arg0: i32, %arg1: i32) -> (i32, i32, i32, i32) {
    %c0_i32 = arith.constant 0 : i32
    %c0_i32_0 = arith.constant 0 : i32
    %c0_i32_1 = arith.constant 0 : i32
    return %arg0, %c0_i32, %arg1, %c0_i32_0 : i32, i32, i32, i32
  }
  func.func @transform_1(%arg0: i32, %arg1: i32) -> (i32, i32) {
    %c0_i32 = arith.constant 0 : i32
    %c0_i32_0 = arith.constant 0 : i32
    %c0_i32_1 = arith.constant 0 : i32
    return %c0_i32, %c0_i32_0 : i32, i32
  }
  func.func @transform_2(%arg0: i32, %arg1: i32) -> (i32, i32, i32, i32) {
    %c0_i32 = arith.constant 0 : i32
    %c0_i32_0 = arith.constant 0 : i32
    %c0_i32_1 = arith.constant 0 : i32
    return %arg0, %c0_i32, %arg1, %c0_i32_0 : i32, i32, i32, i32
  }
  func.func @transform_3(%arg0: i32, %arg1: i32) -> (i32, i32, i32, i32) {
    %c0_i32 = arith.constant 0 : i32
    %c0_i32_0 = arith.constant 0 : i32
    %c0_i32_1 = arith.constant 0 : i32
    return %arg0, %arg1, %c0_i32, %c0_i32_0 : i32, i32, i32, i32
  }
}

module attributes {stable_mosaic.version = 11 : i64} {
  func.func @_bn2_residual_kernel(%arg0: i32, %arg1: i32, %arg2: memref<1x4x16x16xf32, #tpu.memory_space<vmem>>, %arg3: memref<1x4x16x16xf32, #tpu.memory_space<vmem>>, %arg4: memref<4xf32, #tpu.memory_space<smem>>, %arg5: memref<4xf32, #tpu.memory_space<smem>>, %arg6: memref<1x4x16x16xf32, #tpu.memory_space<vmem>>) attributes {dimension_semantics = [#tpu.dimension_semantics<parallel>, #tpu.dimension_semantics<parallel>], iteration_bounds = array<i64: 2, 1>, scalar_prefetch = 0 : i64, scratch_operands = 0 : i64, tpu.core_type = #tpu.core_type<tc>, window_params = [{transform_indices = @transform_0, window_bounds = array<i64: 1, 4, 16, 16>}, {transform_indices = @transform_1, window_bounds = array<i64: 1, 4, 16, 16>}, {transform_indices = @transform_2, window_bounds = array<i64: 4>}, {transform_indices = @transform_3, window_bounds = array<i64: 4>}, {transform_indices = @transform_4, window_bounds = array<i64: 1, 4, 16, 16>}]} {
    %c0 = arith.constant 0 : index
    %c0_0 = arith.constant 0 : index
    %c0_1 = arith.constant 0 : index
    %c0_2 = arith.constant 0 : index
    %0 = vector.load %arg3[%c0, %c0_0, %c0_1, %c0_2] : memref<1x4x16x16xf32, #tpu.memory_space<vmem>>, vector<1x1x16x16xf32>
    %1 = vector.shape_cast %0 : vector<1x1x16x16xf32> to vector<16x16xf32>
    %c0_3 = arith.constant 0 : index
    %2 = memref.load %arg4[%c0_3] : memref<4xf32, #tpu.memory_space<smem>>
    %3 = vector.broadcast %2 : f32 to vector<16x16xf32>
    %4 = arith.mulf %1, %3 : vector<16x16xf32>
    %c0_4 = arith.constant 0 : index
    %5 = memref.load %arg5[%c0_4] : memref<4xf32, #tpu.memory_space<smem>>
    %6 = vector.broadcast %5 : f32 to vector<16x16xf32>
    %7 = arith.addf %4, %6 : vector<16x16xf32>
    %cst = arith.constant 0.000000e+00 : f32
    %8 = vector.broadcast %cst : f32 to vector<16x16xf32>
    %9 = arith.cmpf ogt, %7, %8 : vector<16x16xf32>
    %cst_5 = arith.constant 1.000000e-01 : f32
    %10 = vector.broadcast %cst_5 : f32 to vector<16x16xf32>
    %11 = arith.mulf %10, %7 : vector<16x16xf32>
    %12 = arith.select %9, %7, %11 : vector<16x16xi1>, vector<16x16xf32>
    %c0_6 = arith.constant 0 : index
    %c0_7 = arith.constant 0 : index
    %c0_8 = arith.constant 0 : index
    %c0_9 = arith.constant 0 : index
    %13 = vector.load %arg2[%c0_6, %c0_7, %c0_8, %c0_9] : memref<1x4x16x16xf32, #tpu.memory_space<vmem>>, vector<1x1x16x16xf32>
    %14 = vector.shape_cast %13 : vector<1x1x16x16xf32> to vector<16x16xf32>
    %15 = arith.addf %14, %12 : vector<16x16xf32>
    %c0_10 = arith.constant 0 : index
    %c0_11 = arith.constant 0 : index
    %c0_12 = arith.constant 0 : index
    %c0_13 = arith.constant 0 : index
    %16 = vector.load %arg6[%c0_10, %c0_11, %c0_12, %c0_13] : memref<1x4x16x16xf32, #tpu.memory_space<vmem>>, vector<1x1x16x16xf32>
    %17 = vector.shape_cast %16 : vector<1x1x16x16xf32> to vector<16x16xf32>
    %18 = vector.shape_cast %15 : vector<16x16xf32> to vector<1x1x16x16xf32>
    tpu.vector_store %arg6[%c0_10, %c0_11, %c0_12, %c0_13], %18 {strides = array<i32>} : memref<1x4x16x16xf32, #tpu.memory_space<vmem>>, vector<1x1x16x16xf32>,
    %c0_14 = arith.constant 0 : index
    %c1 = arith.constant 1 : index
    %c0_15 = arith.constant 0 : index
    %c0_16 = arith.constant 0 : index
    %19 = vector.load %arg3[%c0_14, %c1, %c0_15, %c0_16] : memref<1x4x16x16xf32, #tpu.memory_space<vmem>>, vector<1x1x16x16xf32>
    %20 = vector.shape_cast %19 : vector<1x1x16x16xf32> to vector<16x16xf32>
    %c1_17 = arith.constant 1 : index
    %21 = memref.load %arg4[%c1_17] : memref<4xf32, #tpu.memory_space<smem>>
    %22 = vector.broadcast %21 : f32 to vector<16x16xf32>
    %23 = arith.mulf %20, %22 : vector<16x16xf32>
    %c1_18 = arith.constant 1 : index
    %24 = memref.load %arg5[%c1_18] : memref<4xf32, #tpu.memory_space<smem>>
    %25 = vector.broadcast %24 : f32 to vector<16x16xf32>
    %26 = arith.addf %23, %25 : vector<16x16xf32>
    %cst_19 = arith.constant 0.000000e+00 : f32
    %27 = vector.broadcast %cst_19 : f32 to vector<16x16xf32>
    %28 = arith.cmpf ogt, %26, %27 : vector<16x16xf32>
    %cst_20 = arith.constant 1.000000e-01 : f32
    %29 = vector.broadcast %cst_20 : f32 to vector<16x16xf32>
    %30 = arith.mulf %29, %26 : vector<16x16xf32>
    %31 = arith.select %28, %26, %30 : vector<16x16xi1>, vector<16x16xf32>
    %c0_21 = arith.constant 0 : index
    %c1_22 = arith.constant 1 : index
    %c0_23 = arith.constant 0 : index
    %c0_24 = arith.constant 0 : index
    %32 = vector.load %arg2[%c0_21, %c1_22, %c0_23, %c0_24] : memref<1x4x16x16xf32, #tpu.memory_space<vmem>>, vector<1x1x16x16xf32>
    %33 = vector.shape_cast %32 : vector<1x1x16x16xf32> to vector<16x16xf32>
    %34 = arith.addf %33, %31 : vector<16x16xf32>
    %c0_25 = arith.constant 0 : index
    %c1_26 = arith.constant 1 : index
    %c0_27 = arith.constant 0 : index
    %c0_28 = arith.constant 0 : index
    %35 = vector.load %arg6[%c0_25, %c1_26, %c0_27, %c0_28] : memref<1x4x16x16xf32, #tpu.memory_space<vmem>>, vector<1x1x16x16xf32>
    %36 = vector.shape_cast %35 : vector<1x1x16x16xf32> to vector<16x16xf32>
    %37 = vector.shape_cast %34 : vector<16x16xf32> to vector<1x1x16x16xf32>
    tpu.vector_store %arg6[%c0_25, %c1_26, %c0_27, %c0_28], %37 {strides = array<i32>} : memref<1x4x16x16xf32, #tpu.memory_space<vmem>>, vector<1x1x16x16xf32>,
    %c0_29 = arith.constant 0 : index
    %c2 = arith.constant 2 : index
    %c0_30 = arith.constant 0 : index
    %c0_31 = arith.constant 0 : index
    %38 = vector.load %arg3[%c0_29, %c2, %c0_30, %c0_31] : memref<1x4x16x16xf32, #tpu.memory_space<vmem>>, vector<1x1x16x16xf32>
    %39 = vector.shape_cast %38 : vector<1x1x16x16xf32> to vector<16x16xf32>
    %c2_32 = arith.constant 2 : index
    %40 = memref.load %arg4[%c2_32] : memref<4xf32, #tpu.memory_space<smem>>
    %41 = vector.broadcast %40 : f32 to vector<16x16xf32>
    %42 = arith.mulf %39, %41 : vector<16x16xf32>
    %c2_33 = arith.constant 2 : index
    %43 = memref.load %arg5[%c2_33] : memref<4xf32, #tpu.memory_space<smem>>
    %44 = vector.broadcast %43 : f32 to vector<16x16xf32>
    %45 = arith.addf %42, %44 : vector<16x16xf32>
    %cst_34 = arith.constant 0.000000e+00 : f32
    %46 = vector.broadcast %cst_34 : f32 to vector<16x16xf32>
    %47 = arith.cmpf ogt, %45, %46 : vector<16x16xf32>
    %cst_35 = arith.constant 1.000000e-01 : f32
    %48 = vector.broadcast %cst_35 : f32 to vector<16x16xf32>
    %49 = arith.mulf %48, %45 : vector<16x16xf32>
    %50 = arith.select %47, %45, %49 : vector<16x16xi1>, vector<16x16xf32>
    %c0_36 = arith.constant 0 : index
    %c2_37 = arith.constant 2 : index
    %c0_38 = arith.constant 0 : index
    %c0_39 = arith.constant 0 : index
    %51 = vector.load %arg2[%c0_36, %c2_37, %c0_38, %c0_39] : memref<1x4x16x16xf32, #tpu.memory_space<vmem>>, vector<1x1x16x16xf32>
    %52 = vector.shape_cast %51 : vector<1x1x16x16xf32> to vector<16x16xf32>
    %53 = arith.addf %52, %50 : vector<16x16xf32>
    %c0_40 = arith.constant 0 : index
    %c2_41 = arith.constant 2 : index
    %c0_42 = arith.constant 0 : index
    %c0_43 = arith.constant 0 : index
    %54 = vector.load %arg6[%c0_40, %c2_41, %c0_42, %c0_43] : memref<1x4x16x16xf32, #tpu.memory_space<vmem>>, vector<1x1x16x16xf32>
    %55 = vector.shape_cast %54 : vector<1x1x16x16xf32> to vector<16x16xf32>
    %56 = vector.shape_cast %53 : vector<16x16xf32> to vector<1x1x16x16xf32>
    tpu.vector_store %arg6[%c0_40, %c2_41, %c0_42, %c0_43], %56 {strides = array<i32>} : memref<1x4x16x16xf32, #tpu.memory_space<vmem>>, vector<1x1x16x16xf32>,
    %c0_44 = arith.constant 0 : index
    %c3 = arith.constant 3 : index
    %c0_45 = arith.constant 0 : index
    %c0_46 = arith.constant 0 : index
    %57 = vector.load %arg3[%c0_44, %c3, %c0_45, %c0_46] : memref<1x4x16x16xf32, #tpu.memory_space<vmem>>, vector<1x1x16x16xf32>
    %58 = vector.shape_cast %57 : vector<1x1x16x16xf32> to vector<16x16xf32>
    %c3_47 = arith.constant 3 : index
    %59 = memref.load %arg4[%c3_47] : memref<4xf32, #tpu.memory_space<smem>>
    %60 = vector.broadcast %59 : f32 to vector<16x16xf32>
    %61 = arith.mulf %58, %60 : vector<16x16xf32>
    %c3_48 = arith.constant 3 : index
    %62 = memref.load %arg5[%c3_48] : memref<4xf32, #tpu.memory_space<smem>>
    %63 = vector.broadcast %62 : f32 to vector<16x16xf32>
    %64 = arith.addf %61, %63 : vector<16x16xf32>
    %cst_49 = arith.constant 0.000000e+00 : f32
    %65 = vector.broadcast %cst_49 : f32 to vector<16x16xf32>
    %66 = arith.cmpf ogt, %64, %65 : vector<16x16xf32>
    %cst_50 = arith.constant 1.000000e-01 : f32
    %67 = vector.broadcast %cst_50 : f32 to vector<16x16xf32>
    %68 = arith.mulf %67, %64 : vector<16x16xf32>
    %69 = arith.select %66, %64, %68 : vector<16x16xi1>, vector<16x16xf32>
    %c0_51 = arith.constant 0 : index
    %c3_52 = arith.constant 3 : index
    %c0_53 = arith.constant 0 : index
    %c0_54 = arith.constant 0 : index
    %70 = vector.load %arg2[%c0_51, %c3_52, %c0_53, %c0_54] : memref<1x4x16x16xf32, #tpu.memory_space<vmem>>, vector<1x1x16x16xf32>
    %71 = vector.shape_cast %70 : vector<1x1x16x16xf32> to vector<16x16xf32>
    %72 = arith.addf %71, %69 : vector<16x16xf32>
    %c0_55 = arith.constant 0 : index
    %c3_56 = arith.constant 3 : index
    %c0_57 = arith.constant 0 : index
    %c0_58 = arith.constant 0 : index
    %73 = vector.load %arg6[%c0_55, %c3_56, %c0_57, %c0_58] : memref<1x4x16x16xf32, #tpu.memory_space<vmem>>, vector<1x1x16x16xf32>
    %74 = vector.shape_cast %73 : vector<1x1x16x16xf32> to vector<16x16xf32>
    %75 = vector.shape_cast %72 : vector<16x16xf32> to vector<1x1x16x16xf32>
    tpu.vector_store %arg6[%c0_55, %c3_56, %c0_57, %c0_58], %75 {strides = array<i32>} : memref<1x4x16x16xf32, #tpu.memory_space<vmem>>, vector<1x1x16x16xf32>,
    return
  }
  func.func @transform_0(%arg0: i32, %arg1: i32) -> (i32, i32, i32, i32) {
    %c0_i32 = arith.constant 0 : i32
    %c0_i32_0 = arith.constant 0 : i32
    %c0_i32_1 = arith.constant 0 : i32
    return %arg0, %c0_i32, %arg1, %c0_i32_0 : i32, i32, i32, i32
  }
  func.func @transform_1(%arg0: i32, %arg1: i32) -> (i32, i32, i32, i32) {
    %c0_i32 = arith.constant 0 : i32
    %c0_i32_0 = arith.constant 0 : i32
    %c0_i32_1 = arith.constant 0 : i32
    return %arg0, %c0_i32, %arg1, %c0_i32_0 : i32, i32, i32, i32
  }
  func.func @transform_2(%arg0: i32, %arg1: i32) -> i32 {
    %c0_i32 = arith.constant 0 : i32
    %c0_i32_0 = arith.constant 0 : i32
    return %c0_i32 : i32
  }
  func.func @transform_3(%arg0: i32, %arg1: i32) -> i32 {
    %c0_i32 = arith.constant 0 : i32
    %c0_i32_0 = arith.constant 0 : i32
    return %c0_i32 : i32
  }
  func.func @transform_4(%arg0: i32, %arg1: i32) -> (i32, i32, i32, i32) {
    %c0_i32 = arith.constant 0 : i32
    %c0_i32_0 = arith.constant 0 : i32
    %c0_i32_1 = arith.constant 0 : i32
    return %arg0, %c0_i32, %arg1, %c0_i32_0 : i32, i32, i32, i32
  }
}

module attributes {stable_mosaic.version = 11 : i64} {
  func.func @_conv2_stats_kernel(%arg0: i32, %arg1: memref<1x2x16x16xf32, #tpu.memory_space<vmem>>, %arg2: memref<2xf32, #tpu.memory_space<smem>>, %arg3: memref<2xf32, #tpu.memory_space<smem>>, %arg4: memref<18x4xf32, #tpu.memory_space<smem>>, %arg5: memref<1x4x16x16xf32, #tpu.memory_space<vmem>>, %arg6: memref<1x8x16xf32, #tpu.memory_space<vmem>>) attributes {dimension_semantics = [#tpu.dimension_semantics<parallel>], iteration_bounds = array<i64: 2>, scalar_prefetch = 0 : i64, scratch_operands = 0 : i64, tpu.core_type = #tpu.core_type<tc>, window_params = [{transform_indices = @transform_0, window_bounds = array<i64: 1, 2, 16, 16>}, {transform_indices = @transform_1, window_bounds = array<i64: 2>}, {transform_indices = @transform_2, window_bounds = array<i64: 2>}, {transform_indices = @transform_3, window_bounds = array<i64: 18, 4>}, {transform_indices = @transform_4, window_bounds = array<i64: 1, 4, 16, 16>}, {transform_indices = @transform_5, window_bounds = array<i64: 1, 8, 16>}]} {
    %0 = tpu.iota {dimensions = array<i32: 0>} : vector<16x16xi32>
    %1 = tpu.iota {dimensions = array<i32: 1>} : vector<16x16xi32>
    %c15_i32 = arith.constant 15 : i32
    %2 = vector.broadcast %c15_i32 : i32 to vector<16x16xi32>
    %3 = arith.cmpi slt, %0, %2 : vector<16x16xi32>
    %c0_i32 = arith.constant 0 : i32
    %4 = vector.broadcast %c0_i32 : i32 to vector<16x16xi32>
    %5 = arith.cmpi sgt, %0, %4 : vector<16x16xi32>
    %c15_i32_0 = arith.constant 15 : i32
    %6 = vector.broadcast %c15_i32_0 : i32 to vector<16x16xi32>
    %7 = arith.cmpi slt, %1, %6 : vector<16x16xi32>
    %c0_i32_1 = arith.constant 0 : i32
    %8 = vector.broadcast %c0_i32_1 : i32 to vector<16x16xi32>
    %9 = arith.cmpi sgt, %1, %8 : vector<16x16xi32>
    %c0 = arith.constant 0 : index
    %c0_2 = arith.constant 0 : index
    %c0_3 = arith.constant 0 : index
    %c0_4 = arith.constant 0 : index
    %10 = vector.load %arg1[%c0, %c0_2, %c0_3, %c0_4] : memref<1x2x16x16xf32, #tpu.memory_space<vmem>>, vector<1x1x16x16xf32>
    %11 = vector.shape_cast %10 : vector<1x1x16x16xf32> to vector<16x16xf32>
    %c0_5 = arith.constant 0 : index
    %12 = memref.load %arg2[%c0_5] : memref<2xf32, #tpu.memory_space<smem>>
    %13 = vector.broadcast %12 : f32 to vector<16x16xf32>
    %14 = arith.mulf %11, %13 : vector<16x16xf32>
    %c0_6 = arith.constant 0 : index
    %15 = memref.load %arg3[%c0_6] : memref<2xf32, #tpu.memory_space<smem>>
    %16 = vector.broadcast %15 : f32 to vector<16x16xf32>
    %17 = arith.addf %14, %16 : vector<16x16xf32>
    %cst = arith.constant 0.000000e+00 : f32
    %18 = vector.broadcast %cst : f32 to vector<16x16xf32>
    %19 = arith.cmpf ogt, %17, %18 : vector<16x16xf32>
    %cst_7 = arith.constant 1.000000e-01 : f32
    %20 = vector.broadcast %cst_7 : f32 to vector<16x16xf32>
    %21 = arith.mulf %20, %17 : vector<16x16xf32>
    %22 = arith.select %19, %17, %21 : vector<16x16xi1>, vector<16x16xf32>
    %cst_8 = arith.constant 0.000000e+00 : f32
    %23 = vector.broadcast %cst_8 : f32 to vector<16x16xf32>
    %24 = arith.select %7, %22, %23 : vector<16x16xi1>, vector<16x16xf32>
    %c1_i32 = arith.constant 1 : i32
    %25 = tpu.dynamic_rotate %24 by %c1_i32 dim 1 : vector<16x16xf32>, i32 -> vector<16x16xf32>
    %cst_9 = arith.constant 0.000000e+00 : f32
    %26 = vector.broadcast %cst_9 : f32 to vector<16x16xf32>
    %27 = arith.select %3, %25, %26 : vector<16x16xi1>, vector<16x16xf32>
    %c1_i32_10 = arith.constant 1 : i32
    %28 = tpu.dynamic_rotate %27 by %c1_i32_10 dim 0 : vector<16x16xf32>, i32 -> vector<16x16xf32>
    %c0_11 = arith.constant 0 : index
    %c0_12 = arith.constant 0 : index
    %29 = memref.load %arg4[%c0_11, %c0_12] : memref<18x4xf32, #tpu.memory_space<smem>>
    %30 = vector.broadcast %29 : f32 to vector<16x16xf32>
    %31 = arith.mulf %30, %28 : vector<16x16xf32>
    %c0_13 = arith.constant 0 : index
    %c1 = arith.constant 1 : index
    %32 = memref.load %arg4[%c0_13, %c1] : memref<18x4xf32, #tpu.memory_space<smem>>
    %33 = vector.broadcast %32 : f32 to vector<16x16xf32>
    %34 = arith.mulf %33, %28 : vector<16x16xf32>
    %c0_14 = arith.constant 0 : index
    %c2 = arith.constant 2 : index
    %35 = memref.load %arg4[%c0_14, %c2] : memref<18x4xf32, #tpu.memory_space<smem>>
    %36 = vector.broadcast %35 : f32 to vector<16x16xf32>
    %37 = arith.mulf %36, %28 : vector<16x16xf32>
    %c0_15 = arith.constant 0 : index
    %c3 = arith.constant 3 : index
    %38 = memref.load %arg4[%c0_15, %c3] : memref<18x4xf32, #tpu.memory_space<smem>>
    %39 = vector.broadcast %38 : f32 to vector<16x16xf32>
    %40 = arith.mulf %39, %28 : vector<16x16xf32>
    %c6 = arith.constant 6 : index
    %c0_16 = arith.constant 0 : index
    %41 = memref.load %arg4[%c6, %c0_16] : memref<18x4xf32, #tpu.memory_space<smem>>
    %42 = vector.broadcast %41 : f32 to vector<16x16xf32>
    %43 = arith.mulf %42, %25 : vector<16x16xf32>
    %44 = arith.addf %31, %43 : vector<16x16xf32>
    %c6_17 = arith.constant 6 : index
    %c1_18 = arith.constant 1 : index
    %45 = memref.load %arg4[%c6_17, %c1_18] : memref<18x4xf32, #tpu.memory_space<smem>>
    %46 = vector.broadcast %45 : f32 to vector<16x16xf32>
    %47 = arith.mulf %46, %25 : vector<16x16xf32>
    %48 = arith.addf %34, %47 : vector<16x16xf32>
    %c6_19 = arith.constant 6 : index
    %c2_20 = arith.constant 2 : index
    %49 = memref.load %arg4[%c6_19, %c2_20] : memref<18x4xf32, #tpu.memory_space<smem>>
    %50 = vector.broadcast %49 : f32 to vector<16x16xf32>
    %51 = arith.mulf %50, %25 : vector<16x16xf32>
    %52 = arith.addf %37, %51 : vector<16x16xf32>
    %c6_21 = arith.constant 6 : index
    %c3_22 = arith.constant 3 : index
    %53 = memref.load %arg4[%c6_21, %c3_22] : memref<18x4xf32, #tpu.memory_space<smem>>
    %54 = vector.broadcast %53 : f32 to vector<16x16xf32>
    %55 = arith.mulf %54, %25 : vector<16x16xf32>
    %56 = arith.addf %40, %55 : vector<16x16xf32>
    %cst_23 = arith.constant 0.000000e+00 : f32
    %57 = vector.broadcast %cst_23 : f32 to vector<16x16xf32>
    %58 = arith.select %5, %25, %57 : vector<16x16xi1>, vector<16x16xf32>
    %c15_i32_24 = arith.constant 15 : i32
    %59 = tpu.dynamic_rotate %58 by %c15_i32_24 dim 0 : vector<16x16xf32>, i32 -> vector<16x16xf32>
    %c12 = arith.constant 12 : index
    %c0_25 = arith.constant 0 : index
    %60 = memref.load %arg4[%c12, %c0_25] : memref<18x4xf32, #tpu.memory_space<smem>>
    %61 = vector.broadcast %60 : f32 to vector<16x16xf32>
    %62 = arith.mulf %61, %59 : vector<16x16xf32>
    %63 = arith.addf %44, %62 : vector<16x16xf32>
    %c12_26 = arith.constant 12 : index
    %c1_27 = arith.constant 1 : index
    %64 = memref.load %arg4[%c12_26, %c1_27] : memref<18x4xf32, #tpu.memory_space<smem>>
    %65 = vector.broadcast %64 : f32 to vector<16x16xf32>
    %66 = arith.mulf %65, %59 : vector<16x16xf32>
    %67 = arith.addf %48, %66 : vector<16x16xf32>
    %c12_28 = arith.constant 12 : index
    %c2_29 = arith.constant 2 : index
    %68 = memref.load %arg4[%c12_28, %c2_29] : memref<18x4xf32, #tpu.memory_space<smem>>
    %69 = vector.broadcast %68 : f32 to vector<16x16xf32>
    %70 = arith.mulf %69, %59 : vector<16x16xf32>
    %71 = arith.addf %52, %70 : vector<16x16xf32>
    %c12_30 = arith.constant 12 : index
    %c3_31 = arith.constant 3 : index
    %72 = memref.load %arg4[%c12_30, %c3_31] : memref<18x4xf32, #tpu.memory_space<smem>>
    %73 = vector.broadcast %72 : f32 to vector<16x16xf32>
    %74 = arith.mulf %73, %59 : vector<16x16xf32>
    %75 = arith.addf %56, %74 : vector<16x16xf32>
    %cst_32 = arith.constant 0.000000e+00 : f32
    %76 = vector.broadcast %cst_32 : f32 to vector<16x16xf32>
    %77 = arith.select %3, %22, %76 : vector<16x16xi1>, vector<16x16xf32>
    %c1_i32_33 = arith.constant 1 : i32
    %78 = tpu.dynamic_rotate %77 by %c1_i32_33 dim 0 : vector<16x16xf32>, i32 -> vector<16x16xf32>
    %c2_34 = arith.constant 2 : index
    %c0_35 = arith.constant 0 : index
    %79 = memref.load %arg4[%c2_34, %c0_35] : memref<18x4xf32, #tpu.memory_space<smem>>
    %80 = vector.broadcast %79 : f32 to vector<16x16xf32>
    %81 = arith.mulf %80, %78 : vector<16x16xf32>
    %82 = arith.addf %63, %81 : vector<16x16xf32>
    %c2_36 = arith.constant 2 : index
    %c1_37 = arith.constant 1 : index
    %83 = memref.load %arg4[%c2_36, %c1_37] : memref<18x4xf32, #tpu.memory_space<smem>>
    %84 = vector.broadcast %83 : f32 to vector<16x16xf32>
    %85 = arith.mulf %84, %78 : vector<16x16xf32>
    %86 = arith.addf %67, %85 : vector<16x16xf32>
    %c2_38 = arith.constant 2 : index
    %c2_39 = arith.constant 2 : index
    %87 = memref.load %arg4[%c2_38, %c2_39] : memref<18x4xf32, #tpu.memory_space<smem>>
    %88 = vector.broadcast %87 : f32 to vector<16x16xf32>
    %89 = arith.mulf %88, %78 : vector<16x16xf32>
    %90 = arith.addf %71, %89 : vector<16x16xf32>
    %c2_40 = arith.constant 2 : index
    %c3_41 = arith.constant 3 : index
    %91 = memref.load %arg4[%c2_40, %c3_41] : memref<18x4xf32, #tpu.memory_space<smem>>
    %92 = vector.broadcast %91 : f32 to vector<16x16xf32>
    %93 = arith.mulf %92, %78 : vector<16x16xf32>
    %94 = arith.addf %75, %93 : vector<16x16xf32>
    %c8 = arith.constant 8 : index
    %c0_42 = arith.constant 0 : index
    %95 = memref.load %arg4[%c8, %c0_42] : memref<18x4xf32, #tpu.memory_space<smem>>
    %96 = vector.broadcast %95 : f32 to vector<16x16xf32>
    %97 = arith.mulf %96, %22 : vector<16x16xf32>
    %98 = arith.addf %82, %97 : vector<16x16xf32>
    %c8_43 = arith.constant 8 : index
    %c1_44 = arith.constant 1 : index
    %99 = memref.load %arg4[%c8_43, %c1_44] : memref<18x4xf32, #tpu.memory_space<smem>>
    %100 = vector.broadcast %99 : f32 to vector<16x16xf32>
    %101 = arith.mulf %100, %22 : vector<16x16xf32>
    %102 = arith.addf %86, %101 : vector<16x16xf32>
    %c8_45 = arith.constant 8 : index
    %c2_46 = arith.constant 2 : index
    %103 = memref.load %arg4[%c8_45, %c2_46] : memref<18x4xf32, #tpu.memory_space<smem>>
    %104 = vector.broadcast %103 : f32 to vector<16x16xf32>
    %105 = arith.mulf %104, %22 : vector<16x16xf32>
    %106 = arith.addf %90, %105 : vector<16x16xf32>
    %c8_47 = arith.constant 8 : index
    %c3_48 = arith.constant 3 : index
    %107 = memref.load %arg4[%c8_47, %c3_48] : memref<18x4xf32, #tpu.memory_space<smem>>
    %108 = vector.broadcast %107 : f32 to vector<16x16xf32>
    %109 = arith.mulf %108, %22 : vector<16x16xf32>
    %110 = arith.addf %94, %109 : vector<16x16xf32>
    %cst_49 = arith.constant 0.000000e+00 : f32
    %111 = vector.broadcast %cst_49 : f32 to vector<16x16xf32>
    %112 = arith.select %5, %22, %111 : vector<16x16xi1>, vector<16x16xf32>
    %c15_i32_50 = arith.constant 15 : i32
    %113 = tpu.dynamic_rotate %112 by %c15_i32_50 dim 0 : vector<16x16xf32>, i32 -> vector<16x16xf32>
    %c14 = arith.constant 14 : index
    %c0_51 = arith.constant 0 : index
    %114 = memref.load %arg4[%c14, %c0_51] : memref<18x4xf32, #tpu.memory_space<smem>>
    %115 = vector.broadcast %114 : f32 to vector<16x16xf32>
    %116 = arith.mulf %115, %113 : vector<16x16xf32>
    %117 = arith.addf %98, %116 : vector<16x16xf32>
    %c14_52 = arith.constant 14 : index
    %c1_53 = arith.constant 1 : index
    %118 = memref.load %arg4[%c14_52, %c1_53] : memref<18x4xf32, #tpu.memory_space<smem>>
    %119 = vector.broadcast %118 : f32 to vector<16x16xf32>
    %120 = arith.mulf %119, %113 : vector<16x16xf32>
    %121 = arith.addf %102, %120 : vector<16x16xf32>
    %c14_54 = arith.constant 14 : index
    %c2_55 = arith.constant 2 : index
    %122 = memref.load %arg4[%c14_54, %c2_55] : memref<18x4xf32, #tpu.memory_space<smem>>
    %123 = vector.broadcast %122 : f32 to vector<16x16xf32>
    %124 = arith.mulf %123, %113 : vector<16x16xf32>
    %125 = arith.addf %106, %124 : vector<16x16xf32>
    %c14_56 = arith.constant 14 : index
    %c3_57 = arith.constant 3 : index
    %126 = memref.load %arg4[%c14_56, %c3_57] : memref<18x4xf32, #tpu.memory_space<smem>>
    %127 = vector.broadcast %126 : f32 to vector<16x16xf32>
    %128 = arith.mulf %127, %113 : vector<16x16xf32>
    %129 = arith.addf %110, %128 : vector<16x16xf32>
    %cst_58 = arith.constant 0.000000e+00 : f32
    %130 = vector.broadcast %cst_58 : f32 to vector<16x16xf32>
    %131 = arith.select %9, %22, %130 : vector<16x16xi1>, vector<16x16xf32>
    %c15_i32_59 = arith.constant 15 : i32
    %132 = tpu.dynamic_rotate %131 by %c15_i32_59 dim 1 : vector<16x16xf32>, i32 -> vector<16x16xf32>
    %cst_60 = arith.constant 0.000000e+00 : f32
    %133 = vector.broadcast %cst_60 : f32 to vector<16x16xf32>
    %134 = arith.select %3, %132, %133 : vector<16x16xi1>, vector<16x16xf32>
    %c1_i32_61 = arith.constant 1 : i32
    %135 = tpu.dynamic_rotate %134 by %c1_i32_61 dim 0 : vector<16x16xf32>, i32 -> vector<16x16xf32>
    %c4 = arith.constant 4 : index
    %c0_62 = arith.constant 0 : index
    %136 = memref.load %arg4[%c4, %c0_62] : memref<18x4xf32, #tpu.memory_space<smem>>
    %137 = vector.broadcast %136 : f32 to vector<16x16xf32>
    %138 = arith.mulf %137, %135 : vector<16x16xf32>
    %139 = arith.addf %117, %138 : vector<16x16xf32>
    %c4_63 = arith.constant 4 : index
    %c1_64 = arith.constant 1 : index
    %140 = memref.load %arg4[%c4_63, %c1_64] : memref<18x4xf32, #tpu.memory_space<smem>>
    %141 = vector.broadcast %140 : f32 to vector<16x16xf32>
    %142 = arith.mulf %141, %135 : vector<16x16xf32>
    %143 = arith.addf %121, %142 : vector<16x16xf32>
    %c4_65 = arith.constant 4 : index
    %c2_66 = arith.constant 2 : index
    %144 = memref.load %arg4[%c4_65, %c2_66] : memref<18x4xf32, #tpu.memory_space<smem>>
    %145 = vector.broadcast %144 : f32 to vector<16x16xf32>
    %146 = arith.mulf %145, %135 : vector<16x16xf32>
    %147 = arith.addf %125, %146 : vector<16x16xf32>
    %c4_67 = arith.constant 4 : index
    %c3_68 = arith.constant 3 : index
    %148 = memref.load %arg4[%c4_67, %c3_68] : memref<18x4xf32, #tpu.memory_space<smem>>
    %149 = vector.broadcast %148 : f32 to vector<16x16xf32>
    %150 = arith.mulf %149, %135 : vector<16x16xf32>
    %151 = arith.addf %129, %150 : vector<16x16xf32>
    %c10 = arith.constant 10 : index
    %c0_69 = arith.constant 0 : index
    %152 = memref.load %arg4[%c10, %c0_69] : memref<18x4xf32, #tpu.memory_space<smem>>
    %153 = vector.broadcast %152 : f32 to vector<16x16xf32>
    %154 = arith.mulf %153, %132 : vector<16x16xf32>
    %155 = arith.addf %139, %154 : vector<16x16xf32>
    %c10_70 = arith.constant 10 : index
    %c1_71 = arith.constant 1 : index
    %156 = memref.load %arg4[%c10_70, %c1_71] : memref<18x4xf32, #tpu.memory_space<smem>>
    %157 = vector.broadcast %156 : f32 to vector<16x16xf32>
    %158 = arith.mulf %157, %132 : vector<16x16xf32>
    %159 = arith.addf %143, %158 : vector<16x16xf32>
    %c10_72 = arith.constant 10 : index
    %c2_73 = arith.constant 2 : index
    %160 = memref.load %arg4[%c10_72, %c2_73] : memref<18x4xf32, #tpu.memory_space<smem>>
    %161 = vector.broadcast %160 : f32 to vector<16x16xf32>
    %162 = arith.mulf %161, %132 : vector<16x16xf32>
    %163 = arith.addf %147, %162 : vector<16x16xf32>
    %c10_74 = arith.constant 10 : index
    %c3_75 = arith.constant 3 : index
    %164 = memref.load %arg4[%c10_74, %c3_75] : memref<18x4xf32, #tpu.memory_space<smem>>
    %165 = vector.broadcast %164 : f32 to vector<16x16xf32>
    %166 = arith.mulf %165, %132 : vector<16x16xf32>
    %167 = arith.addf %151, %166 : vector<16x16xf32>
    %cst_76 = arith.constant 0.000000e+00 : f32
    %168 = vector.broadcast %cst_76 : f32 to vector<16x16xf32>
    %169 = arith.select %5, %132, %168 : vector<16x16xi1>, vector<16x16xf32>
    %c15_i32_77 = arith.constant 15 : i32
    %170 = tpu.dynamic_rotate %169 by %c15_i32_77 dim 0 : vector<16x16xf32>, i32 -> vector<16x16xf32>
    %c16 = arith.constant 16 : index
    %c0_78 = arith.constant 0 : index
    %171 = memref.load %arg4[%c16, %c0_78] : memref<18x4xf32, #tpu.memory_space<smem>>
    %172 = vector.broadcast %171 : f32 to vector<16x16xf32>
    %173 = arith.mulf %172, %170 : vector<16x16xf32>
    %174 = arith.addf %155, %173 : vector<16x16xf32>
    %c16_79 = arith.constant 16 : index
    %c1_80 = arith.constant 1 : index
    %175 = memref.load %arg4[%c16_79, %c1_80] : memref<18x4xf32, #tpu.memory_space<smem>>
    %176 = vector.broadcast %175 : f32 to vector<16x16xf32>
    %177 = arith.mulf %176, %170 : vector<16x16xf32>
    %178 = arith.addf %159, %177 : vector<16x16xf32>
    %c16_81 = arith.constant 16 : index
    %c2_82 = arith.constant 2 : index
    %179 = memref.load %arg4[%c16_81, %c2_82] : memref<18x4xf32, #tpu.memory_space<smem>>
    %180 = vector.broadcast %179 : f32 to vector<16x16xf32>
    %181 = arith.mulf %180, %170 : vector<16x16xf32>
    %182 = arith.addf %163, %181 : vector<16x16xf32>
    %c16_83 = arith.constant 16 : index
    %c3_84 = arith.constant 3 : index
    %183 = memref.load %arg4[%c16_83, %c3_84] : memref<18x4xf32, #tpu.memory_space<smem>>
    %184 = vector.broadcast %183 : f32 to vector<16x16xf32>
    %185 = arith.mulf %184, %170 : vector<16x16xf32>
    %186 = arith.addf %167, %185 : vector<16x16xf32>
    %c0_85 = arith.constant 0 : index
    %c1_86 = arith.constant 1 : index
    %c0_87 = arith.constant 0 : index
    %c0_88 = arith.constant 0 : index
    %187 = vector.load %arg1[%c0_85, %c1_86, %c0_87, %c0_88] : memref<1x2x16x16xf32, #tpu.memory_space<vmem>>, vector<1x1x16x16xf32>
    %188 = vector.shape_cast %187 : vector<1x1x16x16xf32> to vector<16x16xf32>
    %c1_89 = arith.constant 1 : index
    %189 = memref.load %arg2[%c1_89] : memref<2xf32, #tpu.memory_space<smem>>
    %190 = vector.broadcast %189 : f32 to vector<16x16xf32>
    %191 = arith.mulf %188, %190 : vector<16x16xf32>
    %c1_90 = arith.constant 1 : index
    %192 = memref.load %arg3[%c1_90] : memref<2xf32, #tpu.memory_space<smem>>
    %193 = vector.broadcast %192 : f32 to vector<16x16xf32>
    %194 = arith.addf %191, %193 : vector<16x16xf32>
    %cst_91 = arith.constant 0.000000e+00 : f32
    %195 = vector.broadcast %cst_91 : f32 to vector<16x16xf32>
    %196 = arith.cmpf ogt, %194, %195 : vector<16x16xf32>
    %cst_92 = arith.constant 1.000000e-01 : f32
    %197 = vector.broadcast %cst_92 : f32 to vector<16x16xf32>
    %198 = arith.mulf %197, %194 : vector<16x16xf32>
    %199 = arith.select %196, %194, %198 : vector<16x16xi1>, vector<16x16xf32>
    %cst_93 = arith.constant 0.000000e+00 : f32
    %200 = vector.broadcast %cst_93 : f32 to vector<16x16xf32>
    %201 = arith.select %7, %199, %200 : vector<16x16xi1>, vector<16x16xf32>
    %c1_i32_94 = arith.constant 1 : i32
    %202 = tpu.dynamic_rotate %201 by %c1_i32_94 dim 1 : vector<16x16xf32>, i32 -> vector<16x16xf32>
    %cst_95 = arith.constant 0.000000e+00 : f32
    %203 = vector.broadcast %cst_95 : f32 to vector<16x16xf32>
    %204 = arith.select %3, %202, %203 : vector<16x16xi1>, vector<16x16xf32>
    %c1_i32_96 = arith.constant 1 : i32
    %205 = tpu.dynamic_rotate %204 by %c1_i32_96 dim 0 : vector<16x16xf32>, i32 -> vector<16x16xf32>
    %c1_97 = arith.constant 1 : index
    %c0_98 = arith.constant 0 : index
    %206 = memref.load %arg4[%c1_97, %c0_98] : memref<18x4xf32, #tpu.memory_space<smem>>
    %207 = vector.broadcast %206 : f32 to vector<16x16xf32>
    %208 = arith.mulf %207, %205 : vector<16x16xf32>
    %209 = arith.addf %174, %208 : vector<16x16xf32>
    %c1_99 = arith.constant 1 : index
    %c1_100 = arith.constant 1 : index
    %210 = memref.load %arg4[%c1_99, %c1_100] : memref<18x4xf32, #tpu.memory_space<smem>>
    %211 = vector.broadcast %210 : f32 to vector<16x16xf32>
    %212 = arith.mulf %211, %205 : vector<16x16xf32>
    %213 = arith.addf %178, %212 : vector<16x16xf32>
    %c1_101 = arith.constant 1 : index
    %c2_102 = arith.constant 2 : index
    %214 = memref.load %arg4[%c1_101, %c2_102] : memref<18x4xf32, #tpu.memory_space<smem>>
    %215 = vector.broadcast %214 : f32 to vector<16x16xf32>
    %216 = arith.mulf %215, %205 : vector<16x16xf32>
    %217 = arith.addf %182, %216 : vector<16x16xf32>
    %c1_103 = arith.constant 1 : index
    %c3_104 = arith.constant 3 : index
    %218 = memref.load %arg4[%c1_103, %c3_104] : memref<18x4xf32, #tpu.memory_space<smem>>
    %219 = vector.broadcast %218 : f32 to vector<16x16xf32>
    %220 = arith.mulf %219, %205 : vector<16x16xf32>
    %221 = arith.addf %186, %220 : vector<16x16xf32>
    %c7 = arith.constant 7 : index
    %c0_105 = arith.constant 0 : index
    %222 = memref.load %arg4[%c7, %c0_105] : memref<18x4xf32, #tpu.memory_space<smem>>
    %223 = vector.broadcast %222 : f32 to vector<16x16xf32>
    %224 = arith.mulf %223, %202 : vector<16x16xf32>
    %225 = arith.addf %209, %224 : vector<16x16xf32>
    %c7_106 = arith.constant 7 : index
    %c1_107 = arith.constant 1 : index
    %226 = memref.load %arg4[%c7_106, %c1_107] : memref<18x4xf32, #tpu.memory_space<smem>>
    %227 = vector.broadcast %226 : f32 to vector<16x16xf32>
    %228 = arith.mulf %227, %202 : vector<16x16xf32>
    %229 = arith.addf %213, %228 : vector<16x16xf32>
    %c7_108 = arith.constant 7 : index
    %c2_109 = arith.constant 2 : index
    %230 = memref.load %arg4[%c7_108, %c2_109] : memref<18x4xf32, #tpu.memory_space<smem>>
    %231 = vector.broadcast %230 : f32 to vector<16x16xf32>
    %232 = arith.mulf %231, %202 : vector<16x16xf32>
    %233 = arith.addf %217, %232 : vector<16x16xf32>
    %c7_110 = arith.constant 7 : index
    %c3_111 = arith.constant 3 : index
    %234 = memref.load %arg4[%c7_110, %c3_111] : memref<18x4xf32, #tpu.memory_space<smem>>
    %235 = vector.broadcast %234 : f32 to vector<16x16xf32>
    %236 = arith.mulf %235, %202 : vector<16x16xf32>
    %237 = arith.addf %221, %236 : vector<16x16xf32>
    %cst_112 = arith.constant 0.000000e+00 : f32
    %238 = vector.broadcast %cst_112 : f32 to vector<16x16xf32>
    %239 = arith.select %5, %202, %238 : vector<16x16xi1>, vector<16x16xf32>
    %c15_i32_113 = arith.constant 15 : i32
    %240 = tpu.dynamic_rotate %239 by %c15_i32_113 dim 0 : vector<16x16xf32>, i32 -> vector<16x16xf32>
    %c13 = arith.constant 13 : index
    %c0_114 = arith.constant 0 : index
    %241 = memref.load %arg4[%c13, %c0_114] : memref<18x4xf32, #tpu.memory_space<smem>>
    %242 = vector.broadcast %241 : f32 to vector<16x16xf32>
    %243 = arith.mulf %242, %240 : vector<16x16xf32>
    %244 = arith.addf %225, %243 : vector<16x16xf32>
    %c13_115 = arith.constant 13 : index
    %c1_116 = arith.constant 1 : index
    %245 = memref.load %arg4[%c13_115, %c1_116] : memref<18x4xf32, #tpu.memory_space<smem>>
    %246 = vector.broadcast %245 : f32 to vector<16x16xf32>
    %247 = arith.mulf %246, %240 : vector<16x16xf32>
    %248 = arith.addf %229, %247 : vector<16x16xf32>
    %c13_117 = arith.constant 13 : index
    %c2_118 = arith.constant 2 : index
    %249 = memref.load %arg4[%c13_117, %c2_118] : memref<18x4xf32, #tpu.memory_space<smem>>
    %250 = vector.broadcast %249 : f32 to vector<16x16xf32>
    %251 = arith.mulf %250, %240 : vector<16x16xf32>
    %252 = arith.addf %233, %251 : vector<16x16xf32>
    %c13_119 = arith.constant 13 : index
    %c3_120 = arith.constant 3 : index
    %253 = memref.load %arg4[%c13_119, %c3_120] : memref<18x4xf32, #tpu.memory_space<smem>>
    %254 = vector.broadcast %253 : f32 to vector<16x16xf32>
    %255 = arith.mulf %254, %240 : vector<16x16xf32>
    %256 = arith.addf %237, %255 : vector<16x16xf32>
    %cst_121 = arith.constant 0.000000e+00 : f32
    %257 = vector.broadcast %cst_121 : f32 to vector<16x16xf32>
    %258 = arith.select %3, %199, %257 : vector<16x16xi1>, vector<16x16xf32>
    %c1_i32_122 = arith.constant 1 : i32
    %259 = tpu.dynamic_rotate %258 by %c1_i32_122 dim 0 : vector<16x16xf32>, i32 -> vector<16x16xf32>
    %c3_123 = arith.constant 3 : index
    %c0_124 = arith.constant 0 : index
    %260 = memref.load %arg4[%c3_123, %c0_124] : memref<18x4xf32, #tpu.memory_space<smem>>
    %261 = vector.broadcast %260 : f32 to vector<16x16xf32>
    %262 = arith.mulf %261, %259 : vector<16x16xf32>
    %263 = arith.addf %244, %262 : vector<16x16xf32>
    %c3_125 = arith.constant 3 : index
    %c1_126 = arith.constant 1 : index
    %264 = memref.load %arg4[%c3_125, %c1_126] : memref<18x4xf32, #tpu.memory_space<smem>>
    %265 = vector.broadcast %264 : f32 to vector<16x16xf32>
    %266 = arith.mulf %265, %259 : vector<16x16xf32>
    %267 = arith.addf %248, %266 : vector<16x16xf32>
    %c3_127 = arith.constant 3 : index
    %c2_128 = arith.constant 2 : index
    %268 = memref.load %arg4[%c3_127, %c2_128] : memref<18x4xf32, #tpu.memory_space<smem>>
    %269 = vector.broadcast %268 : f32 to vector<16x16xf32>
    %270 = arith.mulf %269, %259 : vector<16x16xf32>
    %271 = arith.addf %252, %270 : vector<16x16xf32>
    %c3_129 = arith.constant 3 : index
    %c3_130 = arith.constant 3 : index
    %272 = memref.load %arg4[%c3_129, %c3_130] : memref<18x4xf32, #tpu.memory_space<smem>>
    %273 = vector.broadcast %272 : f32 to vector<16x16xf32>
    %274 = arith.mulf %273, %259 : vector<16x16xf32>
    %275 = arith.addf %256, %274 : vector<16x16xf32>
    %c9 = arith.constant 9 : index
    %c0_131 = arith.constant 0 : index
    %276 = memref.load %arg4[%c9, %c0_131] : memref<18x4xf32, #tpu.memory_space<smem>>
    %277 = vector.broadcast %276 : f32 to vector<16x16xf32>
    %278 = arith.mulf %277, %199 : vector<16x16xf32>
    %279 = arith.addf %263, %278 : vector<16x16xf32>
    %c9_132 = arith.constant 9 : index
    %c1_133 = arith.constant 1 : index
    %280 = memref.load %arg4[%c9_132, %c1_133] : memref<18x4xf32, #tpu.memory_space<smem>>
    %281 = vector.broadcast %280 : f32 to vector<16x16xf32>
    %282 = arith.mulf %281, %199 : vector<16x16xf32>
    %283 = arith.addf %267, %282 : vector<16x16xf32>
    %c9_134 = arith.constant 9 : index
    %c2_135 = arith.constant 2 : index
    %284 = memref.load %arg4[%c9_134, %c2_135] : memref<18x4xf32, #tpu.memory_space<smem>>
    %285 = vector.broadcast %284 : f32 to vector<16x16xf32>
    %286 = arith.mulf %285, %199 : vector<16x16xf32>
    %287 = arith.addf %271, %286 : vector<16x16xf32>
    %c9_136 = arith.constant 9 : index
    %c3_137 = arith.constant 3 : index
    %288 = memref.load %arg4[%c9_136, %c3_137] : memref<18x4xf32, #tpu.memory_space<smem>>
    %289 = vector.broadcast %288 : f32 to vector<16x16xf32>
    %290 = arith.mulf %289, %199 : vector<16x16xf32>
    %291 = arith.addf %275, %290 : vector<16x16xf32>
    %cst_138 = arith.constant 0.000000e+00 : f32
    %292 = vector.broadcast %cst_138 : f32 to vector<16x16xf32>
    %293 = arith.select %5, %199, %292 : vector<16x16xi1>, vector<16x16xf32>
    %c15_i32_139 = arith.constant 15 : i32
    %294 = tpu.dynamic_rotate %293 by %c15_i32_139 dim 0 : vector<16x16xf32>, i32 -> vector<16x16xf32>
    %c15 = arith.constant 15 : index
    %c0_140 = arith.constant 0 : index
    %295 = memref.load %arg4[%c15, %c0_140] : memref<18x4xf32, #tpu.memory_space<smem>>
    %296 = vector.broadcast %295 : f32 to vector<16x16xf32>
    %297 = arith.mulf %296, %294 : vector<16x16xf32>
    %298 = arith.addf %279, %297 : vector<16x16xf32>
    %c15_141 = arith.constant 15 : index
    %c1_142 = arith.constant 1 : index
    %299 = memref.load %arg4[%c15_141, %c1_142] : memref<18x4xf32, #tpu.memory_space<smem>>
    %300 = vector.broadcast %299 : f32 to vector<16x16xf32>
    %301 = arith.mulf %300, %294 : vector<16x16xf32>
    %302 = arith.addf %283, %301 : vector<16x16xf32>
    %c15_143 = arith.constant 15 : index
    %c2_144 = arith.constant 2 : index
    %303 = memref.load %arg4[%c15_143, %c2_144] : memref<18x4xf32, #tpu.memory_space<smem>>
    %304 = vector.broadcast %303 : f32 to vector<16x16xf32>
    %305 = arith.mulf %304, %294 : vector<16x16xf32>
    %306 = arith.addf %287, %305 : vector<16x16xf32>
    %c15_145 = arith.constant 15 : index
    %c3_146 = arith.constant 3 : index
    %307 = memref.load %arg4[%c15_145, %c3_146] : memref<18x4xf32, #tpu.memory_space<smem>>
    %308 = vector.broadcast %307 : f32 to vector<16x16xf32>
    %309 = arith.mulf %308, %294 : vector<16x16xf32>
    %310 = arith.addf %291, %309 : vector<16x16xf32>
    %cst_147 = arith.constant 0.000000e+00 : f32
    %311 = vector.broadcast %cst_147 : f32 to vector<16x16xf32>
    %312 = arith.select %9, %199, %311 : vector<16x16xi1>, vector<16x16xf32>
    %c15_i32_148 = arith.constant 15 : i32
    %313 = tpu.dynamic_rotate %312 by %c15_i32_148 dim 1 : vector<16x16xf32>, i32 -> vector<16x16xf32>
    %cst_149 = arith.constant 0.000000e+00 : f32
    %314 = vector.broadcast %cst_149 : f32 to vector<16x16xf32>
    %315 = arith.select %3, %313, %314 : vector<16x16xi1>, vector<16x16xf32>
    %c1_i32_150 = arith.constant 1 : i32
    %316 = tpu.dynamic_rotate %315 by %c1_i32_150 dim 0 : vector<16x16xf32>, i32 -> vector<16x16xf32>
    %c5 = arith.constant 5 : index
    %c0_151 = arith.constant 0 : index
    %317 = memref.load %arg4[%c5, %c0_151] : memref<18x4xf32, #tpu.memory_space<smem>>
    %318 = vector.broadcast %317 : f32 to vector<16x16xf32>
    %319 = arith.mulf %318, %316 : vector<16x16xf32>
    %320 = arith.addf %298, %319 : vector<16x16xf32>
    %c5_152 = arith.constant 5 : index
    %c1_153 = arith.constant 1 : index
    %321 = memref.load %arg4[%c5_152, %c1_153] : memref<18x4xf32, #tpu.memory_space<smem>>
    %322 = vector.broadcast %321 : f32 to vector<16x16xf32>
    %323 = arith.mulf %322, %316 : vector<16x16xf32>
    %324 = arith.addf %302, %323 : vector<16x16xf32>
    %c5_154 = arith.constant 5 : index
    %c2_155 = arith.constant 2 : index
    %325 = memref.load %arg4[%c5_154, %c2_155] : memref<18x4xf32, #tpu.memory_space<smem>>
    %326 = vector.broadcast %325 : f32 to vector<16x16xf32>
    %327 = arith.mulf %326, %316 : vector<16x16xf32>
    %328 = arith.addf %306, %327 : vector<16x16xf32>
    %c5_156 = arith.constant 5 : index
    %c3_157 = arith.constant 3 : index
    %329 = memref.load %arg4[%c5_156, %c3_157] : memref<18x4xf32, #tpu.memory_space<smem>>
    %330 = vector.broadcast %329 : f32 to vector<16x16xf32>
    %331 = arith.mulf %330, %316 : vector<16x16xf32>
    %332 = arith.addf %310, %331 : vector<16x16xf32>
    %c11 = arith.constant 11 : index
    %c0_158 = arith.constant 0 : index
    %333 = memref.load %arg4[%c11, %c0_158] : memref<18x4xf32, #tpu.memory_space<smem>>
    %334 = vector.broadcast %333 : f32 to vector<16x16xf32>
    %335 = arith.mulf %334, %313 : vector<16x16xf32>
    %336 = arith.addf %320, %335 : vector<16x16xf32>
    %c11_159 = arith.constant 11 : index
    %c1_160 = arith.constant 1 : index
    %337 = memref.load %arg4[%c11_159, %c1_160] : memref<18x4xf32, #tpu.memory_space<smem>>
    %338 = vector.broadcast %337 : f32 to vector<16x16xf32>
    %339 = arith.mulf %338, %313 : vector<16x16xf32>
    %340 = arith.addf %324, %339 : vector<16x16xf32>
    %c11_161 = arith.constant 11 : index
    %c2_162 = arith.constant 2 : index
    %341 = memref.load %arg4[%c11_161, %c2_162] : memref<18x4xf32, #tpu.memory_space<smem>>
    %342 = vector.broadcast %341 : f32 to vector<16x16xf32>
    %343 = arith.mulf %342, %313 : vector<16x16xf32>
    %344 = arith.addf %328, %343 : vector<16x16xf32>
    %c11_163 = arith.constant 11 : index
    %c3_164 = arith.constant 3 : index
    %345 = memref.load %arg4[%c11_163, %c3_164] : memref<18x4xf32, #tpu.memory_space<smem>>
    %346 = vector.broadcast %345 : f32 to vector<16x16xf32>
    %347 = arith.mulf %346, %313 : vector<16x16xf32>
    %348 = arith.addf %332, %347 : vector<16x16xf32>
    %cst_165 = arith.constant 0.000000e+00 : f32
    %349 = vector.broadcast %cst_165 : f32 to vector<16x16xf32>
    %350 = arith.select %5, %313, %349 : vector<16x16xi1>, vector<16x16xf32>
    %c15_i32_166 = arith.constant 15 : i32
    %351 = tpu.dynamic_rotate %350 by %c15_i32_166 dim 0 : vector<16x16xf32>, i32 -> vector<16x16xf32>
    %c17 = arith.constant 17 : index
    %c0_167 = arith.constant 0 : index
    %352 = memref.load %arg4[%c17, %c0_167] : memref<18x4xf32, #tpu.memory_space<smem>>
    %353 = vector.broadcast %352 : f32 to vector<16x16xf32>
    %354 = arith.mulf %353, %351 : vector<16x16xf32>
    %355 = arith.addf %336, %354 : vector<16x16xf32>
    %c17_168 = arith.constant 17 : index
    %c1_169 = arith.constant 1 : index
    %356 = memref.load %arg4[%c17_168, %c1_169] : memref<18x4xf32, #tpu.memory_space<smem>>
    %357 = vector.broadcast %356 : f32 to vector<16x16xf32>
    %358 = arith.mulf %357, %351 : vector<16x16xf32>
    %359 = arith.addf %340, %358 : vector<16x16xf32>
    %c17_170 = arith.constant 17 : index
    %c2_171 = arith.constant 2 : index
    %360 = memref.load %arg4[%c17_170, %c2_171] : memref<18x4xf32, #tpu.memory_space<smem>>
    %361 = vector.broadcast %360 : f32 to vector<16x16xf32>
    %362 = arith.mulf %361, %351 : vector<16x16xf32>
    %363 = arith.addf %344, %362 : vector<16x16xf32>
    %c17_172 = arith.constant 17 : index
    %c3_173 = arith.constant 3 : index
    %364 = memref.load %arg4[%c17_172, %c3_173] : memref<18x4xf32, #tpu.memory_space<smem>>
    %365 = vector.broadcast %364 : f32 to vector<16x16xf32>
    %366 = arith.mulf %365, %351 : vector<16x16xf32>
    %367 = arith.addf %348, %366 : vector<16x16xf32>
    %c0_174 = arith.constant 0 : index
    %c0_175 = arith.constant 0 : index
    %c0_176 = arith.constant 0 : index
    %c0_177 = arith.constant 0 : index
    %368 = vector.load %arg5[%c0_174, %c0_175, %c0_176, %c0_177] : memref<1x4x16x16xf32, #tpu.memory_space<vmem>>, vector<1x1x16x16xf32>
    %369 = vector.shape_cast %368 : vector<1x1x16x16xf32> to vector<16x16xf32>
    %370 = vector.shape_cast %355 : vector<16x16xf32> to vector<1x1x16x16xf32>
    tpu.vector_store %arg5[%c0_174, %c0_175, %c0_176, %c0_177], %370 {strides = array<i32>} : memref<1x4x16x16xf32, #tpu.memory_space<vmem>>, vector<1x1x16x16xf32>,
    %cst_178 = arith.constant dense<0.000000e+00> : vector<16xf32>
    %371 = vector.multi_reduction <add>, %355, %cst_178 [0] : vector<16x16xf32> to vector<16xf32>
    %372 = vector.shape_cast %371 : vector<16xf32> to vector<1x16xf32>
    %c0_179 = arith.constant 0 : index
    %c0_180 = arith.constant 0 : index
    %c0_181 = arith.constant 0 : index
    %373 = vector.load %arg6[%c0_179, %c0_180, %c0_181] : memref<1x8x16xf32, #tpu.memory_space<vmem>>, vector<1x1x16xf32>
    %374 = vector.shape_cast %373 : vector<1x1x16xf32> to vector<1x16xf32>
    %375 = vector.shape_cast %372 : vector<1x16xf32> to vector<1x1x16xf32>
    tpu.vector_store %arg6[%c0_179, %c0_180, %c0_181], %375 {strides = array<i32>} : memref<1x8x16xf32, #tpu.memory_space<vmem>>, vector<1x1x16xf32>,
    %376 = arith.mulf %355, %355 : vector<16x16xf32>
    %cst_182 = arith.constant dense<0.000000e+00> : vector<16xf32>
    %377 = vector.multi_reduction <add>, %376, %cst_182 [0] : vector<16x16xf32> to vector<16xf32>
    %378 = vector.shape_cast %377 : vector<16xf32> to vector<1x16xf32>
    %c0_183 = arith.constant 0 : index
    %c4_184 = arith.constant 4 : index
    %c0_185 = arith.constant 0 : index
    %379 = vector.load %arg6[%c0_183, %c4_184, %c0_185] : memref<1x8x16xf32, #tpu.memory_space<vmem>>, vector<1x1x16xf32>
    %380 = vector.shape_cast %379 : vector<1x1x16xf32> to vector<1x16xf32>
    %381 = vector.shape_cast %378 : vector<1x16xf32> to vector<1x1x16xf32>
    tpu.vector_store %arg6[%c0_183, %c4_184, %c0_185], %381 {strides = array<i32>} : memref<1x8x16xf32, #tpu.memory_space<vmem>>, vector<1x1x16xf32>,
    %c0_186 = arith.constant 0 : index
    %c1_187 = arith.constant 1 : index
    %c0_188 = arith.constant 0 : index
    %c0_189 = arith.constant 0 : index
    %382 = vector.load %arg5[%c0_186, %c1_187, %c0_188, %c0_189] : memref<1x4x16x16xf32, #tpu.memory_space<vmem>>, vector<1x1x16x16xf32>
    %383 = vector.shape_cast %382 : vector<1x1x16x16xf32> to vector<16x16xf32>
    %384 = vector.shape_cast %359 : vector<16x16xf32> to vector<1x1x16x16xf32>
    tpu.vector_store %arg5[%c0_186, %c1_187, %c0_188, %c0_189], %384 {strides = array<i32>} : memref<1x4x16x16xf32, #tpu.memory_space<vmem>>, vector<1x1x16x16xf32>,
    %cst_190 = arith.constant dense<0.000000e+00> : vector<16xf32>
    %385 = vector.multi_reduction <add>, %359, %cst_190 [0] : vector<16x16xf32> to vector<16xf32>
    %386 = vector.shape_cast %385 : vector<16xf32> to vector<1x16xf32>
    %c0_191 = arith.constant 0 : index
    %c1_192 = arith.constant 1 : index
    %c0_193 = arith.constant 0 : index
    %387 = vector.load %arg6[%c0_191, %c1_192, %c0_193] : memref<1x8x16xf32, #tpu.memory_space<vmem>>, vector<1x1x16xf32>
    %388 = vector.shape_cast %387 : vector<1x1x16xf32> to vector<1x16xf32>
    %389 = vector.shape_cast %386 : vector<1x16xf32> to vector<1x1x16xf32>
    tpu.vector_store %arg6[%c0_191, %c1_192, %c0_193], %389 {strides = array<i32>} : memref<1x8x16xf32, #tpu.memory_space<vmem>>, vector<1x1x16xf32>,
    %390 = arith.mulf %359, %359 : vector<16x16xf32>
    %cst_194 = arith.constant dense<0.000000e+00> : vector<16xf32>
    %391 = vector.multi_reduction <add>, %390, %cst_194 [0] : vector<16x16xf32> to vector<16xf32>
    %392 = vector.shape_cast %391 : vector<16xf32> to vector<1x16xf32>
    %c0_195 = arith.constant 0 : index
    %c5_196 = arith.constant 5 : index
    %c0_197 = arith.constant 0 : index
    %393 = vector.load %arg6[%c0_195, %c5_196, %c0_197] : memref<1x8x16xf32, #tpu.memory_space<vmem>>, vector<1x1x16xf32>
    %394 = vector.shape_cast %393 : vector<1x1x16xf32> to vector<1x16xf32>
    %395 = vector.shape_cast %392 : vector<1x16xf32> to vector<1x1x16xf32>
    tpu.vector_store %arg6[%c0_195, %c5_196, %c0_197], %395 {strides = array<i32>} : memref<1x8x16xf32, #tpu.memory_space<vmem>>, vector<1x1x16xf32>,
    %c0_198 = arith.constant 0 : index
    %c2_199 = arith.constant 2 : index
    %c0_200 = arith.constant 0 : index
    %c0_201 = arith.constant 0 : index
    %396 = vector.load %arg5[%c0_198, %c2_199, %c0_200, %c0_201] : memref<1x4x16x16xf32, #tpu.memory_space<vmem>>, vector<1x1x16x16xf32>
    %397 = vector.shape_cast %396 : vector<1x1x16x16xf32> to vector<16x16xf32>
    %398 = vector.shape_cast %363 : vector<16x16xf32> to vector<1x1x16x16xf32>
    tpu.vector_store %arg5[%c0_198, %c2_199, %c0_200, %c0_201], %398 {strides = array<i32>} : memref<1x4x16x16xf32, #tpu.memory_space<vmem>>, vector<1x1x16x16xf32>,
    %cst_202 = arith.constant dense<0.000000e+00> : vector<16xf32>
    %399 = vector.multi_reduction <add>, %363, %cst_202 [0] : vector<16x16xf32> to vector<16xf32>
    %400 = vector.shape_cast %399 : vector<16xf32> to vector<1x16xf32>
    %c0_203 = arith.constant 0 : index
    %c2_204 = arith.constant 2 : index
    %c0_205 = arith.constant 0 : index
    %401 = vector.load %arg6[%c0_203, %c2_204, %c0_205] : memref<1x8x16xf32, #tpu.memory_space<vmem>>, vector<1x1x16xf32>
    %402 = vector.shape_cast %401 : vector<1x1x16xf32> to vector<1x16xf32>
    %403 = vector.shape_cast %400 : vector<1x16xf32> to vector<1x1x16xf32>
    tpu.vector_store %arg6[%c0_203, %c2_204, %c0_205], %403 {strides = array<i32>} : memref<1x8x16xf32, #tpu.memory_space<vmem>>, vector<1x1x16xf32>,
    %404 = arith.mulf %363, %363 : vector<16x16xf32>
    %cst_206 = arith.constant dense<0.000000e+00> : vector<16xf32>
    %405 = vector.multi_reduction <add>, %404, %cst_206 [0] : vector<16x16xf32> to vector<16xf32>
    %406 = vector.shape_cast %405 : vector<16xf32> to vector<1x16xf32>
    %c0_207 = arith.constant 0 : index
    %c6_208 = arith.constant 6 : index
    %c0_209 = arith.constant 0 : index
    %407 = vector.load %arg6[%c0_207, %c6_208, %c0_209] : memref<1x8x16xf32, #tpu.memory_space<vmem>>, vector<1x1x16xf32>
    %408 = vector.shape_cast %407 : vector<1x1x16xf32> to vector<1x16xf32>
    %409 = vector.shape_cast %406 : vector<1x16xf32> to vector<1x1x16xf32>
    tpu.vector_store %arg6[%c0_207, %c6_208, %c0_209], %409 {strides = array<i32>} : memref<1x8x16xf32, #tpu.memory_space<vmem>>, vector<1x1x16xf32>,
    %c0_210 = arith.constant 0 : index
    %c3_211 = arith.constant 3 : index
    %c0_212 = arith.constant 0 : index
    %c0_213 = arith.constant 0 : index
    %410 = vector.load %arg5[%c0_210, %c3_211, %c0_212, %c0_213] : memref<1x4x16x16xf32, #tpu.memory_space<vmem>>, vector<1x1x16x16xf32>
    %411 = vector.shape_cast %410 : vector<1x1x16x16xf32> to vector<16x16xf32>
    %412 = vector.shape_cast %367 : vector<16x16xf32> to vector<1x1x16x16xf32>
    tpu.vector_store %arg5[%c0_210, %c3_211, %c0_212, %c0_213], %412 {strides = array<i32>} : memref<1x4x16x16xf32, #tpu.memory_space<vmem>>, vector<1x1x16x16xf32>,
    %cst_214 = arith.constant dense<0.000000e+00> : vector<16xf32>
    %413 = vector.multi_reduction <add>, %367, %cst_214 [0] : vector<16x16xf32> to vector<16xf32>
    %414 = vector.shape_cast %413 : vector<16xf32> to vector<1x16xf32>
    %c0_215 = arith.constant 0 : index
    %c3_216 = arith.constant 3 : index
    %c0_217 = arith.constant 0 : index
    %415 = vector.load %arg6[%c0_215, %c3_216, %c0_217] : memref<1x8x16xf32, #tpu.memory_space<vmem>>, vector<1x1x16xf32>
    %416 = vector.shape_cast %415 : vector<1x1x16xf32> to vector<1x16xf32>
    %417 = vector.shape_cast %414 : vector<1x16xf32> to vector<1x1x16xf32>
    tpu.vector_store %arg6[%c0_215, %c3_216, %c0_217], %417 {strides = array<i32>} : memref<1x8x16xf32, #tpu.memory_space<vmem>>, vector<1x1x16xf32>,
    %418 = arith.mulf %367, %367 : vector<16x16xf32>
    %cst_218 = arith.constant dense<0.000000e+00> : vector<16xf32>
    %419 = vector.multi_reduction <add>, %418, %cst_218 [0] : vector<16x16xf32> to vector<16xf32>
    %420 = vector.shape_cast %419 : vector<16xf32> to vector<1x16xf32>
    %c0_219 = arith.constant 0 : index
    %c7_220 = arith.constant 7 : index
    %c0_221 = arith.constant 0 : index
    %421 = vector.load %arg6[%c0_219, %c7_220, %c0_221] : memref<1x8x16xf32, #tpu.memory_space<vmem>>, vector<1x1x16xf32>
    %422 = vector.shape_cast %421 : vector<1x1x16xf32> to vector<1x16xf32>
    %423 = vector.shape_cast %420 : vector<1x16xf32> to vector<1x1x16xf32>
    tpu.vector_store %arg6[%c0_219, %c7_220, %c0_221], %423 {strides = array<i32>} : memref<1x8x16xf32, #tpu.memory_space<vmem>>, vector<1x1x16xf32>,
    return
  }
  func.func @transform_0(%arg0: i32) -> (i32, i32, i32, i32) {
    %c0_i32 = arith.constant 0 : i32
    %c0_i32_0 = arith.constant 0 : i32
    %c0_i32_1 = arith.constant 0 : i32
    %c0_i32_2 = arith.constant 0 : i32
    return %arg0, %c0_i32, %c0_i32_0, %c0_i32_1 : i32, i32, i32, i32
  }
  func.func @transform_1(%arg0: i32) -> i32 {
    %c0_i32 = arith.constant 0 : i32
    %c0_i32_0 = arith.constant 0 : i32
    return %c0_i32 : i32
  }
  func.func @transform_2(%arg0: i32) -> i32 {
    %c0_i32 = arith.constant 0 : i32
    %c0_i32_0 = arith.constant 0 : i32
    return %c0_i32 : i32
  }
  func.func @transform_3(%arg0: i32) -> (i32, i32) {
    %c0_i32 = arith.constant 0 : i32
    %c0_i32_0 = arith.constant 0 : i32
    %c0_i32_1 = arith.constant 0 : i32
    return %c0_i32, %c0_i32_0 : i32, i32
  }
  func.func @transform_4(%arg0: i32) -> (i32, i32, i32, i32) {
    %c0_i32 = arith.constant 0 : i32
    %c0_i32_0 = arith.constant 0 : i32
    %c0_i32_1 = arith.constant 0 : i32
    %c0_i32_2 = arith.constant 0 : i32
    return %arg0, %c0_i32, %c0_i32_0, %c0_i32_1 : i32, i32, i32, i32
  }
  func.func @transform_5(%arg0: i32) -> (i32, i32, i32) {
    %c0_i32 = arith.constant 0 : i32
    %c0_i32_0 = arith.constant 0 : i32
    %c0_i32_1 = arith.constant 0 : i32
    return %arg0, %c0_i32, %c0_i32_0 : i32, i32, i32
  }
}

</mosaic_0001>

<bundles_post_ra>
// kernel: residual_unit_pallas.5
= control target key start
LH: loop header
LB: loop body
LE: loop exit
PB: predicated region body
PF: predicated region fallthrough
CT: control target
= control target key end

     0   :  { %9 = vsyncpa [#allocation4], 0  ;;  %s1012_s0 = inlined_call_operand.vmem [shape: f32[2,4,16,16], index: 0, kind: input, shape index: {}]   ;;  %s1013_s1 = inlined_call_operand.vmem [shape: f32[2,4,16,16], index: 1, kind: input, shape index: {}]   ;;  %s1014_s2 = inlined_call_operand.vmem [shape: f32[4], index: 2, kind: input, shape index: {}]   ;;  %s1015_s3 = inlined_call_operand.vmem [shape: f32[4], index: 3, kind: input, shape index: {}]   ;;  %s1016_s4 = inlined_call_operand.hbm [shape: f32[2,4,16,16], index: 4, kind: output, shape index: {}]  }
   0x1   :  { %10 = vsyncpa [#allocation6], 0 }
   0x2   :  { %11 = vsyncpa [#allocation3], 0 }
   0x3   :  { %13 = vsyncpa [#allocation3 + $0x1], 0  ;;  %s795_s15 = smov 0   ;;  %s797_s16 = smov 0  }
   0x4   :  { %s799_s17 = smov 0   ;;  %s801_s18 = smov 0  }
   0x5   :  { %s803_s19 = smov 0   ;;  %s805_s20 = smov 0  }
   0x6 LB: > { %s523_s21 = sadd.s32 4294967295, %s763_s20   ;;  %s524_s22 = sadd.s32 4294967294, %s763_s20   ;;  %s763_s20 = sphi %s805_s20, %s19_s20   ;;  %s759_s19 = sphi %s803_s19, %s1034_s19   ;;  %s755_s18 = sphi %s801_s18, %s1033_s18   ;;  %s751_s17 = sphi %s799_s17, %s1032_s17   ;;  %s747_s16 = sphi %s797_s16, %s1031_s16   ;;  %s743_s15 = sphi %s795_s15, %s1030_s15  }
   0x7   : > { %s31_s23 = sadd.s32 1, %s759_s19  ;;  %s138_s24 = sadd.s32 1, %s751_s17 }
   0x8   : > { %p33_p0 = scmp.ge.s32.totalorder %s31_s23, 2  ;;  %p148_p1 = scmp.ne.s32.totalorder %s751_s17, %s747_s16 }
   0x9   : > { %p149_p2 = scmp.eq.s32.totalorder %s523_s21, 1  ;;  %p154_p3 = scmp.ne.s32.totalorder %s747_s16, %s743_s15 }
   0xa   : > { %s1036_s23 = smov (%p33_p0, %s31_s23), 0  ;;  %p155_p5 = scmp.eq.s32.totalorder %s524_s22, 1 }
   0xb   : > { %p835_p4 = por %p149_p2, %p148_p1  ;;  %s133_s26 = ssub.s32 %s759_s19, %s1036_s23 }
   0xc   : > { %p525_p6 = scmp.ge.s32.totalorder %s763_s20, 1  ;;  %p136_p7 = scmp.eq.s32.totalorder %s133_s26, 0 }
   0xd   : > { %s1021_s25 = scalar_select %p835_p4, 1, 0 }
   0xe   : > { %p842_p8 = por %p155_p5, %p154_p3  ;;  %p162_p9 = scmp.lt.s32.totalorder %s763_s20, 3 }
   0xf   : > { %s848_s28 = scalar_select %p136_p7, %s751_s17, %s138_s24  }
  0x10   : > { %s1022_s27 = scalar_select %p842_p8, 1, 0 }
  0x11   : > { %p850_p10 = pnand %p525_p6, %p162_p9  ;;  %p854_p11 = scmp.eq.s32.totalorder %s523_s21, 0 }
  0x12   : > { %s175_s7 = sshll.u32 %s1014_s2, 4  ;;  %s186_s10 = sshll.u32 %s1015_s3, 4  ;;  %s176_s7 = int_to_ptr.vmem [resolvable:$true] %s175_s7  ;;  %s187_s10 = int_to_ptr.vmem [resolvable:$true] %s186_s10 }
  0x13   : > { %s1023_s29 = scalar_select %p850_p10, 1, 0 }
  0x14   : > { %s1024_s30 = scalar_select %p854_p11, 1, 0 }
  0x15   : > { %p579_p12 = pneg %p850_p10  ;;  %s647_s12 = scalar_lea.vmem %s176_s7, 16 }
  0x16   : > { %p648_p0 = scmp.ne.s32.totalorder %s176_s7, %s647_s12  ;;  %p655_p5 = scmp.lt.s32.totalorder %s176_s7, %s176_s7 }
  0x17   : > { %p868_p13 = pnand %p854_p11, %p579_p12  ;;  %p656_p6 = scmp.lt.s32.totalorder %s647_s12, %s647_s12 }
  0x19   : > { %p649_p1 = pneg %p868_p13  ;;  %p657_p7 = por %p656_p6, %p655_p5 }
  0x1b   : > { %p650_p2 = pnand %p649_p1, %p648_p0 }
  0x1d   : > { %p651_p3 = pneg %p650_p2 }
  0x1f   : > { %p658_p9 = pnand %p657_p7, %p651_p3 }
  0x21   : > { %661 = shalt.err (!%p658_p9)
}
  0x22   : > { %s765_s13 = smov [#allocation2]   ;;  %s662_s14 = scalar_lea.vmem %s187_s10, 16 }
  0x23   : > { %582 = dma.vmem_to_smem (!%p868_p13), %s176_s7, 16, %s765_s13, [#allocation4]  }
  0x24   : > { %p663_p12 = scmp.ne.s32.totalorder %s187_s10, %s662_s14  ;;  %p670_p11 = scmp.lt.s32.totalorder %s187_s10, %s187_s10 }
  0x25   : > { %p671_p10 = scmp.lt.s32.totalorder %s662_s14, %s662_s14 }
  0x26   : > { %p665_p8 = pnand %p663_p12, %p649_p1 }
  0x27   : > { %p672_p0 = por %p671_p10, %p670_p11 }
  0x28   : > { %p666_p4 = pneg %p665_p8 }
  0x2a   : > { %p673_p2 = pnand %p672_p0, %p666_p4 }
  0x2c   : > { %676 = shalt.err (!%p673_p2)
}
  0x2d   : > { %s766_s21 = smov [#allocation5]   ;;  %p1026_p3 = scmp.ne.s32.totalorder %s1023_s29, 0 }
  0x2e   : > { %585 = dma.vmem_to_smem (!%p868_p13), %s187_s10, 16, %s766_s21, [#allocation6]  }
  0x2f   : > { %225 = sbr.rel (%p1026_p3) target bundleno = 100 (0x64), region = 36  ;;  %p1027_p5 = scmp.ne.s32.totalorder (!%p1026_p3), %s1024_s30, 0 }
  0x36   : > { %730 = dma.done.wait (%p1027_p5), [#allocation4], 16  }
  0x37   : > { %732 = vsyncadd (%p1027_p5), [#allocation4], 4294967280 }
  0x38   : > { %734 = dma.done.wait (%p1027_p5), [#allocation6], 16  }
  0x39   : > { %736 = vsyncadd (%p1027_p5), [#allocation6], 4294967280 }
  0x3a   : > { %235 = sfence }
  0x3b   : > { %p270_p4 = scmp.lt.s32.totalorder %s755_s18, 1  ;;  %s292_s22 = sld [smem:[#allocation2]]  ;;  %vm310_vm2 = vcmask 130048  }
  0x3c   : > { %s296_s24 = sld [smem:[#allocation5]]  ;;  %s266_s5 = sand.u32 1, %s747_s16  }
  0x3d   : > { %s271_s26 = scalar_select %p270_p4, %s755_s18, 1 }
  0x3e   : > { %s539_s11 = sld [smem:[#allocation2 + $0x1]]  ;;  %s905_s13 = sld [smem:[#allocation2 + $0x2]] }
  0x3f   : > { %s566_s29 = sshll.u32 %s271_s26, 6  ;;  %s903_s12 = sld [smem:[#allocation5 + $0x1]] }
  0x40   : > { %s894_s8 = scalar_lea.vmem %s1013_s1, %s566_s29  ;;  %s899_s30 = scalar_lea.vmem %s1012_s0, %s566_s29 }
  0x41   : > { %v290_v0 = vld [vmem:[%s894_s8] sm:$0xff]  ;;  %v293_v1 = vstv %s292_s22  ;;  %v291_v2 = vld [vmem:[%s894_s8 + $0x8] sm:$0xff]  ;;  %s909_s14 = sshll.u32 %s266_s5, 6  ;;  %s913_s21 = sld [smem:[#allocation5 + $0x2]]  ;;  %v537_v10 = vld [vmem:[%s894_s8 + $0x10] sm:$0xff] }
  0x42   : > { %v294_v3 = vmul.f32 %v293_v1, %v290_v0  ;;  %v297_v4 = vstv %s296_s24  ;;  %v295_v5 = vmul.f32 %v293_v1, %v291_v2  ;;  %v306_v7 = vld [vmem:[%s899_s30] sm:$0xff]  ;;  %v307_v9 = vld [vmem:[%s899_s30 + $0x8] sm:$0xff]  ;;  %v538_v11 = vld [vmem:[%s894_s8 + $0x18] sm:$0xff]  ;;  %s917_s22 = sld [smem:[#allocation2 + $0x3]]  ;;  %s929_s26 = scalar_lea.vmem [#allocation7], %s909_s14 }
  0x43   : > { %s919_s24 = sld [smem:[#allocation5 + $0x3]]  ;;  %v545_v15 = vld [vmem:[%s894_s8 + $0x20] sm:$0xff]  ;;  %v546_v16 = vld [vmem:[%s894_s8 + $0x28] sm:$0xff]  ;;  %v553_v29 = vld [vmem:[%s894_s8 + $0x30] sm:$0xff]  ;;  %s404_s29 = sshll.u32 %s929_s26, 4  ;;  %s951_s29 = int_to_ptr.vmem [resolvable:$true] %s404_s29 }
  0x44   : > { %v298_v6 = vadd.f32 %v297_v4, %v294_v3  ;;  %v299_v8 = vadd.f32 %v297_v4, %v295_v5  ;;  %v317_v14 = vstv %s539_s11  ;;  %v342_v24 = vstv %s905_s13  ;;  %v554_v30 = vld [vmem:[%s894_s8 + $0x38] sm:$0xff]  ;;  %v541_v35 = vld [vmem:[%s899_s30 + $0x10] sm:$0xff]  ;;  %s568_s6 = sshll.u32 %s755_s18, 10  ;;  %s966_s9 = scalar_lea.sflag [#allocation3], %s266_s5 }
  0x45   : > { %v318_v19 = vmul.f32 %v537_v10, %v317_v14  ;;  %v321_v20 = vstv %s903_s12  ;;  %v319_v23 = vmul.f32 %v538_v11, %v317_v14  ;;  %v343_v26 = vmul.f32 %v545_v15, %v342_v24  ;;  %v542_v39 = vld [vmem:[%s899_s30 + $0x18] sm:$0xff]  ;;  %v549_v44 = vld [vmem:[%s899_s30 + $0x20] sm:$0xff]  ;;  %v550_v48 = vld [vmem:[%s899_s30 + $0x28] sm:$0xff]  ;;  %s958_s8 = scalar_lea.hbm %s1016_s4, %s568_s6  ;;  %s677_s10 = scalar_lea.vmem %s951_s29, 1024 }
  0x46   : > { %vm300_vm0 = vcmp.gt.f32.partialorder %v298_v6, 0.0  ;;  %v302_v12 = vmul.f32 0.1, %v298_v6  ;;  %vm301_vm1 = vcmp.gt.f32.partialorder %v299_v8, 0.0  ;;  %v303_v13 = vmul.f32 0.1, %v299_v8  ;;  %p678_p8 = scmp.ne.s32.totalorder %s951_s29, %s677_s10 }
  0x47   : > { %v322_v25 = vadd.f32 %v321_v20, %v318_v19  ;;  %v346_v27 = vstv %s913_s21  ;;  %v344_v28 = vmul.f32 %v546_v16, %v342_v24  ;;  %v323_v31 = vadd.f32 %v321_v20, %v319_v23  ;;  %v557_v56 = vld [vmem:[%s899_s30 + $0x30] sm:$0xff]  ;;  %v558_v59 = vld [vmem:[%s899_s30 + $0x38] sm:$0xff]  ;;  %p1028_p10 = scmp.ne.s32.totalorder %s1021_s25, 0  ;;  %s767_s30 = smov [#allocation7]  }
  0x48   : > { %v304_v17 = vsel %vm300_vm0, %v298_v6, %v302_v12  ;;  %v305_v18 = vsel %vm301_vm1, %v299_v8, %v303_v13  ;;  %v367_v32 = vstv %s917_s22  ;;  %v347_v36 = vadd.f32 %v346_v27, %v343_v26  ;;  %s681_s11 = sshll.u32 %s767_s30, 4  ;;  %s682_s11 = int_to_ptr.vmem [resolvable:$false] %s681_s11 }
  0x49   : > { %v308_v21 = vadd.f32 %v306_v7, %v304_v17  ;;  %v309_v22 = vadd.f32 %v307_v9, %v305_v18  ;;  %v371_v33 = vstv %s919_s24  ;;  %vm324_vm3 = vcmp.gt.f32.partialorder %v322_v25, 0.0  ;;  %p679_p11 = pnand %p678_p8, %p1028_p10  ;;  %s683_s12 = scalar_lea.vmem %s682_s11, 2048 }
  0x4a   : > { %v326_v34 = vmul.f32 0.1, %v322_v25  ;;  %v348_v37 = vadd.f32 %v346_v27, %v344_v28  ;;  %vm325_vm4 = vcmp.gt.f32.partialorder %v323_v31, 0.0  ;;  %v327_v38 = vmul.f32 0.1, %v323_v31  ;;  %p684_p1 = scmp.lt.s32.totalorder %s951_s29, %s682_s11  ;;  %p685_p6 = scmp.lt.s32.totalorder %s683_s12, %s677_s10 }
  0x4b   : > { %311 = vst.msk [vmem:[%s929_s26] sm:$0xff] %vm310_vm2, %v308_v21  ;;  %312 = vst.msk [vmem:[%s929_s26 + $0x8] sm:$0xff] %vm310_vm2, %v309_v22  ;;  %v368_v40 = vmul.f32 %v553_v29, %v367_v32  ;;  %v369_v41 = vmul.f32 %v554_v30, %v367_v32  ;;  %vm349_vm5 = vcmp.gt.f32.partialorder %v347_v36, 0.0  ;;  %v351_v43 = vmul.f32 0.1, %v347_v36  ;;  %p680_p13 = pneg %p679_p11 }
  0x4c   : > { %v328_v42 = vsel %vm324_vm3, %v322_v25, %v326_v34  ;;  %vm350_vm6 = vcmp.gt.f32.partialorder %v348_v37, 0.0  ;;  %v329_v46 = vsel %vm325_vm4, %v323_v31, %v327_v38  ;;  %v352_v47 = vmul.f32 0.1, %v348_v37  ;;  %p686_p7 = por %p685_p6, %p684_p1 }
  0x4d   : > { %v333_v45 = vadd.f32 %v541_v35, %v328_v42  ;;  %v372_v49 = vadd.f32 %v371_v33, %v368_v40  ;;  %v334_v50 = vadd.f32 %v542_v39, %v329_v46  ;;  %v353_v51 = vsel %vm349_vm5, %v347_v36, %v351_v43 }
  0x4e   : > { %v373_v52 = vadd.f32 %v371_v33, %v369_v41  ;;  %v358_v53 = vadd.f32 %v549_v44, %v353_v51  ;;  %v354_v54 = vsel %vm350_vm6, %v348_v37, %v352_v47  ;;  %p687_p9 = pnand %p686_p7, %p680_p13 }
  0x4f   : > { %543 = vst.msk [vmem:[%s929_s26 + $0x10] sm:$0xff] %vm310_vm2, %v333_v45  ;;  %vm374_vm7 = vcmp.gt.f32.partialorder %v372_v49, 0.0  ;;  %v376_v55 = vmul.f32 0.1, %v372_v49  ;;  %544 = vst.msk [vmem:[%s929_s26 + $0x18] sm:$0xff] %vm310_vm2, %v334_v50  ;;  %v359_v57 = vadd.f32 %v550_v48, %v354_v54 }
  0x50   : > { %vm375_vm8 = vcmp.gt.f32.partialorder %v373_v52, 0.0  ;;  %v377_v58 = vmul.f32 0.1, %v373_v52  ;;  %551 = vst.msk [vmem:[%s929_s26 + $0x20] sm:$0xff] %vm310_vm2, %v358_v53 }
  0x51   : > { %v378_v60 = vsel %vm374_vm7, %v372_v49, %v376_v55  ;;  %552 = vst.msk [vmem:[%s929_s26 + $0x28] sm:$0xff] %vm310_vm2, %v359_v57 }
  0x52   : > { %v383_v61 = vadd.f32 %v557_v56, %v378_v60  ;;  %v379_v62 = vsel %vm375_vm8, %v373_v52, %v377_v58 }
  0x53   : > { %v384_v63 = vadd.f32 %v558_v59, %v379_v62 }
  0x54   : > { %559 = vst.msk [vmem:[%s929_s26 + $0x30] sm:$0xff] %vm310_vm2, %v383_v61 }
  0x55   : > { %560 = vst.msk [vmem:[%s929_s26 + $0x38] sm:$0xff] %vm310_vm2, %v384_v63 }
  0x56   : > { %690 = shalt.err (!%p687_p9)
}
  0x57   : > { %s691_s5 = scalar_lea.hbm %s958_s8, 1024  ;;  %s695_s21 = scalar_lea.hbm %s1016_s4, 2048 }
  0x58   : > { %p692_p12 = scmp.ne.s32.totalorder %s958_s8, %s691_s5  ;;  %p696_p3 = scmp.lt.u32.totalorder %s958_s8, %s1016_s4 }
  0x59   : > { %p697_p5 = scmp.lt.u32.totalorder %s695_s21, %s691_s5  ;;  %p699_p8 = scmp.lt.u32.totalorder %s691_s5, %s958_s8 }
  0x5a   : > { %p693_p0 = pnand %p692_p12, %p1028_p10 }
  0x5b   : > { %p698_p4 = por %p697_p5, %p696_p3 }
  0x5c   : > { %p694_p2 = pneg %p693_p0 }
  0x5d   : > { %p700_p11 = por %p699_p8, %p698_p4 }
  0x5f   : > { %p701_p13 = pnand %p700_p11, %p694_p2 }
  0x61   : > { %704 = shalt.err (!%p701_p13)
}
  0x62   : > { %s768_s26 = smov 128   ;;  %s769_s6 = smov 8  }
  0x63   : > { %577 = dma.vmem_to_hbm [thread:$0]  (%p1028_p10), %s951_s29, 1024, %s958_s8, %s966_s9, %s768_s26, %s768_s26, %s769_s6  }
  0x64 PF: > { %p594_p1 = scmp.ge.s32.totalorder %s763_s20, 2  ;;  %s419_s18 = sand.u32 1, %s743_s15  }
  0x65   : > { %p1029_p6 = scmp.ne.s32.totalorder %s1022_s27, 0  ;;  %s420_s7 = scalar_lea.sflag [#allocation3], %s419_s18 }
  0x67   : > { %p587_p7 = pnand %p594_p1, %p1029_p6 }
  0x69   : > { %738 = dma.done.wait (!%p587_p7), %s420_s7, 1024  }
  0x6a   : > { %740 = vsyncadd (!%p587_p7), %s420_s7, 4294966272  ;;  %s19_s20 = sadd.s32 1, %s763_s20   ;;  %s1030_s15 = smov %s747_s16 }
  0x6b   : > { %p16_p9 = scmp.ge.s32.totalorder %s19_s20, 4   ;;  %s1031_s16 = smov %s751_s17 }
  0x6c   : > { %s1032_s17 = smov %s848_s28  ;;  %s1033_s18 = smov %s759_s19 }
  0x6d   : > { %s1034_s19 = smov %s1036_s23  ;;  %18 = sbr.rel (!%p16_p9) target bundleno = 6 (0x6), region = 92 }
  0x74   :  { %425 = vsyncpa [#allocation3], 1 }
  0x75   :  { %427 = vsyncpa [#allocation3 + $0x1], 1 }
  0x76   :  { %428 = vsyncpa [#allocation4], 1 }
  0x77   :  { %430 = vsyncpa [#allocation4 + $0x1], 1 }
  0x78   :  { %431 = vsyncpa [#allocation6], 1 }

// kernel: residual_unit_pallas.3
= control target key start
LH: loop header
LB: loop body
LE: loop exit
PB: predicated region body
PF: predicated region fallthrough
CT: control target
= control target key end

     0   :  { %9 = vsyncpa [#allocation3], 0  ;;  %s933_s0 = inlined_call_operand.hbm [shape: f32[2,4,16,16], index: 0, kind: input, shape index: {}]   ;;  %s934_s1 = inlined_call_operand.vmem [shape: f32[2,4], index: 1, kind: input, shape index: {}]   ;;  %s935_s2 = inlined_call_operand.vmem [shape: f32[2,2,16,16], index: 2, kind: output, shape index: {0}]   ;;  %s936_s3 = inlined_call_operand.vmem [shape: f32[2,1,4,16], index: 3, kind: output, shape index: {1}]  }
   0x1   :  { %11 = vsyncpa [#allocation3 + $0x1], 0 }
   0x2   :  { %12 = vsyncpa [#allocation4], 0  ;;  %s746_s12 = smov 0   ;;  %s748_s13 = smov 0  }
   0x3   :  { %s750_s14 = smov 0   ;;  %s752_s15 = smov 0  }
   0x4   :  { %s754_s16 = smov 0   ;;  %s756_s17 = smov 0  }
   0x5 LB: > { %s514_s18 = sadd.s32 4294967295, %s720_s17   ;;  %s39_s19 = sadd.s32 1, %s708_s14  ;;  %s720_s17 = sphi %s756_s17, %s18_s17   ;;  %s716_s16 = sphi %s754_s16, %s953_s16   ;;  %s712_s15 = sphi %s752_s15, %s952_s15   ;;  %s708_s14 = sphi %s750_s14, %s951_s14   ;;  %s704_s13 = sphi %s748_s13, %s950_s13   ;;  %s700_s12 = sphi %s746_s12, %s949_s12  }
   0x6   : > { %p46_p0 = scmp.ne.s32.totalorder %s708_s14, %s704_s13  ;;  %p47_p1 = scmp.eq.s32.totalorder %s720_s17, 0 }
   0x7   : > { %p52_p2 = scmp.ne.s32.totalorder %s704_s13, %s700_s12  ;;  %p780_p3 = scmp.eq.s32.totalorder %s514_s18, 0 }
   0x8   : > { %p48_p4 = por %p47_p1, %p46_p0  ;;  %p516_p5 = scmp.ge.s32.totalorder %s720_s17, 1 }
   0x9   : > { %s941_s20 = scalar_select %p780_p3, 1, 0 }
   0xa   : > { %p787_p6 = por %p780_p3, %p52_p2  ;;  %p140_p7 = scmp.lt.s32.totalorder %s720_s17, 3 }
   0xb   : > { %s153_s24 = sshll.u32 %s934_s1, 4  ;;  %p568_p10 = scmp.lt.s32.totalorder %s720_s17, 2  ;;  %s154_s24 = int_to_ptr.vmem [resolvable:$true] %s153_s24 }
   0xc   : > { %s942_s21 = scalar_select %p787_p6, 1, 0 }
   0xd   : > { %p795_p8 = pnand %p516_p5, %p140_p7  ;;  %s164_s26 = sand.u32 1, %s708_s14  }
   0xe   : > { %p805_p12 = pnand %p568_p10, %p48_p4  ;;  %s621_s28 = scalar_lea.vmem %s154_s24, 32 }
   0xf   : > { %s943_s25 = scalar_select %p795_p8, 1, 0 }
  0x10   : > { %p559_p9 = pneg %p795_p8  ;;  %p622_p13 = scmp.ne.s32.totalorder %s154_s24, %s621_s28 }
  0x11   : > { %p629_p5 = scmp.lt.s32.totalorder %s154_s24, %s154_s24  ;;  %p630_p7 = scmp.lt.s32.totalorder %s621_s28, %s621_s28 }
  0x12   : > { %p560_p11 = pnand %p559_p9, %p780_p3 }
  0x13   : > { %p631_p6 = por %p630_p7, %p629_p5 }
  0x14   : > { %p623_p0 = pneg %p560_p11 }
  0x16   : > { %p624_p1 = pnand %p623_p0, %p622_p13 }
  0x18   : > { %p625_p2 = pneg %p624_p1 }
  0x1a   : > { %p632_p8 = pnand %p631_p6, %p625_p2 }
  0x1c   : > { %635 = shalt.err (!%p632_p8)
}
  0x1d   : > { %s722_s29 = smov [#allocation5]   ;;  %s30_s30 = sadd.s32 1, %s716_s16 }
  0x1e   : > { %562 = dma.vmem_to_smem (!%p560_p11), %s154_s24, 32, %s722_s29, [#allocation4]  }
  0x1f   : > { %s519_s4 = sshll.u32 %s164_s26, 6  ;;  %p32_p4 = scmp.ge.s32.totalorder %s30_s30, 2 }
  0x20   : > { %s551_s5 = sshll.u32 %s716_s16, 10  ;;  %s168_s6 = scalar_lea.vmem [#allocation2], %s519_s4 }
  0x21   : > { %s177_s7 = sshll.u32 %s168_s6, 4  ;;  %s955_s30 = smov (%p32_p4, %s30_s30), 0  ;;  %s818_s7 = int_to_ptr.vmem [resolvable:$true] %s177_s7 }
  0x22   : > { %s816_s10 = scalar_lea.hbm %s933_s0, %s551_s5  ;;  %s34_s11 = ssub.s32 %s716_s16, %s955_s30 }
  0x23   : > { %p822_p6 = scmp.eq.s32.totalorder %s34_s11, 0  ;;  %s826_s18 = scalar_lea.sflag [#allocation3], %s164_s26 }
  0x24   : > { %s636_s22 = scalar_lea.hbm %s816_s10, 1024  ;;  %p638_p9 = pneg %p805_p12 }
  0x25   : > { %p637_p8 = scmp.ne.s32.totalorder %s816_s10, %s636_s22  ;;  %s641_s28 = scalar_lea.hbm %s933_s0, 2048 }
  0x26   : > { %p642_p13 = scmp.lt.u32.totalorder %s816_s10, %s933_s0  ;;  %p643_p0 = scmp.lt.u32.totalorder %s641_s28, %s636_s22 }
  0x27   : > { %p639_p10 = pnand %p638_p9, %p637_p8  ;;  %p645_p2 = scmp.lt.u32.totalorder %s636_s22, %s816_s10 }
  0x28   : > { %p644_p1 = por %p643_p0, %p642_p13 }
  0x29   : > { %p640_p11 = pneg %p639_p10 }
  0x2a   : > { %p646_p5 = por %p645_p2, %p644_p1 }
  0x2c   : > { %p647_p7 = pnand %p646_p5, %p640_p11 }
  0x2e   : > { %650 = shalt.err (!%p647_p7)
}
  0x2f   : > { %s651_s26 = scalar_lea.vmem %s818_s7, 1024  ;;  %s723_s5 = smov [#allocation2]  }
  0x30   : > { %p652_p4 = scmp.ne.s32.totalorder %s818_s7, %s651_s26  ;;  %s656_s6 = sshll.u32 %s723_s5, 4  ;;  %s657_s6 = int_to_ptr.vmem [resolvable:$false] %s656_s6 }
  0x31   : > { %s658_s8 = scalar_lea.vmem %s657_s6, 2048  ;;  %p659_p3 = scmp.lt.s32.totalorder %s818_s7, %s657_s6 }
  0x32   : > { %p654_p8 = pnand %p652_p4, %p638_p9  ;;  %p660_p13 = scmp.lt.s32.totalorder %s658_s8, %s651_s26 }
  0x34   : > { %p655_p10 = pneg %p654_p8  ;;  %p661_p0 = por %p660_p13, %p659_p3 }
  0x36   : > { %p662_p1 = pnand %p661_p0, %p655_p10 }
  0x38   : > { %665 = shalt.err (!%p662_p1)
}
  0x39   : > { %s724_s9 = smov 128   ;;  %s725_s11 = smov 8  }
  0x3a   : > { %566 = dma.hbm_to_vmem [thread:$0]  (!%p805_p12), %s816_s10, 1024, %s818_s7, %s826_s18, %s724_s9, %s724_s9, %s725_s11  }
  0x3b   : > { %s859_s22 = scalar_select %p822_p6, %s708_s14, %s39_s19  }
  0x3c   : > { %p946_p9 = scmp.ne.s32.totalorder %s943_s25, 0 }
  0x3d   : > { %s191_s23 = sand.u32 (!%p946_p9), 1, %s704_s13   ;;  %p947_p3 = scmp.ne.s32.totalorder (!%p946_p9), %s942_s21, 0 }
  0x3e   : > { %189 = sbr.rel (%p946_p9) target bundleno = 114 (0x72), region = 28  ;;  %s523_s24 = sshll.u32 (!%p946_p9), %s191_s23, 6 }
  0x3f   : > { %s192_s28 = scalar_lea.sflag (!%p946_p9), [#allocation3], %s191_s23  ;;  %s195_s29 = scalar_lea.vmem (!%p946_p9), [#allocation2], %s523_s24 }
  0x45   : > { %691 = dma.done.wait (%p947_p3), %s192_s28, 1024  }
  0x46   : > { %693 = vsyncadd (%p947_p3), %s192_s28, 4294966272  ;;  %p948_p12 = scmp.ne.s32.totalorder %s941_s20, 0 }
  0x48   : > { %695 = dma.done.wait (%p948_p12), [#allocation4], 32  }
  0x49   : > { %697 = vsyncadd (%p948_p12), [#allocation4], 4294967264 }
  0x4a   : > { %204 = sfence }
  0x4b   : > { %p236_p6 = scmp.lt.s32.totalorder %s712_s15, 1  ;;  %s252_s19 = sld [smem:[#allocation5]]  ;;  %v253_v0 = vld [vmem:[%s195_s29] sm:$0xff]  ;;  %v529_v1 = vld [vmem:[%s195_s29 + $0x10] sm:$0xff]  ;;  %v254_v2 = vld [vmem:[%s195_s29 + $0x8] sm:$0xff]  ;;  %vm285_vm0 = vcmask 130048  }
  0x4c   : > { %s528_s25 = sld [smem:[#allocation5 + $0x1]]  ;;  %s531_s27 = sld [smem:[#allocation5 + $0x2]]  ;;  %v532_v3 = vld [vmem:[%s195_s29 + $0x20] sm:$0xff]  ;;  %v530_v4 = vld [vmem:[%s195_s29 + $0x18] sm:$0xff]  ;;  %v533_v5 = vld [vmem:[%s195_s29 + $0x28] sm:$0xff]  ;;  %vm297_vm1 = vcmask 122880  }
  0x4d   : > { %s534_s7 = sld [smem:[#allocation5 + $0x3]]  ;;  %s873_s10 = sld [smem:[#allocation5 + $0x80]]  ;;  %v535_v10 = vld [vmem:[%s195_s29 + $0x30] sm:$0xff]  ;;  %v536_v12 = vld [vmem:[%s195_s29 + $0x38] sm:$0xff] }
  0x4e   : > { %s957_s15 = smov (!%p236_p6, %s712_s15), 1  ;;  %s878_s20 = sld [smem:[#allocation5 + $0x81]] }
  0x4f   : > { %s880_s21 = sld [smem:[#allocation5 + $0x82]]  ;;  %s544_s12 = sld [smem:[#allocation5 + $0x83]] }
  0x50   : > { %s552_s18 = sshll.u32 %s957_s15, 5  ;;  %s527_s6 = sshll.u32 %s957_s15, 2 }
  0x51   : > { %v255_v6 = vstv %s252_s19  ;;  %s889_s5 = scalar_lea.vmem %s935_s2, %s552_s18  ;;  %s251_s11 = scalar_lea.vmem %s936_s3, %s527_s6 }
  0x52   : > { %v256_v7 = vmul.f32 %v255_v6, %v253_v0  ;;  %v262_v8 = vstv %s528_s25  ;;  %v271_v9 = vstv %s531_s27  ;;  %v257_v11 = vmul.f32 %v255_v6, %v254_v2 }
  0x53   : > { %v263_v13 = vmul.f32 %v529_v1, %v262_v8  ;;  %v272_v14 = vmul.f32 %v532_v3, %v271_v9  ;;  %v264_v15 = vmul.f32 %v530_v4, %v262_v8  ;;  %v273_v16 = vmul.f32 %v533_v5, %v271_v9 }
  0x54   : > { %v280_v17 = vstv %s534_s7  ;;  %v314_v18 = vstv %s873_s10  ;;  %v320_v27 = vstv %s878_s20 }
  0x55   : > { %v265_v19 = vadd.f32 %v263_v13, %v256_v7  ;;  %v281_v20 = vmul.f32 %v535_v10, %v280_v17  ;;  %v266_v21 = vadd.f32 %v264_v15, %v257_v11  ;;  %v282_v22 = vmul.f32 %v536_v12, %v280_v17 }
  0x56   : > { %v315_v23 = vmul.f32 %v314_v18, %v253_v0  ;;  %v316_v24 = vmul.f32 %v314_v18, %v254_v2  ;;  %v328_v28 = vstv %s880_s21  ;;  %v321_v29 = vmul.f32 %v529_v1, %v320_v27 }
  0x57   : > { %v274_v25 = vadd.f32 %v272_v14, %v265_v19  ;;  %v275_v26 = vadd.f32 %v273_v16, %v266_v21  ;;  %v329_v30 = vmul.f32 %v532_v3, %v328_v28  ;;  %v336_v31 = vstv %s544_s12 }
  0x58   : > { %v322_v32 = vmul.f32 %v530_v4, %v320_v27  ;;  %v330_v35 = vmul.f32 %v533_v5, %v328_v28  ;;  %v323_v36 = vadd.f32 %v321_v29, %v315_v23  ;;  %v337_v37 = vmul.f32 %v535_v10, %v336_v31 }
  0x59   : > { %v283_v33 = vadd.f32 %v281_v20, %v274_v25  ;;  %v284_v34 = vadd.f32 %v282_v22, %v275_v26  ;;  %v338_v39 = vmul.f32 %v536_v12, %v336_v31 }
  0x5a   : > { %v324_v38 = vadd.f32 %v322_v32, %v316_v24  ;;  %v331_v45 = vadd.f32 %v329_v30, %v323_v36 }
  0x5b   : > { %286 = vst.msk [vmem:[%s889_s5] sm:$0xff] %vm285_vm0, %v283_v33  ;;  %v288_v40 = vsel %vm285_vm0, %v283_v33, 0.0  ;;  %v299_v41 = vmul.f32 %v283_v33, %v283_v33  ;;  %287 = vst.msk [vmem:[%s889_s5 + $0x8] sm:$0xff] %vm285_vm0, %v284_v34  ;;  %v289_v42 = vsel %vm285_vm0, %v284_v34, 0.0  ;;  %v300_v43 = vmul.f32 %v284_v34, %v284_v34 }
  0x5c   : > { %v290_v44 = vadd.f32 %v289_v42, %v288_v40  ;;  %v332_v46 = vadd.f32 %v330_v35, %v324_v38  ;;  %v339_v51 = vadd.f32 %v337_v37, %v331_v45 }
  0x5d   : > { %v301_v47 = vsel %vm285_vm0, %v299_v41, 0.0  ;;  %v302_v48 = vsel %vm285_vm0, %v300_v43, 0.0 }
  0x5e   : > { %v291_v49 = vrot.slane %v290_v44, 4  ;;  %v303_v50 = vadd.f32 %v302_v48, %v301_v47  ;;  %v340_v52 = vadd.f32 %v338_v39, %v332_v46  ;;  %547 = vst.msk [vmem:[%s889_s5 + $0x10] sm:$0xff] %vm285_vm0, %v339_v51  ;;  %v344_v55 = vsel %vm285_vm0, %v339_v51, 0.0 }
  0x5f   : > { %v354_v56 = vmul.f32 %v339_v51, %v339_v51 }
  0x60   : > { %v292_v53 = vadd.f32 %v291_v49, %v290_v44  ;;  %v304_v54 = vrot.slane %v303_v50, 4  ;;  %548 = vst.msk [vmem:[%s889_s5 + $0x18] sm:$0xff] %vm285_vm0, %v340_v52  ;;  %v345_v57 = vsel %vm285_vm0, %v340_v52, 0.0  ;;  %v355_v58 = vmul.f32 %v340_v52, %v340_v52 }
  0x61   : > { %v356_v61 = vsel %vm285_vm0, %v354_v56, 0.0  ;;  %v346_v62 = vadd.f32 %v345_v57, %v344_v55 }
  0x62   : > { %v293_v59 = vrot.slane %v292_v53, 2  ;;  %v305_v60 = vadd.f32 %v304_v54, %v303_v50  ;;  %v357_v63 = vsel %vm285_vm0, %v355_v58, 0.0 }
  0x63   : > { %v347_v2 = vrot.slane %v346_v62, 4  ;;  %v358_v3 = vadd.f32 %v357_v63, %v356_v61 }
  0x64   : > { %v294_v0 = vadd.f32 %v293_v59, %v292_v53  ;;  %v306_v1 = vrot.slane %v305_v60, 2 }
  0x65   : > { %v348_v6 = vadd.f32 %v347_v2, %v346_v62  ;;  %v359_v7 = vrot.slane %v358_v3, 4 }
  0x66   : > { %v295_v4 = vrot.slane %v294_v0, 1  ;;  %v307_v5 = vadd.f32 %v306_v1, %v305_v60 }
  0x67   : > { %v349_v10 = vrot.slane %v348_v6, 2  ;;  %v360_v11 = vadd.f32 %v359_v7, %v358_v3 }
  0x68   : > { %v296_v8 = vadd.f32 %v295_v4, %v294_v0  ;;  %v308_v9 = vrot.slane %v307_v5, 1 }
  0x69   : > { %v350_v13 = vadd.f32 %v349_v10, %v348_v6  ;;  %v361_v14 = vrot.slane %v360_v11, 2 }
  0x6a   : > { %298 = vst.msk [vmem:[%s251_s11] sm:$0x1] %vm297_vm1, %v296_v8  ;;  %v309_v12 = vadd.f32 %v308_v9, %v307_v5 }
  0x6b   : > { %v351_v15 = vrot.slane %v350_v13, 1  ;;  %v362_v16 = vadd.f32 %v361_v14, %v360_v11 }
  0x6c   : > { %310 = vst.msk [vmem:[%s251_s11 + $0x2] sm:$0x1] %vm297_vm1, %v309_v12 }
  0x6d   : > { %v352_v17 = vadd.f32 %v351_v15, %v350_v13  ;;  %v363_v18 = vrot.slane %v362_v16, 1 }
  0x6f   : > { %353 = vst.msk [vmem:[%s251_s11 + $0x1] sm:$0x1] %vm297_vm1, %v352_v17  ;;  %v364_v19 = vadd.f32 %v363_v18, %v362_v16 }
  0x71   : > { %365 = vst.msk [vmem:[%s251_s11 + $0x3] sm:$0x1] %vm297_vm1, %v364_v19 }
  0x72 PF: > { %s18_s17 = sadd.s32 1, %s720_s17   ;;  %s949_s12 = smov %s704_s13 }
  0x73   : > { %p15_p11 = scmp.ge.s32.totalorder %s18_s17, 4   ;;  %s950_s13 = smov %s708_s14 }
  0x74   : > { %s951_s14 = smov %s859_s22  ;;  %s952_s15 = smov %s716_s16 }
  0x75   : > { %s953_s16 = smov %s955_s30  ;;  %17 = sbr.rel (!%p15_p11) target bundleno = 5 (0x5), region = 89 }
  0x7c   :  { %416 = vsyncpa [#allocation3], 1 }
  0x7d   :  { %418 = vsyncpa [#allocation3 + $0x1], 1 }
  0x7e   :  { %419 = vsyncpa [#allocation4], 1 }
  0x7f   :  { %421 = vsyncpa [#allocation4 + $0x1], 1 }

// kernel: residual_unit_pallas.4
= control target key start
LH: loop header
LB: loop body
LE: loop exit
PB: predicated region body
PF: predicated region fallthrough
CT: control target
= control target key end

     0   :  { %s2524_s0 = inlined_call_operand.vmem [shape: f32[2,2,16,16], index: 0, kind: input, shape index: {}]   ;;  %s2525_s1 = inlined_call_operand.vmem [shape: f32[2], index: 1, kind: input, shape index: {}]   ;;  %s2526_s2 = inlined_call_operand.vmem [shape: f32[2], index: 2, kind: input, shape index: {}]   ;;  %s2527_s3 = inlined_call_operand.vmem [shape: f32[18,4], index: 3, kind: input, shape index: {}]   ;;  %s2528_s4 = inlined_call_operand.vmem [shape: f32[2,4,16,16], index: 4, kind: output, shape index: {0}]   ;;  %s2529_s5 = inlined_call_operand.vmem [shape: f32[2,8,16], index: 5, kind: output, shape index: {1}]  }
   0x1   :  { %2557 = sst [smem:[#allocation44_spill]] %s2524_s0 }
   0x2   :  { %2558 = sst [smem:[#allocation45_spill]] %s2525_s1 }
   0x3   :  { %2559 = sst [smem:[#allocation46_spill]] %s2526_s2 }
   0x4   :  { %2560 = sst [smem:[#allocation47_spill]] %s2527_s3 }
   0x5   :  { %2561 = sst [smem:[#allocation48_spill]] %s2528_s4 }
   0x6   :  { %2562 = sst [smem:[#allocation49_spill]] %s2529_s5 }
   0x7   :  { %11 = vsyncpa [#allocation3], 0 }
   0x8   :  { %12 = vsyncpa [#allocation5], 0  ;;  %s1530_s18 = smov 0  }
   0x9 LB: > { %2563 = sst [smem:[#allocation9_spill]] %s1490_s18  ;;  %s2564_s2 = sld [smem:[#allocation46_spill]]  ;;  %s1490_s18 = sphi %s1530_s18, %s18_s18  }
   0xa   : > { %s1539_s22 = sadd.s32 4294967295, %s1490_s18   ;;  %p1288_p0 = scmp.ge.s32.totalorder %s1490_s18, 1 }
   0xb   : > { %p164_p1 = scmp.lt.s32.totalorder %s1490_s18, 3  ;;  %p2530_p2 = scmp.eq.s32.totalorder %s1539_s22, 0 }
   0xc   : > { %s2566_s1 = sld [smem:[#allocation45_spill]]  ;;  %s2567_s3 = sld [smem:[#allocation47_spill]] }
   0xd   : > { %p1544_p3 = pnand %p1288_p0, %p164_p1 }
   0xf   : > { %s188_s21 = sshll.u32 %s2564_s2, 4  ;;  %p1399_p4 = pneg %p1544_p3  ;;  %s189_s21 = int_to_ptr.vmem [resolvable:$true] %s188_s21 }
  0x10   : > { %s2565_s23 = scalar_select %p1544_p3, 1, 0 }
  0x11   : > { %p1558_p5 = pnand %p2530_p2, %p1399_p4  ;;  %s1431_s6 = scalar_lea.vmem %s189_s21, 16 }
  0x12   : > { %s177_s26 = sshll.u32 %s2566_s1, 4  ;;  %s198_s29 = sshll.u32 %s2567_s3, 4  ;;  %s178_s26 = int_to_ptr.vmem [resolvable:$true] %s177_s26  ;;  %s1562_s29 = int_to_ptr.vmem [resolvable:$true] %s198_s29 }
  0x13   : > { %p1432_p6 = scmp.ne.s32.totalorder %s189_s21, %s1431_s6  ;;  %p1433_p7 = pneg %p1558_p5 }
  0x14   : > { %p1439_p10 = scmp.lt.s32.totalorder %s189_s21, %s189_s21  ;;  %p1440_p11 = scmp.lt.s32.totalorder %s1431_s6, %s1431_s6 }
  0x15   : > { %p1434_p8 = pnand %p1433_p7, %p1432_p6 }
  0x16   : > { %p1441_p12 = por %p1440_p11, %p1439_p10 }
  0x17   : > { %p1435_p9 = pneg %p1434_p8 }
  0x19   : > { %p1442_p13 = pnand %p1441_p12, %p1435_p9 }
  0x1b   : > { %1445 = shalt.err (!%p1442_p13)
}
  0x1c   : > { %s1492_s7 = smov [#allocation4]   ;;  %s1446_s8 = scalar_lea.vmem %s178_s26, 16 }
  0x1d   : > { %1405 = dma.vmem_to_smem (!%p1558_p5), %s189_s21, 16, %s1492_s7, [#allocation5]  }
  0x1e   : > { %p1447_p0 = scmp.ne.s32.totalorder %s178_s26, %s1446_s8  ;;  %p1454_p2 = scmp.lt.s32.totalorder %s178_s26, %s178_s26 }
  0x1f   : > { %p1455_p3 = scmp.lt.s32.totalorder %s1446_s8, %s1446_s8 }
  0x20   : > { %p1449_p1 = pnand %p1447_p0, %p1433_p7 }
  0x21   : > { %p1456_p6 = por %p1455_p3, %p1454_p2 }
  0x22   : > { %p1450_p4 = pneg %p1449_p1 }
  0x24   : > { %p1457_p8 = pnand %p1456_p6, %p1450_p4 }
  0x26   : > { %1460 = shalt.err (!%p1457_p8)
}
  0x27   : > { %s1493_s9 = smov [#allocation2]   ;;  %s1461_s10 = scalar_lea.vmem %s1562_s29, 384 }
  0x28   : > { %1402 = dma.vmem_to_smem (!%p1558_p5), %s178_s26, 16, %s1493_s9, [#allocation3]  }
  0x29   : > { %p1462_p9 = scmp.ne.s32.totalorder %s1562_s29, %s1461_s10  ;;  %p1469_p12 = scmp.lt.s32.totalorder %s1562_s29, %s1562_s29 }
  0x2a   : > { %p1470_p13 = scmp.lt.s32.totalorder %s1461_s10, %s1461_s10 }
  0x2b   : > { %p1464_p10 = pnand %p1462_p9, %p1433_p7 }
  0x2c   : > { %p1471_p2 = por %p1470_p13, %p1469_p12 }
  0x2d   : > { %p1465_p11 = pneg %p1464_p10 }
  0x2f   : > { %p1472_p3 = pnand %p1471_p2, %p1465_p11 }
  0x31   : > { %1475 = shalt.err (!%p1472_p3)
}
  0x32   : > { %s1494_s11 = smov [#allocation6]   ;;  %s1495_s12 = smov 128  }
  0x33   : > { %s1496_s13 = smov 8   ;;  %p2569_p0 = scmp.ne.s32.totalorder %s2565_s23, 0 }
  0x34   : > { %1408 = dma.vmem_to_smem (!%p1558_p5), %s1562_s29, 384, %s1494_s11, [#allocation5], %s1495_s12, %s1495_s12, %s1496_s13  }
  0x35   : > { %222 = sbr.rel (%p2569_p0) target bundleno = 570 (0x23a), region = 36 }
  0x3c   : > { %p2570_p1 = scmp.eq.s32.totalorder %s1539_s22, 0 }
  0x3e   : > { %1481 = dma.done.wait (%p2570_p1), [#allocation3], 16   ;;  %p2571_p7 = pmov %p2570_p1 }
  0x3f   : > { %p2572_p4 = pmov %p2570_p1 }
  0x40   : > { %1483 = vsyncadd (%p2571_p7), [#allocation3], 4294967280 }
  0x41   : > { %1485 = dma.done.wait (%p2572_p4), [#allocation5], 400   ;;  %p2573_p6 = pmov %p2570_p1 }
  0x43   : > { %1487 = vsyncadd (%p2573_p6), [#allocation5], 4294966896 }
  0x44   : > { %236 = sfence }
  0x45   : > { %p263_p8 = scmp.lt.s32.totalorder %s1539_s22, 1  ;;  %s290_s14 = sld [smem:[#allocation2]]  ;;  %v277_v0 = vlaneseq  ;;  %vm306_vm6 = vcmask 1047680   ;;  %vm1068_vm11 = vcmask 130048   ;;  %vm1080_vm12 = vcmask 122880  }
  0x46   : > { %s294_s15 = sld [smem:[#allocation4]]  ;;  %s1339_s16 = sld [smem:[#allocation2 + $0x1]] }
  0x47   : > { %s2711_s22 = smov (!%p263_p8, %s1539_s22), 1  ;;  %s1340_s17 = sld [smem:[#allocation4 + $0x1]]  ;;  %v281_v1 = vand.u32 127, %v277_v0  ;;  %v1665_v56 = vshrl.u32 %v277_v0, 7 }
  0x48   : > { %2574 = sst [smem:[#allocation10_spill]] %s2711_s22  ;;  %s1385_s19 = sshll.u32 %s2711_s22, 5 }
  0x49   : > { %s2575_s0 = sld [smem:[#allocation44_spill]]  ;;  %vm286_vm0 = vcmp.lt.s32.totalorder %v281_v1, 15  ;;  %vm287_vm1 = vcmp.gt.s32.totalorder %v281_v1, 0  ;;  %s1497_s24 = smov 16   ;;  %v1682_v61 = vadd.s32 8, %v1665_v56  ;;  %vm284_vm8 = vcmp.gt.s32.totalorder %v1665_v56, 0 }
  0x4a   : > { %s1498_s25 = smov 113   ;;  %s1499_s26 = smov 127   ;;  %vm331_vm9 = vcmp.lt.s32.totalorder %v1665_v56, 1  ;;  %vm418_vm10 = vcmp.lt.s32.totalorder %v1665_v56, 7 }
  0x4b   : > { %v291_v3 = vstv %s290_s14  ;;  %vm283_vm7 = vcmp.lt.s32.totalorder %v1682_v61, 15  ;;  %s1305_s27 = sld [smem:[#allocation6 + $0x300]]  ;;  %s1306_s28 = sld [smem:[#allocation6 + $0x301]] }
  0x4c   : > { %v295_v6 = vstv %s294_s15  ;;  %v679_v12 = vstv %s1339_s16  ;;  %s1307_s29 = sld [smem:[#allocation6 + $0x302]]  ;;  %s1308_s30 = sld [smem:[#allocation6 + $0x303]] }
  0x4d   : > { %v683_v13 = vstv %s1340_s17  ;;  %s1329_s6 = sld [smem:[#allocation6 + $0x500]]  ;;  %s1330_s7 = sld [smem:[#allocation6 + $0x501]] }
  0x4e   : > { %s1331_s8 = sld [smem:[#allocation6 + $0x502]]  ;;  %s1332_s9 = sld [smem:[#allocation6 + $0x503]] }
  0x4f   : > { %s267_s23 = scalar_lea.vmem %s2575_s0, %s1385_s19  ;;  %s1345_s10 = sld [smem:[#allocation6 + $0x380]] }
  0x50   : > { %v289_v2 = vld [vmem:[%s267_s23 + $0x8] sm:$0xff]  ;;  %v288_v4 = vld [vmem:[%s267_s23] sm:$0xff]  ;;  %v1338_v8 = vld [vmem:[%s267_s23 + $0x18] sm:$0xff]  ;;  %s1346_s11 = sld [smem:[#allocation6 + $0x381]]  ;;  %s1347_s12 = sld [smem:[#allocation6 + $0x382]] }
  0x51   : > { %v293_v5 = vmul.f32 %v291_v3, %v289_v2  ;;  %v292_v7 = vmul.f32 %v291_v3, %v288_v4  ;;  %v1337_v9 = vld [vmem:[%s267_s23 + $0x10] sm:$0xff]  ;;  %v681_v14 = vmul.f32 %v1338_v8, %v679_v12  ;;  %s1348_s13 = sld [smem:[#allocation6 + $0x383]]  ;;  %s1369_s14 = sld [smem:[#allocation6 + $0x580]] }
  0x52   : > { %v680_v15 = vmul.f32 %v1337_v9, %v679_v12  ;;  %s1370_s15 = sld [smem:[#allocation6 + $0x581]]  ;;  %s1371_s16 = sld [smem:[#allocation6 + $0x582]] }
  0x53   : > { %v297_v10 = vadd.f32 %v295_v6, %v293_v5  ;;  %v296_v11 = vadd.f32 %v295_v6, %v292_v7  ;;  %v685_v18 = vadd.f32 %v683_v13, %v681_v14  ;;  %v365_v14 = vstv %s1306_s28  ;;  %s1372_s17 = sld [smem:[#allocation6 + $0x583]]  ;;  %s1797_s19 = sld [smem:[#allocation6]] }
  0x54   : > { %v684_v19 = vadd.f32 %v683_v13, %v680_v15  ;;  %s1799_s20 = sld [smem:[#allocation6 + $0x1]]  ;;  %s1801_s21 = sld [smem:[#allocation6 + $0x2]] }
  0x55   : > { %vm299_vm2 = vcmp.gt.f32.partialorder %v297_v10, 0.0  ;;  %v301_v16 = vmul.f32 0.1, %v297_v10  ;;  %vm298_vm3 = vcmp.gt.f32.partialorder %v296_v11, 0.0  ;;  %v300_v17 = vmul.f32 0.1, %v296_v11 }
  0x56   : > { %vm687_vm4 = vcmp.gt.f32.partialorder %v685_v18, 0.0  ;;  %v689_v24 = vmul.f32 0.1, %v685_v18  ;;  %vm686_vm5 = vcmp.gt.f32.partialorder %v684_v19, 0.0  ;;  %v688_v25 = vmul.f32 0.1, %v684_v19 }
  0x57   : > { %v1605_v20 = vsel %vm299_vm2, %v297_v10, %v301_v16  ;;  %v1607_v21 = vsel %vm298_vm3, %v296_v11, %v300_v17  ;;  %v351_v11 = vstv %s1305_s27  ;;  %v379_v17 = vstv %s1307_s29  ;;  %s1803_s23 = sld [smem:[#allocation6 + $0x600]]  ;;  %s1809_s27 = sld [smem:[#allocation6 + $0x602]] }
  0x58   : > { %v305_v22 = vsel %vm286_vm0, %v1605_v20, 0.0  ;;  %v530_v23 = vsel %vm287_vm1, %v1605_v20, 0.0  ;;  %v304_v26 = vsel %vm286_vm0, %v1607_v21, 0.0  ;;  %v529_v27 = vsel %vm287_vm1, %v1607_v21, 0.0  ;;  %s1811_s28 = sld [smem:[#allocation6 + $0x603]]  ;;  %s1813_s29 = sld [smem:[#allocation6 + $0x200]] }
  0x59   : > { %310 = vrot.lane.b32.xlu0 %v305_v22, %s1497_s24  ;;  %534 = vrot.lane.b32.xlu1 %v530_v23, %s1497_s24  ;;  %v1619_v28 = vsel %vm687_vm4, %v685_v18, %v689_v24  ;;  %v1621_v29 = vsel %vm686_vm5, %v684_v19, %v688_v25  ;;  %v582_v25 = vstv %s1329_s6  ;;  %s1819_s6 = sld [smem:[#allocation6 + $0x800]]  ;;  %s1857_s1 = sld [smem:[#allocation6 + $0x83]] }
  0x5a   : > { %v693_v30 = vsel %vm286_vm0, %v1619_v28, 0.0  ;;  %v692_v31 = vsel %vm286_vm0, %v1621_v29, 0.0  ;;  %v923_v32 = vsel %vm287_vm1, %v1619_v28, 0.0  ;;  %v922_v33 = vsel %vm287_vm1, %v1621_v29, 0.0  ;;  %s1855_s0 = sld [smem:[#allocation6 + $0x680]]  ;;  %s1865_s2 = sld [smem:[#allocation6 + $0x401]] }
  0x5b   : > { %s1867_s3 = sld [smem:[#allocation6 + $0x681]]  ;;  %s1872_s18 = sld [smem:[#allocation6 + $0x102]] }
  0x5c   : > { %s1875_s5 = sld [smem:[#allocation6 + $0x682]]  ;;  %s1881_s4 = sld [smem:[#allocation6 + $0x701]] }
  0x5d   : > { %307 = vrot.lane.b32.xlu0 %v304_v26, %s1497_s24  ;;  %531 = vrot.lane.b32.xlu1 %v529_v27, %s1497_s24  ;;  %2577 = sst [smem:[#allocation12_spill]] %s1809_s27  ;;  %s1891_s27 = sld [smem:[#allocation6 + $0x281]] }
  0x5e   : > { %2578 = sst [smem:[#allocation13_spill]] %s1811_s28  ;;  %s1883_s22 = sld [smem:[#allocation6 + $0x683]] }
  0x5f   : > { %2579 = sst [smem:[#allocation14_spill]] %s1813_s29  ;;  %s1908_s29 = sld [smem:[#allocation6 + $0x103]] }
  0x60   : > { %2581 = sst [smem:[#allocation16_spill]] %s1819_s6  ;;  %s1904_s6 = sld [smem:[#allocation6 + $0x880]] }
  0x61   : > { %697 = vrot.lane.b32.xlu0 %v693_v30, %s1497_s24  ;;  %694 = vrot.lane.b32.xlu1 %v692_v31, %s1497_s24  ;;  %s1914_s28 = sld [smem:[#allocation6 + $0x881]] }
  0x65   : > { %927 = vrot.lane.b32.xlu0 %v923_v32, %s1497_s24  ;;  %924 = vrot.lane.b32.xlu1 %v922_v33, %s1497_s24 }
  0xcb   : > { %v311_v34 = vpop.permute.xlu0 %310  ;;  %v535_v35 = vpop.permute.xlu1 %534 }
  0xcc   : > { %v312_v36 = vsel %vm306_vm6, %v311_v34, %v305_v22  ;;  %v536_v37 = vsel %vm306_vm6, %v535_v35, %v530_v23 }
  0xcd   : > { %315 = vrot.lane.b32.xlu0 %v312_v36, %s1497_s24  ;;  %v624_v36 = vstv %s1332_s9  ;;  %s1825_s9 = sld [smem:[#allocation6 + $0x203]] }
  0xcf   : > { %v308_v38 = vpop.permute.xlu0 %307  ;;  %v532_v39 = vpop.permute.xlu1 %531 }
  0xd0   : > { %v309_v40 = vsel %vm306_vm6, %v308_v38, %v304_v26  ;;  %v533_v41 = vsel %vm306_vm6, %v532_v39, %v529_v27  ;;  %v745_v39 = vstv %s1345_s10  ;;  %s1827_s10 = sld [smem:[#allocation6 + $0x803]] }
  0xd1   : > { %539 = vrot.lane.b32.xlu0 %v536_v37, %s1497_s24  ;;  %313 = vrot.lane.b32.xlu1 %v309_v40, %s1497_s24 }
  0xd3   : > { %v698_v42 = vpop.permute.xlu0 %697  ;;  %v695_v43 = vpop.permute.xlu1 %694  ;;  %2582 = sst [smem:[#allocation17_spill]] %s1825_s9  ;;  %s1952_s9 = sld [smem:[#allocation6 + $0x883]] }
  0xd4   : > { %v699_v44 = vsel %vm306_vm6, %v698_v42, %v693_v30  ;;  %v696_v45 = vsel %vm306_vm6, %v695_v43, %v692_v31  ;;  %v759_v42 = vstv %s1346_s11  ;;  %s1829_s11 = sld [smem:[#allocation6 + $0x80]] }
  0xd5   : > { %537 = vrot.lane.b32.xlu1 %v533_v41, %s1497_s24  ;;  %702 = vrot.lane.b32.xlu0 %v699_v44, %s1497_s24 }
  0xd6   : > { %2583 = sst [smem:[#allocation18_spill]] %s1827_s10  ;;  %s1935_s10 = sld [smem:[#allocation6 + $0x403]] }
  0xd7   : > { %v928_v46 = vpop.permute.xlu0 %927  ;;  %v925_v47 = vpop.permute.xlu1 %924 }
  0xd8   : > { %v929_v48 = vsel %vm306_vm6, %v928_v46, %v923_v32  ;;  %v926_v49 = vsel %vm306_vm6, %v925_v47, %v922_v33 }
  0xd9   : > { %700 = vrot.lane.b32.xlu1 %v696_v45, %s1497_s24  ;;  %932 = vrot.lane.b32.xlu0 %v929_v48, %s1497_s24  ;;  %v773_v45 = vstv %s1347_s12  ;;  %v787_v48 = vstv %s1348_s13  ;;  %s1833_s12 = sld [smem:[#allocation6 + $0x100]]  ;;  %s1835_s13 = sld [smem:[#allocation6 + $0x81]] }
  0xda   : > { %2586 = sst [smem:[#allocation21_spill]] %s1952_s9  ;;  %s2060_s9 = sld [smem:[#allocation6 + $0x482]] }
  0xdd   : > { %930 = vrot.lane.b32.xlu1 %v926_v49, %s1497_s24  ;;  %s1805_s24 = sld [smem:[#allocation6 + $0x3]] }
  0xe3   : > { %2576 = sst [smem:[#allocation11_spill]] %s1805_s24  ;;  %s1889_s24 = sld [smem:[#allocation6 + $0x280]] }
  0xe9   : > { %2584 = sst [smem:[#allocation19_spill]] %s1889_s24  ;;  %s2005_s24 = sld [smem:[#allocation6 + $0x480]] }
 0x13f   : > { %v316_v50 = vpop.permute.xlu0 %315 }
 0x140   : > { %v1654_v51 = vsel %vm306_vm6, %v316_v50, %v305_v22  ;;  %v393_v22 = vstv %s1308_s30  ;;  %s1815_s30 = sld [smem:[#allocation6 + $0x201]] }
 0x141   : > { %412 = vrot.lane.b32.xlu1 %v1654_v51, %s1498_s25  ;;  %v320_v4 = vsel %vm283_vm7, %v1654_v51, 0.0  ;;  %v353_v12 = vmul.f32 %v351_v11, %v1654_v51  ;;  %v367_v16 = vmul.f32 %v365_v14, %v1654_v51  ;;  %v381_v19 = vmul.f32 %v379_v17, %v1654_v51 }
 0x142   : > { %v395_v24 = vmul.f32 %v393_v22, %v1654_v51  ;;  %v975_v51 = vstv %s1369_s14  ;;  %s1840_s14 = sld [smem:[#allocation6 + $0x400]] }
 0x143   : > { %v314_v52 = vpop.permute.xlu1 %313  ;;  %v540_v53 = vpop.permute.xlu0 %539 }
 0x144   : > { %v1659_v54 = vsel %vm306_vm6, %v314_v52, %v304_v26  ;;  %v1662_v55 = vsel %vm306_vm6, %v540_v53, %v530_v23 }
 0x145   : > { %323 = vrot.lane.b32.xlu0 %v1659_v54, %s1498_s25  ;;  %643 = vrot.lane.b32.xlu1 %v1662_v55, %s1499_s26  ;;  %v406_v5 = vsel %vm284_vm8, %v1659_v54, 0.0  ;;  %v544_v6 = vsel %vm283_vm7, %v1662_v55, 0.0  ;;  %v352_v15 = vmul.f32 %v351_v11, %v1659_v54  ;;  %v366_v18 = vmul.f32 %v365_v14, %v1659_v54 }
 0x146   : > { %v380_v23 = vmul.f32 %v379_v17, %v1659_v54  ;;  %v394_v26 = vmul.f32 %v393_v22, %v1659_v54  ;;  %v626_v38 = vmul.f32 %v624_v36, %v1662_v55  ;;  %v989_v54 = vstv %s1370_s15  ;;  %2580 = sst [smem:[#allocation15_spill]] %s1815_s30  ;;  %s1842_s15 = sld [smem:[#allocation6 + $0x82]] }
 0x147   : > { %v538_v57 = vpop.permute.xlu1 %537  ;;  %v703_v58 = vpop.permute.xlu0 %702  ;;  %v502_v17 = vrot.slane %v1605_v20, 1  ;;  %s1906_s30 = sld [smem:[#allocation6 + $0x282]] }
 0x148   : > { %v1672_v59 = vsel %vm306_vm6, %v538_v57, %v529_v27  ;;  %v1675_v60 = vsel %vm306_vm6, %v703_v58, %v693_v30  ;;  %v584_v27 = vmul.f32 %v582_v25, %v1662_v55  ;;  %v596_v30 = vstv %s1330_s7  ;;  %s1821_s7 = sld [smem:[#allocation6 + $0x801]] }
 0x149   : > { %547 = vrot.lane.b32.xlu0 %v1672_v59, %s1499_s26  ;;  %806 = vrot.lane.b32.xlu1 %v1675_v60, %s1498_s25  ;;  %v637_v7 = vsel %vm284_vm8, %v1672_v59, 0.0  ;;  %v707_v8 = vsel %vm283_vm7, %v1675_v60, 0.0  ;;  %v597_v34 = vmul.f32 %v596_v30, %v1672_v59  ;;  %v625_v40 = vmul.f32 %v624_v36, %v1672_v59 }
 0x14a   : > { %v747_v41 = vmul.f32 %v745_v39, %v1675_v60  ;;  %v761_v44 = vmul.f32 %v759_v42, %v1675_v60  ;;  %v775_v47 = vmul.f32 %v773_v45, %v1675_v60  ;;  %v789_v50 = vmul.f32 %v787_v48, %v1675_v60 }
 0x14b   : > { %v701_v62 = vpop.permute.xlu1 %700  ;;  %v933_v63 = vpop.permute.xlu0 %932  ;;  %v1003_v58 = vstv %s1371_s16  ;;  %s1845_s16 = sld [smem:[#allocation6 + $0x101]] }
 0x14c   : > { %v1685_v0 = vsel %vm306_vm6, %v701_v62, %v692_v31  ;;  %v1688_v1 = vsel %vm306_vm6, %v933_v63, %v923_v32  ;;  %v583_v31 = vmul.f32 %v582_v25, %v1672_v59  ;;  %v598_v32 = vmul.f32 %v596_v30, %v1662_v55 }
 0x14d   : > { %710 = vrot.lane.b32.xlu0 %v1685_v0, %s1498_s25  ;;  %1036 = vrot.lane.b32.xlu1 %v1688_v1, %s1499_s26  ;;  %v800_v9 = vsel %vm284_vm8, %v1685_v0, 0.0  ;;  %v937_v10 = vsel %vm283_vm7, %v1688_v1, 0.0  ;;  %v746_v43 = vmul.f32 %v745_v39, %v1685_v0  ;;  %v760_v46 = vmul.f32 %v759_v42, %v1685_v0 }
 0x14e   : > { %v774_v49 = vmul.f32 %v773_v45, %v1685_v0  ;;  %v788_v52 = vmul.f32 %v787_v48, %v1685_v0  ;;  %v977_v53 = vmul.f32 %v975_v51, %v1688_v1  ;;  %v991_v57 = vmul.f32 %v989_v54, %v1688_v1 }
 0x14f   : > { %v931_v2 = vpop.permute.xlu1 %930  ;;  %v1005_v60 = vmul.f32 %v1003_v58, %v1688_v1  ;;  %v1017_v62 = vstv %s1372_s17  ;;  %s1847_s17 = sld [smem:[#allocation6 + $0x700]] }
 0x150   : > { %v1696_v3 = vsel %vm306_vm6, %v931_v2, %v922_v33  ;;  %v610_v33 = vstv %s1331_s8  ;;  %v1019_v0 = vmul.f32 %v1017_v62, %v1688_v1  ;;  %s1823_s8 = sld [smem:[#allocation6 + $0x802]] }
 0x151   : > { %940 = vrot.lane.b32.xlu0 %v1696_v3, %s1499_s26  ;;  %325 = vrot.lane.b32.xlu1 %v320_v4, %s1498_s25  ;;  %v1030_v13 = vsel %vm284_vm8, %v1696_v3, 0.0  ;;  %v612_v35 = vmul.f32 %v610_v33, %v1662_v55  ;;  %v611_v37 = vmul.f32 %v610_v33, %v1672_v59  ;;  %v976_v55 = vmul.f32 %v975_v51, %v1696_v3 }
 0x152   : > { %v990_v59 = vmul.f32 %v989_v54, %v1696_v3  ;;  %v1004_v63 = vmul.f32 %v1003_v58, %v1696_v3  ;;  %v1018_v2 = vmul.f32 %v1017_v62, %v1696_v3  ;;  %v446_v3 = vsel %vm283_vm7, %v1605_v20, 0.0 }
 0x153   : > { %v1853_v4 = vsel %vm284_vm8, %v1607_v21, 0.0  ;;  %v458_v36 = vstv %s1845_s16  ;;  %s1933_s16 = sld [smem:[#allocation6 + $0x702]]  ;;  %v512_v54 = vstv %s1881_s4  ;;  %s1994_s4 = sld [smem:[#allocation6 + $0x181]]  ;;  %v494_v58 = vstv %s1935_s10 }
 0x154   : > { %s2027_s10 = sld [smem:[#allocation6 + $0x780]] }
 0x155   : > { %410 = vrot.lane.b32.xlu0 %v406_v5, %s1498_s25  ;;  %549 = vrot.lane.b32.xlu1 %v544_v6, %s1499_s26  ;;  %v506_v39 = vstv %s1847_s17  ;;  %s1950_s17 = sld [smem:[#allocation6 + $0x283]] }
 0x159   : > { %641 = vrot.lane.b32.xlu0 %v637_v7, %s1499_s26  ;;  %712 = vrot.lane.b32.xlu1 %v707_v8, %s1498_s25  ;;  %v447_v8 = vrot.slane %v1607_v21, 7  ;;  %v518_v61 = vstv %s1933_s16  ;;  %s2043_s16 = sld [smem:[#allocation6 + $0x481]] }
 0x15d   : > { %804 = vrot.lane.b32.xlu0 %v800_v9, %s1498_s25  ;;  %942 = vrot.lane.b32.xlu1 %v937_v10, %s1499_s26  ;;  %v448_v9 = vrot.slane %v446_v3, 7 }
 0x161   : > { %1034 = vrot.lane.b32.xlu0 %v1030_v13, %s1499_s26  ;;  %358 = vrot.lane.b32.xlu1 %v353_v12, %s1498_s25  ;;  %v875_v12 = vstv %s2043_s16 }
 0x165   : > { %356 = vrot.lane.b32.xlu0 %v352_v15, %s1498_s25  ;;  %372 = vrot.lane.b32.xlu1 %v367_v16, %s1498_s25  ;;  %v501_v16 = vrot.slane %v1853_v4, 1 }
 0x169   : > { %370 = vrot.lane.b32.xlu0 %v366_v18, %s1498_s25  ;;  %386 = vrot.lane.b32.xlu1 %v381_v19, %s1498_s25 }
 0x16d   : > { %384 = vrot.lane.b32.xlu0 %v380_v23, %s1498_s25  ;;  %400 = vrot.lane.b32.xlu1 %v395_v24, %s1498_s25  ;;  %v2079_v23 = vmul.f32 %v494_v58, %v1607_v21 }
 0x16f   : > { %2587 = vst [vmem:[#allocation22_spill] sm:$0xff] %v2079_v23 }
 0x171   : > { %398 = vrot.lane.b32.xlu0 %v394_v26, %s1498_s25  ;;  %589 = vrot.lane.b32.xlu1 %v584_v27, %s1499_s26  ;;  %v1899_v26 = vsel %vm331_vm9, %v447_v8, %v448_v9  ;;  %v452_v27 = vstv %s1833_s12  ;;  %s1926_s12 = sld [smem:[#allocation6 + $0x402]] }
 0x175   : > { %587 = vrot.lane.b32.xlu0 %v583_v31, %s1499_s26  ;;  %603 = vrot.lane.b32.xlu1 %v598_v32, %s1499_s26  ;;  %v476_v32 = vstv %s1840_s14  ;;  %s1928_s14 = sld [smem:[#allocation6 + $0x882]]  ;;  %v851_v31 = vstv %s1994_s4  ;;  %s2099_s4 = sld [smem:[#allocation6 + $0x783]] }
 0x179   : > { %601 = vrot.lane.b32.xlu0 %v597_v34, %s1499_s26  ;;  %617 = vrot.lane.b32.xlu1 %v612_v35, %s1499_s26  ;;  %v895_v35 = vrot.slane %v1619_v28, 1 }
 0x17b   : > { %2585 = sst [smem:[#allocation20_spill]] %s1928_s14  ;;  %s2045_s14 = sld [smem:[#allocation6 + $0x781]] }
 0x17d   : > { %615 = vrot.lane.b32.xlu0 %v611_v37, %s1499_s26  ;;  %631 = vrot.lane.b32.xlu1 %v626_v38, %s1499_s26  ;;  %v1919_v37 = vsel %vm331_vm9, %v448_v9, %v447_v8  ;;  %v1923_v38 = vsel %vm418_vm10, %v502_v17, %v501_v16  ;;  %v839_v8 = vsel %vm283_vm7, %v1619_v28, 0.0 }
 0x17e   : > { %v1958_v51 = vmul.f32 %v452_v27, %v1919_v37  ;;  %v1989_v4 = vmul.f32 %v458_v36, %v1919_v37  ;;  %v841_v9 = vrot.slane %v839_v8, 7  ;;  %v2048_v8 = vmul.f32 %v518_v61, %v1923_v38 }
 0x181   : > { %629 = vrot.lane.b32.xlu0 %v625_v40, %s1499_s26  ;;  %752 = vrot.lane.b32.xlu1 %v747_v41, %s1498_s25  ;;  %v1931_v40 = vmul.f32 %v452_v27, %v1899_v26  ;;  %v905_v14 = vstv %s2045_s14  ;;  %s2636_s14 = sld [smem:[#allocation18_spill]] }
 0x185   : > { %750 = vrot.lane.b32.xlu0 %v746_v43, %s1498_s25  ;;  %766 = vrot.lane.b32.xlu1 %v761_v44, %s1498_s25  ;;  %v840_v43 = vrot.slane %v1621_v29, 7 }
 0x187   : > { %v843_v30 = vsel %vm331_vm9, %v841_v9, %v840_v43 }
 0x188   : > { %v2112_v13 = vmul.f32 %v851_v31, %v843_v30 }
 0x189   : > { %764 = vrot.lane.b32.xlu0 %v760_v46, %s1498_s25  ;;  %780 = vrot.lane.b32.xlu1 %v775_v47, %s1498_s25  ;;  %v1945_v46 = vmul.f32 %v476_v32, %v1605_v20  ;;  %v482_v47 = vstv %s1865_s2  ;;  %s1967_s2 = sld [smem:[#allocation6 + $0x703]] }
 0x18a   : > { %v2041_v48 = vmul.f32 %v482_v47, %v1607_v21  ;;  %2593 = vst [vmem:[#allocation28_spill] sm:$0xff] %v2112_v13 }
 0x18d   : > { %778 = vrot.lane.b32.xlu0 %v774_v49, %s1498_s25  ;;  %794 = vrot.lane.b32.xlu1 %v789_v50, %s1498_s25  ;;  %v1955_v50 = vmul.f32 %v458_v36, %v1899_v26  ;;  %v892_v49 = vsel %vm284_vm8, %v1621_v29, 0.0 }
 0x191   : > { %792 = vrot.lane.b32.xlu0 %v788_v52, %s1498_s25  ;;  %982 = vrot.lane.b32.xlu1 %v977_v53, %s1499_s26  ;;  %s1807_s25 = sld [smem:[#allocation6 + $0x601]]  ;;  %v464_v52 = vstv %s1872_s18  ;;  %v1962_v53 = vmul.f32 %v506_v39, %v1923_v38  ;;  %s1977_s18 = sld [smem:[#allocation6 + $0x180]] }
 0x192   : > { %v1986_v3 = vmul.f32 %v464_v52, %v1899_v26  ;;  %v2032_v36 = vmul.f32 %v464_v52, %v1919_v37  ;;  %v2053_v52 = vmul.f32 %v494_v58, %v1605_v20 }
 0x195   : > { %980 = vrot.lane.b32.xlu0 %v976_v55, %s1499_s26  ;;  %996 = vrot.lane.b32.xlu1 %v991_v57, %s1499_s26  ;;  %v503_v55 = vsel %vm418_vm10, %v501_v16, %v502_v17  ;;  %v470_v16 = vstv %s1908_s29  ;;  %v1999_v17 = vmul.f32 %v512_v54, %v1923_v38  ;;  %s2013_s29 = sld [smem:[#allocation6 + $0x182]] }
 0x196   : > { %v2001_v27 = vmul.f32 %v506_v39, %v503_v55  ;;  %v2035_v42 = vmul.f32 %v470_v16, %v1919_v37  ;;  %v2050_v62 = vmul.f32 %v512_v54, %v503_v55  ;;  %v524_v37 = vstv %s1967_s2  ;;  %s2083_s2 = sld [smem:[#allocation6 + $0x782]] }
 0x197   : > { %v845_v41 = vstv %s1977_s18  ;;  %v2076_v22 = vmul.f32 %v518_v61, %v503_v55  ;;  %s2090_s18 = sld [smem:[#allocation6 + $0x483]] }
 0x199   : > { %994 = vrot.lane.b32.xlu0 %v990_v59, %s1499_s26  ;;  %1010 = vrot.lane.b32.xlu1 %v1005_v60, %s1499_s26  ;;  %v1972_v59 = vmul.f32 %v482_v47, %v1605_v20  ;;  %v1975_v60 = vmul.f32 %v476_v32, %v1607_v21  ;;  %v2020_v32 = vmul.f32 %v470_v16, %v1899_v26  ;;  %v894_v47 = vrot.slane %v892_v49, 1 }
 0x19a   : > { %v842_v16 = vsel %vm331_vm9, %v840_v43, %v841_v9  ;;  %v2074_v49 = vmul.f32 %v524_v37, %v1923_v38  ;;  %v869_v38 = vstv %s2005_s24  ;;  %s2612_s24 = sld [smem:[#allocation12_spill]] }
 0x19b   : > { %v2087_v18 = vmul.f32 %v845_v41, %v842_v16  ;;  %v2092_v43 = vmul.f32 %v851_v31, %v842_v16  ;;  %v897_v58 = vsel %vm418_vm10, %v895_v35, %v894_v47  ;;  %v2115_v15 = vmul.f32 %v869_v38, %v1619_v28 }
 0x19c   : > { %v2129_v7 = vsel %vm418_vm10, %v894_v47, %v895_v35  ;;  %v2597_v31 = vstv %s1797_s19  ;;  %v2144_v35 = vmul.f32 %v875_v12, %v1619_v28  ;;  %v2146_v47 = vmul.f32 %v905_v14, %v897_v58 }
 0x19d   : > { %1008 = vrot.lane.b32.xlu0 %v1004_v63, %s1499_s26  ;;  %1024 = vrot.lane.b32.xlu1 %v1019_v0, %s1499_s26  ;;  %v488_v63 = vstv %s1926_s12  ;;  %s2022_s12 = sld [smem:[#allocation6 + $0x183]]  ;;  %2589 = vst [vmem:[#allocation24_spill] sm:$0xff] %v2087_v18  ;;  %2590 = vst [vmem:[#allocation25_spill] sm:$0xff] %v2092_v43 }
 0x19e   : > { %v2038_v26 = vmul.f32 %v488_v63, %v1605_v20  ;;  %v2068_v20 = vmul.f32 %v488_v63, %v1607_v21  ;;  %v2094_v21 = vmul.f32 %v845_v41, %v843_v30  ;;  %2594 = vst [vmem:[#allocation29_spill] sm:$0xff] %v2115_v15  ;;  %v881_v15 = vstv %s2060_s9  ;;  %2601 = vst [vmem:[#allocation35_spill] sm:$0xff] %v2144_v35  ;;  %s2634_s9 = sld [smem:[#allocation17_spill]] }
 0x19f   : > { %2602 = vst [vmem:[#allocation36_spill] sm:$0xff] %v2146_v47  ;;  %v2165_v47 = vmul.f32 %v881_v15, %v1619_v28 }
 0x1a0   : > { %2591 = vst [vmem:[#allocation26_spill] sm:$0xff] %v2094_v21 }
 0x1a1   : > { %1022 = vrot.lane.b32.xlu0 %v1018_v2, %s1499_s26  ;;  %s1817_s26 = sld [smem:[#allocation6 + $0x202]]  ;;  %2607 = vst [vmem:[#allocation40_spill] sm:$0xff] %v2165_v47 }
 0x1a3   : > { %v863_v41 = vstv %s2022_s12 }
 0x1a4   : > { %v2134_v21 = vmul.f32 %v863_v41, %v842_v16  ;;  %v2162_v35 = vmul.f32 %v863_v41, %v843_v30  ;;  %v2180_v41 = vmul.f32 %v875_v12, %v1621_v29  ;;  %v2198_v12 = vmul.f32 %v881_v15, %v1621_v29 }
 0x1a6   : > { %2598 = vst [vmem:[#allocation32_spill] sm:$0xff] %v2134_v21  ;;  %v2604_v21 = vstv %s1803_s23  ;;  %2606 = vst [vmem:[#allocation39_spill] sm:$0xff] %v2162_v35 }
 0x1b3   : > { %v1831_v1 = vpop.permute.xlu1 %412 }
 0x1b7   : > { %v1859_v5 = vpop.permute.xlu1 %643  ;;  %v1861_v6 = vpop.permute.xlu0 %323 }
 0x1b8   : > { %v329_v63 = vrot.slane %v1861_v6, 7  ;;  %v417_v6 = vrot.slane %v1831_v1, 1 }
 0x1bb   : > { %v1893_v24 = vpop.permute.xlu1 %806  ;;  %v1895_v25 = vpop.permute.xlu0 %547 }
 0x1bf   : > { %v1940_v44 = vpop.permute.xlu1 %1036  ;;  %v1942_v45 = vpop.permute.xlu0 %710 }
 0x1c3   : > { %v1981_v0 = vpop.permute.xlu1 %325  ;;  %v1983_v2 = vpop.permute.xlu0 %940 }
 0x1c4   : > { %v330_v34 = vrot.slane %v1981_v0, 7  ;;  %v2081_v0 = vmul.f32 %v524_v37, %v503_v55  ;;  %v857_v55 = vstv %s2013_s29  ;;  %v899_v37 = vstv %s2027_s10 }
 0x1c5   : > { %v2123_v11 = vmul.f32 %v857_v55, %v842_v16  ;;  %v2125_v10 = vmul.f32 %v857_v55, %v843_v30  ;;  %v2136_v43 = vmul.f32 %v899_v37, %v897_v58  ;;  %v2149_v16 = vmul.f32 %v869_v38, %v1621_v29 }
 0x1c6   : > { %2588 = vst [vmem:[#allocation23_spill] sm:$0xff] %v2081_v0  ;;  %v2104_v9 = vsel %vm331_vm9, %v329_v63, %v330_v34  ;;  %v887_v38 = vstv %s2090_s18  ;;  %v2610_v0 = vstv %s1807_s25 }
 0x1c7   : > { %v2015_v57 = vpop.permute.xlu1 %549  ;;  %v2017_v39 = vpop.permute.xlu0 %410  ;;  %2595 = vst [vmem:[#allocation30_spill] sm:$0xff] %v2123_v11  ;;  %2596 = vst [vmem:[#allocation31_spill] sm:$0xff] %v2125_v10  ;;  %v337_v13 = vmul.f32 %v2597_v31, %v2104_v9  ;;  %v333_v11 = vsel %vm331_vm9, %v330_v34, %v329_v63  ;;  %v2155_v34 = vmul.f32 %v899_v37, %v2129_v7  ;;  %v911_v63 = vstv %s2083_s2 }
 0x1c8   : > { %v416_v19 = vrot.slane %v2017_v39, 1  ;;  %2599 = vst [vmem:[#allocation33_spill] sm:$0xff] %v2136_v43  ;;  %2603 = vst [vmem:[#allocation37_spill] sm:$0xff] %v2149_v16  ;;  %v2609_v16 = vstv %s1797_s19  ;;  %v2177_v30 = vmul.f32 %v911_v63, %v897_v58  ;;  %s2616_s19 = sld [smem:[#allocation11_spill]]  ;;  %v2213_v15 = vmul.f32 %v887_v38, %v1621_v29 }
 0x1c9   : > { %2605 = vst [vmem:[#allocation38_spill] sm:$0xff] %v2155_v34  ;;  %v336_v37 = vmul.f32 %v2609_v16, %v333_v11  ;;  %v917_v34 = vstv %s2099_s4 }
 0x1ca   : > { %v2121_v1 = vsel %vm418_vm10, %v417_v6, %v416_v19  ;;  %v2160_v18 = vsel %vm418_vm10, %v416_v19, %v417_v6  ;;  %2611 = vst [vmem:[#allocation41_spill] sm:$0xff] %v2177_v30  ;;  %v2193_v30 = vmul.f32 %v887_v38, %v1619_v28  ;;  %v2195_v23 = vmul.f32 %v917_v34, %v897_v58 }
 0x1cb   : > { %v2063_v33 = vpop.permute.xlu1 %712  ;;  %v2065_v54 = vpop.permute.xlu0 %641  ;;  %v424_v43 = vmul.f32 %v2604_v21, %v2121_v1  ;;  %v430_v19 = vmul.f32 %v2610_v0, %v2121_v1  ;;  %v2614_v0 = vstv %s1801_s21  ;;  %v2619_v28 = vstv %s1807_s25  ;;  %s2631_s25 = sld [smem:[#allocation16_spill]] }
 0x1cc   : > { %2615 = vst [vmem:[#allocation42_spill] sm:$0xff] %v2195_v23  ;;  %v2210_v23 = vmul.f32 %v911_v63, %v2129_v7 }
 0x1ce   : > { %2620 = vst [vmem:[#allocation43_spill] sm:$0xff] %v2210_v23 }
 0x1cf   : > { %v2106_v61 = vpop.permute.xlu1 %942  ;;  %v2108_v39 = vpop.permute.xlu0 %804 }
 0x1d0   : > { %2592 = vst [vmem:[#allocation27_spill] sm:$0xff] %v2106_v61  ;;  %v345_v61 = vmul.f32 %v2614_v0, %v2104_v9  ;;  %v429_v0 = vmul.f32 %v2619_v28, %v2160_v18 }
 0x1d3   : > { %v359_v55 = vpop.permute.xlu1 %358  ;;  %v2141_v10 = vpop.permute.xlu0 %1034 }
 0x1d4   : > { %2600 = vst [vmem:[#allocation34_spill] sm:$0xff] %v2141_v10  ;;  %v363_v31 = vadd.f32 %v359_v55, %v337_v13  ;;  %v2608_v55 = vstv %s1799_s20 }
 0x1d5   : > { %v341_v21 = vmul.f32 %v2608_v55, %v2104_v9  ;;  %v2613_v55 = vstv %s1803_s23  ;;  %s2621_s23 = sld [smem:[#allocation13_spill]] }
 0x1d6   : > { %v426_v13 = vadd.f32 %v424_v43, %v363_v31  ;;  %v2183_v43 = vmul.f32 %v905_v14, %v2129_v7  ;;  %v423_v35 = vmul.f32 %v2613_v55, %v2160_v18 }
 0x1d7   : > { %v373_v10 = vpop.permute.xlu1 %372  ;;  %v357_v6 = vpop.permute.xlu0 %356 }
 0x1d8   : > { %v456_v31 = vadd.f32 %v1931_v40, %v426_v13  ;;  %v377_v16 = vadd.f32 %v373_v10, %v341_v21  ;;  %v362_v47 = vadd.f32 %v357_v6, %v336_v37  ;;  %v2617_v10 = vstv %s1799_s20  ;;  %s2627_s20 = sld [smem:[#allocation14_spill]] }
 0x1d9   : > { %v340_v13 = vmul.f32 %v2617_v10, %v333_v11  ;;  %v2618_v6 = vstv %s2612_s24 }
 0x1da   : > { %v432_v14 = vadd.f32 %v430_v19, %v377_v16  ;;  %v425_v40 = vadd.f32 %v423_v35, %v362_v47  ;;  %v480_v21 = vadd.f32 %v1945_v46, %v456_v31  ;;  %v436_v55 = vmul.f32 %v2618_v6, %v2121_v1 }
 0x1db   : > { %v387_v37 = vpop.permute.xlu1 %386  ;;  %v371_v58 = vpop.permute.xlu0 %370  ;;  %v554_v31 = vrot.slane %v2015_v57, 7  ;;  %v2622_v16 = vstv %s2616_s19  ;;  %v2623_v6 = vstv %s1801_s21  ;;  %v2625_v57 = vstv %s2612_s24  ;;  %s2628_s21 = sld [smem:[#allocation15_spill]] }
 0x1dc   : > { %v462_v35 = vadd.f32 %v1955_v50, %v432_v14  ;;  %v455_v46 = vadd.f32 %v1958_v51, %v425_v40  ;;  %v391_v47 = vadd.f32 %v387_v37, %v345_v61  ;;  %v376_v19 = vadd.f32 %v371_v58, %v340_v13 }
 0x1dd   : > { %v349_v10 = vmul.f32 %v2622_v16, %v2104_v9  ;;  %v344_v63 = vmul.f32 %v2623_v6, %v333_v11  ;;  %v510_v28 = vadd.f32 %v1962_v53, %v480_v21  ;;  %v553_v51 = vrot.slane %v1895_v25, 7 }
 0x1de   : > { %v438_v23 = vadd.f32 %v436_v55, %v391_v47  ;;  %v431_v29 = vadd.f32 %v429_v0, %v376_v19  ;;  %v486_v38 = vadd.f32 %v1972_v59, %v462_v35  ;;  %v479_v50 = vadd.f32 %v1975_v60, %v455_v46 }
 0x1df   : > { %v401_v14 = vpop.permute.xlu1 %400  ;;  %v2624_v61 = vstv %s2621_s23  ;;  %v435_v13 = vmul.f32 %v2625_v57, %v2160_v18  ;;  %v385_v9 = vpop.permute.xlu0 %384  ;;  %v2626_v37 = vmov %v2622_v16  ;;  %v555_v60 = vsel %vm331_vm9, %v553_v51, %v554_v31 }
 0x1e0   : > { %v442_v40 = vmul.f32 %v2624_v61, %v2121_v1  ;;  %v348_v58 = vmul.f32 %v2626_v37, %v333_v11  ;;  %v468_v53 = vadd.f32 %v1986_v3, %v438_v23  ;;  %v461_v21 = vadd.f32 %v1989_v4, %v431_v29 }
 0x1e1   : > { %v405_v55 = vadd.f32 %v401_v14, %v349_v10  ;;  %v390_v59 = vadd.f32 %v385_v9, %v344_v63  ;;  %v647_v25 = vrot.slane %v2065_v54, 1  ;;  %v516_v1 = vadd.f32 %v1999_v17, %v486_v38  ;;  %v2637_v9 = vld [vmem:[#allocation22_spill] sm:$0xff] }
 0x1e2   : > { %v509_v0 = vadd.f32 %v2001_v27, %v479_v50  ;;  %v492_v11 = vadd.f32 %v2038_v26, %v468_v53  ;;  %v485_v23 = vadd.f32 %v2041_v48, %v461_v21  ;;  %v648_v3 = vrot.slane %v1859_v5, 1 }
 0x1e3   : > { %v444_v35 = vadd.f32 %v442_v40, %v405_v55  ;;  %v437_v46 = vadd.f32 %v435_v13, %v390_v59  ;;  %v811_v4 = vrot.slane %v1893_v24, 1  ;;  %v1041_v47 = vrot.slane %v1940_v44, 1  ;;  %v590_v19 = vpop.permute.xlu1 %589  ;;  %v399_v16 = vpop.permute.xlu0 %398 }
 0x1e4   : > { %v2248_v54 = vmul.f32 %v917_v34, %v2129_v7  ;;  %v2629_v26 = vmov %v2624_v61  ;;  %v404_v48 = vadd.f32 %v399_v16, %v348_v58  ;;  %v717_v5 = vrot.slane %v2063_v33, 7  ;;  %v2638_v58 = vld [vmem:[#allocation27_spill] sm:$0xff] }
 0x1e5   : > { %v474_v17 = vadd.f32 %v2020_v32, %v444_v35  ;;  %v467_v27 = vadd.f32 %v2032_v36, %v437_v46  ;;  %v441_v10 = vmul.f32 %v2629_v26, %v2160_v18  ;;  %v2630_v6 = vstv %s2627_s20 }
 0x1e6   : > { %v560_v24 = vmul.f32 %v2630_v6, %v555_v60  ;;  %v522_v63 = vadd.f32 %v2048_v8, %v492_v11  ;;  %v515_v29 = vadd.f32 %v2050_v62, %v485_v23  ;;  %v650_v7 = vsel %vm418_vm10, %v648_v3, %v647_v25 }
 0x1e7   : > { %v443_v32 = vadd.f32 %v441_v10, %v404_v48  ;;  %v498_v34 = vadd.f32 %v2053_v52, %v474_v17  ;;  %v491_v36 = vadd.f32 %v2068_v20, %v467_v27  ;;  %v716_v18 = vrot.slane %v1942_v45, 7  ;;  %v604_v8 = vpop.permute.xlu1 %603  ;;  %v588_v14 = vpop.permute.xlu0 %587 }
 0x1e8   : > { %v946_v33 = vrot.slane %v1983_v2, 7  ;;  %v556_v38 = vsel %vm331_vm9, %v554_v31, %v553_v51  ;;  %v2632_v50 = vstv %s2628_s21  ;;  %v649_v61 = vsel %vm418_vm10, %v647_v25, %v648_v3 }
 0x1e9   : > { %v566_v62 = vmul.f32 %v2632_v50, %v555_v60  ;;  %v562_v52 = vadd.f32 %v560_v24, %v510_v28  ;;  %v473_v20 = vadd.f32 %v2035_v42, %v443_v32  ;;  %v528_v45 = vadd.f32 %v2074_v49, %v498_v34 }
 0x1ea   : > { %v2276_v2 = vsel %vm331_vm9, %v716_v18, %v717_v5  ;;  %v2280_v31 = vsel %vm331_vm9, %v717_v5, %v716_v18  ;;  %v2633_v51 = vstv %s2631_s25  ;;  %v521_v57 = vadd.f32 %v2076_v22, %v491_v36 }
 0x1eb   : > { %v654_v40 = vmul.f32 %v2633_v51, %v650_v7  ;;  %v810_v28 = vrot.slane %v2108_v39, 1  ;;  %v594_v42 = vadd.f32 %v590_v19, %v562_v52  ;;  %v2635_v49 = vmov %v2630_v6  ;;  %v618_v35 = vpop.permute.xlu1 %617  ;;  %v602_v22 = vpop.permute.xlu0 %601  ;;  %v2643_v19 = vld [vmem:[#allocation23_spill] sm:$0xff] }
 0x1ec   : > { %v559_v13 = vmul.f32 %v2635_v49, %v556_v38  ;;  %v497_v37 = vadd.f32 %v2637_v9, %v473_v20  ;;  %v947_v53 = vrot.slane %v2638_v58, 7  ;;  %v2639_v21 = vstv %s1821_s7  ;;  %s2691_s7 = sld [smem:[#allocation48_spill]] }
 0x1ed   : > { %v660_v55 = vmul.f32 %v2639_v21, %v650_v7  ;;  %v2640_v59 = vmov %v2633_v51  ;;  %v2641_v46 = vstv %s1817_s26  ;;  %v568_v23 = vadd.f32 %v566_v62, %v516_v1 }
 0x1ee   : > { %v653_v25 = vmul.f32 %v2640_v59, %v649_v61  ;;  %v572_v11 = vmul.f32 %v2641_v46, %v555_v60  ;;  %v561_v3 = vadd.f32 %v559_v13, %v509_v0  ;;  %v2642_v39 = vstv %s1823_s8  ;;  %v2651_v13 = vld [vmem:[#allocation34_spill] sm:$0xff] }
 0x1ef   : > { %v666_v16 = vmul.f32 %v2642_v39, %v650_v7  ;;  %v527_v17 = vadd.f32 %v2643_v19, %v497_v37  ;;  %v2644_v27 = vmov %v2632_v50  ;;  %v2645_v10 = vmov %v2639_v21  ;;  %v632_v62 = vpop.permute.xlu1 %631  ;;  %v616_v52 = vpop.permute.xlu0 %615 }
 0x1f0   : > { %v565_v26 = vmul.f32 %v2644_v27, %v556_v38  ;;  %v659_v48 = vmul.f32 %v2645_v10, %v649_v61  ;;  %v2646_v5 = vstv %s2634_s9  ;;  %v2647_v24 = vstv %s2636_s14 }
 0x1f1   : > { %v578_v6 = vmul.f32 %v2646_v5, %v555_v60  ;;  %v672_v32 = vmul.f32 %v2647_v24, %v650_v7  ;;  %v813_v34 = vsel %vm418_vm10, %v811_v4, %v810_v28  ;;  %v656_v1 = vadd.f32 %v654_v40, %v594_v42 }
 0x1f2   : > { %v608_v0 = vadd.f32 %v604_v8, %v568_v23  ;;  %v593_v36 = vadd.f32 %v588_v14, %v561_v3  ;;  %v2311_v18 = vsel %vm331_vm9, %v946_v33, %v947_v53  ;;  %v2315_v50 = vsel %vm331_vm9, %v947_v53, %v946_v33 }
 0x1f3   : > { %v2319_v60 = vsel %vm418_vm10, %v810_v28, %v811_v4  ;;  %v574_v7 = vadd.f32 %v572_v11, %v522_v63  ;;  %v567_v20 = vadd.f32 %v565_v26, %v515_v29  ;;  %v2648_v51 = vmov %v2641_v46  ;;  %v753_v11 = vpop.permute.xlu1 %752 }
 0x1f4   : > { %v571_v8 = vmul.f32 %v2648_v51, %v556_v38  ;;  %v2649_v14 = vmov %v2642_v39  ;;  %v2650_v42 = vstv %s1829_s11  ;;  %v1040_v33 = vrot.slane %v2651_v13, 1  ;;  %v630_v39 = vpop.permute.xlu0 %629  ;;  %s2694_s11 = sld [smem:[#allocation21_spill]] }
 0x1f5   : > { %v665_v40 = vmul.f32 %v2649_v14, %v649_v61  ;;  %v723_v49 = vmul.f32 %v2650_v42, %v2276_v2  ;;  %v622_v9 = vadd.f32 %v618_v35, %v574_v7  ;;  %v2652_v4 = vstv %s1855_s0  ;;  %s2670_s0 = sld [smem:[#allocation19_spill]] }
 0x1f6   : > { %v817_v63 = vmul.f32 %v2652_v4, %v813_v34  ;;  %v2653_v28 = vmov %v2646_v5  ;;  %v662_v58 = vadd.f32 %v660_v55, %v608_v0  ;;  %v655_v29 = vadd.f32 %v653_v25, %v593_v36 }
 0x1f7   : > { %v577_v37 = vmul.f32 %v2653_v28, %v556_v38  ;;  %v607_v53 = vadd.f32 %v602_v22, %v567_v20  ;;  %v725_v21 = vadd.f32 %v723_v49, %v656_v1  ;;  %v580_v59 = vadd.f32 %v578_v6, %v528_v45  ;;  %v767_v20 = vpop.permute.xlu1 %766  ;;  %v2663_v28 = vld [vmem:[#allocation29_spill] sm:$0xff] }
 0x1f8   : > { %v573_v46 = vadd.f32 %v571_v8, %v521_v57  ;;  %v2654_v23 = vmov %v2647_v24  ;;  %v2655_v19 = vstv %s1835_s13  ;;  %v2656_v35 = vstv %s1867_s3  ;;  %v751_v51 = vpop.permute.xlu0 %750  ;;  %s2675_s3 = sld [smem:[#allocation10_spill]] }
 0x1f9   : > { %v671_v3 = vmul.f32 %v2654_v23, %v649_v61  ;;  %v729_v27 = vmul.f32 %v2655_v19, %v2276_v2  ;;  %v757_v26 = vadd.f32 %v753_v11, %v725_v21  ;;  %v823_v10 = vmul.f32 %v2656_v35, %v813_v34 }
 0x1fa   : > { %v2657_v5 = vmov %v2650_v42  ;;  %v2658_v55 = vmov %v2652_v4  ;;  %v2350_v61 = vsel %vm418_vm10, %v1040_v33, %v1041_v47  ;;  %v668_v45 = vadd.f32 %v666_v16, %v622_v9 }
 0x1fb   : > { %v722_v38 = vmul.f32 %v2657_v5, %v2280_v31  ;;  %v816_v25 = vmul.f32 %v2658_v55, %v2319_v60  ;;  %v636_v57 = vadd.f32 %v632_v62, %v580_v59  ;;  %v621_v22 = vadd.f32 %v616_v52, %v573_v46  ;;  %v2661_v52 = vld [vmem:[#allocation24_spill] sm:$0xff] }
 0x1fc   : > { %v661_v6 = vadd.f32 %v659_v48, %v607_v53  ;;  %v819_v24 = vadd.f32 %v817_v63, %v757_v26  ;;  %v731_v1 = vadd.f32 %v729_v27, %v662_v58  ;;  %v2356_v36 = vsel %vm418_vm10, %v1041_v47, %v1040_v33  ;;  %v781_v58 = vpop.permute.xlu1 %780  ;;  %v765_v21 = vpop.permute.xlu0 %764  ;;  %v2669_v27 = vld [vmem:[#allocation26_spill] sm:$0xff] }
 0x1fd   : > { %v724_v0 = vadd.f32 %v722_v38, %v655_v29  ;;  %v579_v7 = vadd.f32 %v577_v37, %v527_v17  ;;  %v2659_v8 = vstv %s1842_s15  ;;  %v2660_v14 = vstv %s1875_s5  ;;  %s2690_s5 = sld [smem:[#allocation20_spill]] }
 0x1fe   : > { %v735_v16 = vmul.f32 %v2659_v8, %v2276_v2  ;;  %v829_v62 = vmul.f32 %v2660_v14, %v813_v34  ;;  %v849_v48 = vadd.f32 %v2661_v52, %v819_v24  ;;  %v771_v42 = vadd.f32 %v767_v20, %v731_v1  ;;  %v2679_v52 = vld [vmem:[#allocation30_spill] sm:$0xff] }
 0x1ff   : > { %v756_v44 = vadd.f32 %v751_v51, %v724_v0  ;;  %v2662_v56 = vmov %v2655_v19  ;;  %v674_v49 = vadd.f32 %v672_v32, %v636_v57  ;;  %v667_v17 = vadd.f32 %v665_v40, %v621_v22  ;;  %v2672_v57 = vld [vmem:[#allocation35_spill] sm:$0xff] }
 0x200   : > { %v728_v47 = vmul.f32 %v2662_v56, %v2280_v31  ;;  %v635_v13 = vadd.f32 %v630_v39, %v579_v7  ;;  %v737_v33 = vadd.f32 %v735_v16, %v668_v45  ;;  %v825_v9 = vadd.f32 %v823_v10, %v771_v42  ;;  %v2668_v39 = vld [vmem:[#allocation25_spill] sm:$0xff]  ;;  %v795_v1 = vpop.permute.xlu1 %794  ;;  %v779_v20 = vpop.permute.xlu0 %778  ;;  %v2680_v42 = vld [vmem:[#allocation28_spill] sm:$0xff] }
 0x201   : > { %v818_v4 = vadd.f32 %v816_v25, %v756_v44  ;;  %v873_v37 = vadd.f32 %v2663_v28, %v849_v48  ;;  %v2664_v29 = vmov %v2656_v35  ;;  %v2665_v59 = vstv %s1857_s1  ;;  %s1386_s1 = sshll.u32 %s2675_s3, 6 }
 0x202   : > { %v730_v63 = vadd.f32 %v728_v47, %v661_v6  ;;  %v822_v53 = vmul.f32 %v2664_v29, %v2319_v60  ;;  %v741_v46 = vmul.f32 %v2665_v59, %v2276_v2  ;;  %v2666_v11 = vstv %s1883_s22  ;;  %v2671_v2 = vld [vmem:[#allocation33_spill] sm:$0xff]  ;;  %s2420_s8 = scalar_lea.vmem %s2691_s7, %s1386_s1 }
 0x203   : > { %v835_v23 = vmul.f32 %v2666_v11, %v813_v34  ;;  %v2667_v32 = vmov %v2659_v8  ;;  %v855_v19 = vadd.f32 %v2668_v39, %v825_v9  ;;  %v848_v26 = vadd.f32 %v2669_v27, %v818_v4  ;;  %v2673_v6 = vld [vmem:[#allocation37_spill] sm:$0xff]  ;;  %v2682_v9 = vld [vmem:[#allocation38_spill] sm:$0xff] }
 0x204   : > { %v734_v40 = vmul.f32 %v2667_v32, %v2280_v31  ;;  %v785_v35 = vadd.f32 %v781_v58, %v737_v33  ;;  %v770_v10 = vadd.f32 %v765_v21, %v730_v63  ;;  %v673_v5 = vadd.f32 %v671_v3, %v635_v13  ;;  %v2681_v13 = vld [vmem:[#allocation36_spill] sm:$0xff]  ;;  %v983_v29 = vpop.permute.xlu1 %982 }
 0x205   : > { %v743_v38 = vadd.f32 %v741_v46, %v674_v49  ;;  %v903_v25 = vadd.f32 %v2671_v2, %v873_v37  ;;  %v879_v22 = vadd.f32 %v2672_v57, %v855_v19  ;;  %v872_v24 = vadd.f32 %v2673_v6, %v848_v26  ;;  %v2688_v19 = vld [vmem:[#allocation32_spill] sm:$0xff]  ;;  %v2689_v26 = vld [vmem:[#allocation31_spill] sm:$0xff] }
 0x206   : > { %v736_v55 = vadd.f32 %v734_v40, %v667_v17  ;;  %v831_v34 = vadd.f32 %v829_v62, %v785_v35  ;;  %v824_v45 = vadd.f32 %v822_v53, %v770_v10  ;;  %v2674_v0 = vmov %v2660_v14 }
 0x207   : > { %v828_v7 = vmul.f32 %v2674_v0, %v2319_v60  ;;  %v2676_v51 = vstv %s2670_s0  ;;  %v2677_v8 = vstv %s1904_s6  ;;  %v2678_v14 = vmov %v2665_v59  ;;  %v793_v59 = vpop.permute.xlu0 %792  ;;  %s2708_s6 = sld [smem:[#allocation49_spill]] }
 0x208   : > { %v953_v3 = vmul.f32 %v2676_v51, %v2311_v18  ;;  %v1047_v16 = vmul.f32 %v2677_v8, %v2356_v36  ;;  %v740_v62 = vmul.f32 %v2678_v14, %v2280_v31  ;;  %v861_v48 = vadd.f32 %v2679_v52, %v831_v34  ;;  %v2683_v31 = vld [vmem:[#allocation40_spill] sm:$0xff]  ;;  %v997_v6 = vpop.permute.xlu1 %996 }
 0x209   : > { %v854_v44 = vadd.f32 %v2680_v42, %v824_v45  ;;  %v799_v56 = vadd.f32 %v795_v1, %v743_v38  ;;  %v784_v47 = vadd.f32 %v779_v20, %v736_v55  ;;  %v909_v33 = vadd.f32 %v2681_v13, %v879_v22  ;;  %v2693_v55 = vld [vmem:[#allocation41_spill] sm:$0xff]  ;;  %v2701_v42 = vld [vmem:[#allocation42_spill] sm:$0xff] }
 0x20a   : > { %v955_v49 = vadd.f32 %v953_v3, %v903_v25  ;;  %v742_v17 = vadd.f32 %v740_v62, %v673_v5  ;;  %v902_v4 = vadd.f32 %v2682_v9, %v872_v24  ;;  %v885_v37 = vadd.f32 %v2683_v31, %v861_v48 }
 0x20b   : > { %v837_v63 = vadd.f32 %v835_v23, %v799_v56  ;;  %v830_v28 = vadd.f32 %v828_v7, %v784_v47  ;;  %v878_v58 = vadd.f32 %v2180_v41, %v854_v44  ;;  %v2684_v53 = vmov %v2666_v11  ;;  %v981_v1 = vpop.permute.xlu0 %980 }
 0x20c   : > { %v834_v21 = vmul.f32 %v2684_v53, %v2319_v60  ;;  %v2685_v46 = vstv %s1891_s27  ;;  %v2686_v32 = vstv %s1914_s28  ;;  %v2687_v23 = vmov %v2676_v51  ;;  %v1011_v31 = vpop.permute.xlu1 %1010  ;;  %s1301_s27 = sshll.u32 %s2675_s3, 3 }
 0x20d   : > { %v959_v11 = vmul.f32 %v2685_v46, %v2311_v18  ;;  %v1053_v40 = vmul.f32 %v2686_v32, %v2356_v36  ;;  %v952_v39 = vmul.f32 %v2687_v23, %v2315_v50  ;;  %v867_v27 = vadd.f32 %v2688_v19, %v837_v63  ;;  %s2497_s13 = scalar_lea.vmem %s2708_s6, %s1301_s27 }
 0x20e   : > { %v860_v35 = vadd.f32 %v2689_v26, %v830_v28  ;;  %v987_v41 = vadd.f32 %v983_v29, %v955_v49  ;;  %v798_v10 = vadd.f32 %v793_v59, %v742_v17  ;;  %v2692_v5 = vmov %v2677_v8  ;;  %v2703_v49 = vld [vmem:[#allocation43_spill] sm:$0xff] }
 0x20f   : > { %v961_v60 = vadd.f32 %v959_v11, %v909_v33  ;;  %v1046_v38 = vmul.f32 %v2692_v5, %v2350_v61  ;;  %v915_v2 = vadd.f32 %v2693_v55, %v885_v37  ;;  %v908_v25 = vadd.f32 %v2183_v43, %v878_v58  ;;  %v2698_v43 = vld [vmem:[#allocation39_spill] sm:$0xff] }
 0x210   : > { %v1049_v34 = vadd.f32 %v1047_v16, %v987_v41  ;;  %v836_v45 = vadd.f32 %v834_v21, %v798_v10  ;;  %v891_v57 = vadd.f32 %v2193_v30, %v867_v27  ;;  %v884_v22 = vadd.f32 %v2198_v12, %v860_v35  ;;  %v1025_v41 = vpop.permute.xlu1 %1024 }
 0x211   : > { %v954_v24 = vadd.f32 %v952_v39, %v902_v4  ;;  %v2695_v0 = vstv %s1906_s30  ;;  %v2696_v20 = vstv %s2690_s5  ;;  %v2697_v3 = vmov %v2685_v46 }
 0x212   : > { %v965_v7 = vmul.f32 %v2695_v0, %v2311_v18  ;;  %v1059_v51 = vmul.f32 %v2696_v20, %v2356_v36  ;;  %v958_v8 = vmul.f32 %v2697_v3, %v2315_v50  ;;  %1070 = vst.msk [vmem:[%s2420_s8 + $0x8] sm:$0xff] %vm1068_vm11, %v1049_v34  ;;  %v866_v16 = vadd.f32 %v2698_v43, %v836_v45 }
 0x213   : > { %v1001_v30 = vadd.f32 %v997_v6, %v961_v60  ;;  %v2699_v12 = vmov %v2686_v32  ;;  %v2700_v62 = vstv %s1950_s17  ;;  %v986_v48 = vadd.f32 %v981_v1, %v954_v24 }
 0x214   : > { %v1052_v14 = vmul.f32 %v2699_v12, %v2350_v61  ;;  %v971_v52 = vmul.f32 %v2700_v62, %v2311_v18  ;;  %v921_v44 = vadd.f32 %v2701_v42, %v891_v57  ;;  %v2702_v56 = vstv %s2694_s11  ;;  %v995_v18 = vpop.permute.xlu0 %994 }
 0x215   : > { %v1065_v47 = vmul.f32 %v2702_v56, %v2356_v36  ;;  %v914_v17 = vadd.f32 %v2703_v49, %v884_v22  ;;  %v1055_v13 = vadd.f32 %v1053_v40, %v1001_v30  ;;  %v967_v33 = vadd.f32 %v965_v7, %v915_v2 }
 0x216   : > { %v960_v9 = vadd.f32 %v958_v8, %v908_v25  ;;  %v890_v4 = vadd.f32 %v2213_v15, %v866_v16  ;;  %v1083_v63 = vmul.f32 %v1049_v34, %v1049_v34  ;;  %v1048_v28 = vadd.f32 %v1046_v38, %v986_v48 }
 0x217   : > { %v2704_v37 = vmov %v2695_v0  ;;  %v2705_v29 = vmov %v2696_v20  ;;  %1378 = vst.msk [vmem:[%s2420_s8 + $0x18] sm:$0xff] %vm1068_vm11, %v1055_v13  ;;  %v1015_v36 = vadd.f32 %v1011_v31, %v967_v33  ;;  %v2706_v59 = vmov %v2700_v62 }
 0x218   : > { %v964_v58 = vmul.f32 %v2704_v37, %v2315_v50  ;;  %v1058_v53 = vmul.f32 %v2705_v29, %v2350_v61  ;;  %v1000_v21 = vadd.f32 %v995_v18, %v960_v9  ;;  %v970_v46 = vmul.f32 %v2706_v59, %v2315_v50  ;;  %1069 = vst.msk [vmem:[%s2420_s8] sm:$0xff] %vm1068_vm11, %v1048_v28  ;;  %v1009_v5 = vpop.permute.xlu0 %1008 }
 0x219   : > { %v2707_v11 = vmov %v2702_v56  ;;  %v1072_v32 = vsel %vm1068_vm11, %v1049_v34, 0.0  ;;  %v1071_v40 = vsel %vm1068_vm11, %v1048_v28, 0.0  ;;  %v1082_v23 = vmul.f32 %v1048_v28, %v1048_v28 }
 0x21a   : > { %v2467_v15 = vmul.f32 %v2707_v11, %v2350_v61  ;;  %v920_v39 = vadd.f32 %v2248_v54, %v890_v4  ;;  %v1108_v19 = vmul.f32 %v1055_v13, %v1055_v13  ;;  %v1073_v27 = vadd.f32 %v1072_v32, %v1071_v40 }
 0x21b   : > { %v1061_v26 = vadd.f32 %v1059_v51, %v1015_v36  ;;  %v1054_v35 = vadd.f32 %v1052_v14, %v1000_v21  ;;  %v1085_v50 = vsel %vm1068_vm11, %v1083_v63, 0.0  ;;  %v1084_v61 = vsel %vm1068_vm11, %v1082_v23, 0.0 }
 0x21c   : > { %v973_v10 = vadd.f32 %v971_v52, %v921_v44  ;;  %v966_v60 = vadd.f32 %v964_v58, %v914_v17  ;;  %v1098_v38 = vsel %vm1068_vm11, %v1055_v13, 0.0  ;;  %v1074_v55 = vrot.slane %v1073_v27, 4  ;;  %v1023_v30 = vpop.permute.xlu0 %1022 }
 0x21d   : > { %v1086_v2 = vadd.f32 %v1085_v50, %v1084_v61  ;;  %1380 = vst.msk [vmem:[%s2420_s8 + $0x28] sm:$0xff] %vm1068_vm11, %v1061_v26  ;;  %v1133_v54 = vmul.f32 %v1061_v26, %v1061_v26  ;;  %1377 = vst.msk [vmem:[%s2420_s8 + $0x10] sm:$0xff] %vm1068_vm11, %v1054_v35  ;;  %v1097_v25 = vsel %vm1068_vm11, %v1054_v35, 0.0  ;;  %v1107_v34 = vmul.f32 %v1054_v35, %v1054_v35 }
 0x21e   : > { %v1029_v45 = vadd.f32 %v1025_v41, %v973_v10  ;;  %v1014_v57 = vadd.f32 %v1009_v5, %v966_v60  ;;  %v1110_v22 = vsel %vm1068_vm11, %v1108_v19, 0.0  ;;  %v1075_v6 = vadd.f32 %v1074_v55, %v1073_v27 }
 0x21f   : > { %v1087_v24 = vrot.slane %v1086_v2, 4  ;;  %v1099_v1 = vadd.f32 %v1098_v38, %v1097_v25  ;;  %v1109_v0 = vsel %vm1068_vm11, %v1107_v34, 0.0  ;;  %v972_v51 = vadd.f32 %v970_v46, %v920_v39 }
 0x220   : > { %v1067_v7 = vadd.f32 %v1065_v47, %v1029_v45  ;;  %v1060_v20 = vadd.f32 %v1058_v53, %v1014_v57  ;;  %v1076_v3 = vrot.slane %v1075_v6, 2  ;;  %v1111_v16 = vadd.f32 %v1110_v22, %v1109_v0 }
 0x221   : > { %v1088_v8 = vadd.f32 %v1087_v24, %v1086_v2  ;;  %v1100_v43 = vrot.slane %v1099_v1, 4  ;;  %v1123_v12 = vsel %vm1068_vm11, %v1061_v26, 0.0  ;;  %v1135_v14 = vsel %vm1068_vm11, %v1133_v54, 0.0 }
 0x222   : > { %1382 = vst.msk [vmem:[%s2420_s8 + $0x38] sm:$0xff] %vm1068_vm11, %v1067_v7  ;;  %1379 = vst.msk [vmem:[%s2420_s8 + $0x20] sm:$0xff] %vm1068_vm11, %v1060_v20  ;;  %v1122_v62 = vsel %vm1068_vm11, %v1060_v20, 0.0  ;;  %v1132_v52 = vmul.f32 %v1060_v20, %v1060_v20  ;;  %v1077_v48 = vadd.f32 %v1076_v3, %v1075_v6  ;;  %v1112_v56 = vrot.slane %v1111_v16, 4 }
 0x223   : > { %v1089_v42 = vrot.slane %v1088_v8, 2  ;;  %v1101_v44 = vadd.f32 %v1100_v43, %v1099_v1  ;;  %v1148_v47 = vsel %vm1068_vm11, %v1067_v7, 0.0  ;;  %v1124_v49 = vadd.f32 %v1123_v12, %v1122_v62 }
 0x224   : > { %v1134_v17 = vsel %vm1068_vm11, %v1132_v52, 0.0  ;;  %v1028_v13 = vadd.f32 %v1023_v30, %v972_v51  ;;  %v1078_v33 = vrot.slane %v1077_v48, 1  ;;  %v1113_v63 = vadd.f32 %v1112_v56, %v1111_v16 }
 0x225   : > { %v1090_v9 = vadd.f32 %v1089_v42, %v1088_v8  ;;  %v1102_v4 = vrot.slane %v1101_v44, 2  ;;  %v1158_v28 = vmul.f32 %v1067_v7, %v1067_v7  ;;  %v1125_v31 = vrot.slane %v1124_v49, 4 }
 0x226   : > { %v1136_v18 = vadd.f32 %v1135_v14, %v1134_v17  ;;  %v1066_v37 = vadd.f32 %v2467_v15, %v1028_v13  ;;  %v1079_v58 = vadd.f32 %v1078_v33, %v1077_v48  ;;  %v1114_v36 = vrot.slane %v1113_v63, 2 }
 0x227   : > { %v1091_v29 = vrot.slane %v1090_v9, 1  ;;  %v1103_v53 = vadd.f32 %v1102_v4, %v1101_v44  ;;  %v1126_v21 = vadd.f32 %v1125_v31, %v1124_v49  ;;  %v1160_v15 = vsel %vm1068_vm11, %v1158_v28, 0.0 }
 0x228   : > { %v1137_v59 = vrot.slane %v1136_v18, 4  ;;  %1381 = vst.msk [vmem:[%s2420_s8 + $0x30] sm:$0xff] %vm1068_vm11, %v1066_v37  ;;  %v1147_v46 = vsel %vm1068_vm11, %v1066_v37, 0.0  ;;  %v1157_v11 = vmul.f32 %v1066_v37, %v1066_v37  ;;  %v1115_v23 = vadd.f32 %v1114_v36, %v1113_v63 }
 0x229   : > { %1081 = vst.msk [vmem:[%s2497_s13] sm:$0x1] %vm1080_vm12, %v1079_v58  ;;  %v1092_v32 = vadd.f32 %v1091_v29, %v1090_v9  ;;  %v1104_v40 = vrot.slane %v1103_v53, 1  ;;  %v1149_v39 = vadd.f32 %v1148_v47, %v1147_v46  ;;  %v1127_v19 = vrot.slane %v1126_v21, 2 }
 0x22a   : > { %v1138_v27 = vadd.f32 %v1137_v59, %v1136_v18  ;;  %v1159_v26 = vsel %vm1068_vm11, %v1157_v11, 0.0  ;;  %v1116_v50 = vrot.slane %v1115_v23, 1 }
 0x22b   : > { %1093 = vst.msk [vmem:[%s2497_s13 + $0x4] sm:$0x1] %vm1080_vm12, %v1092_v32  ;;  %v1105_v35 = vadd.f32 %v1104_v40, %v1103_v53  ;;  %v1150_v61 = vrot.slane %v1149_v39, 4  ;;  %v1161_v41 = vadd.f32 %v1160_v15, %v1159_v26  ;;  %v1128_v10 = vadd.f32 %v1127_v19, %v1126_v21 }
 0x22c   : > { %v1139_v60 = vrot.slane %v1138_v27, 2  ;;  %v1117_v5 = vadd.f32 %v1116_v50, %v1115_v23 }
 0x22d   : > { %1106 = vst.msk [vmem:[%s2497_s13 + $0x1] sm:$0x1] %vm1080_vm12, %v1105_v35  ;;  %v1151_v38 = vadd.f32 %v1150_v61, %v1149_v39  ;;  %v1162_v55 = vrot.slane %v1161_v41, 4  ;;  %v1129_v2 = vrot.slane %v1128_v10, 1 }
 0x22e   : > { %v1140_v54 = vadd.f32 %v1139_v60, %v1138_v27  ;;  %1118 = vst.msk [vmem:[%s2497_s13 + $0x5] sm:$0x1] %vm1080_vm12, %v1117_v5 }
 0x22f   : > { %v1152_v25 = vrot.slane %v1151_v38, 2  ;;  %v1163_v34 = vadd.f32 %v1162_v55, %v1161_v41  ;;  %v1130_v45 = vadd.f32 %v1129_v2, %v1128_v10 }
 0x230   : > { %v1141_v57 = vrot.slane %v1140_v54, 1 }
 0x231   : > { %v1153_v22 = vadd.f32 %v1152_v25, %v1151_v38  ;;  %v1164_v6 = vrot.slane %v1163_v34, 2  ;;  %1131 = vst.msk [vmem:[%s2497_s13 + $0x2] sm:$0x1] %vm1080_vm12, %v1130_v45 }
 0x232   : > { %v1142_v24 = vadd.f32 %v1141_v57, %v1140_v54 }
 0x233   : > { %v1154_v1 = vrot.slane %v1153_v22, 1  ;;  %v1165_v0 = vadd.f32 %v1164_v6, %v1163_v34 }
 0x234   : > { %1143 = vst.msk [vmem:[%s2497_s13 + $0x6] sm:$0x1] %vm1080_vm12, %v1142_v24 }
 0x235   : > { %v1155_v7 = vadd.f32 %v1154_v1, %v1153_v22  ;;  %v1166_v20 = vrot.slane %v1165_v0, 1 }
 0x237   : > { %1156 = vst.msk [vmem:[%s2497_s13 + $0x3] sm:$0x1] %vm1080_vm12, %v1155_v7  ;;  %v1167_v51 = vadd.f32 %v1166_v20, %v1165_v0 }
 0x239   : > { %1168 = vst.msk [vmem:[%s2497_s13 + $0x7] sm:$0x1] %vm1080_vm12, %v1167_v51 }
 0x23a PF: > { %s2709_s15 = sld [smem:[#allocation9_spill]] }
 0x240   : > { %s18_s18 = sadd.s32 1, %s2709_s15  }
 0x241   : > { %p15_p5 = scmp.ge.s32.totalorder %s18_s18, 4  }
 0x243   :  { %17 = sbr.rel (!%p15_p5) target bundleno = 9 (0x9), region = 95 }
 0x24a   :  { %1204 = vsyncpa [#allocation3], 1 }
 0x24b   :  { %1206 = vsyncpa [#allocation3 + $0x1], 1 }
 0x24c   :  { %1207 = vsyncpa [#allocation5], 1 }

</bundles_post_ra>
